<compile_context>
chip_gen: v7x
topology: tpu7x:2x2x1
jax: 0.10.0
libtpu: 0.0.40
codegen_flags: <defaults>
</compile_context>

<pallas_src>
import jax
import jax.numpy as jnp
from jax.experimental import pallas as pl
from jax.experimental.pallas import tpu as pltpu


# ----------------------------- Pallas kernels ------------------------------

def _conv1_kernel(x_ref, w1t_ref, b1_ref, o_ref, xp_ref):
    # x_ref  : (1, Cin, Hin, Win)  input tile (NCHW), f32
    # w1t_ref: (9, C1, Cin)        conv1 weights per 3x3 tap, bf16
    # b1_ref : (C1, 1)             f32
    # o_ref  : (1, C1, Hin, Win)   conv1 output (pre-upsample), f32
    # xp_ref : (Cin, Hin+2, Win+2) VMEM zero-halo scratch, f32
    Cin, Hin, Win = x_ref.shape[1], x_ref.shape[2], x_ref.shape[3]
    C1 = o_ref.shape[1]

    # Scratch persists across grid steps and its interior is fully rewritten
    # every step, so the zero fill (for the 1-wide halo) runs only once.
    @pl.when(pl.program_id(0) == 0)
    def _():
        xp_ref[...] = jnp.zeros_like(xp_ref)

    xp_ref[:, 1:Hin + 1, 1:Win + 1] = x_ref[0]

    # conv1 (3x3) in accumulate form over the 9 taps: bf16 MXU feed,
    # f32 accumulation, no im2col concat temporary.
    acc = jnp.zeros((C1, Hin * Win), jnp.float32)
    for kh in range(3):
        for kw in range(3):
            piece = xp_ref[:, kh:kh + Hin, kw:kw + Win].reshape(Cin, Hin * Win)
            acc = acc + jnp.dot(w1t_ref[kh * 3 + kw],
                                piece.astype(jnp.bfloat16),
                                preferred_element_type=jnp.float32)
    o_ref[...] = (acc + b1_ref[...]).reshape(1, C1, Hin, Win)


def _fused_tail_kernel(c1_ref, ahp_ref, awt_ref, w2t_ref, b2_ref,
                       w3_ref, b3_ref, o_ref):
    # c1_ref : (1, C1, Hin, Win)   conv1 output, f32 (resident across row tiles)
    # ahp_ref: (height+2, Hin)     H bilinear matrix, conv2 zero-pad rows baked, f32
    # awt_ref: (3, Win, width)     kw-shifted W bilinear matrices (pad cols baked), bf16
    # w2t_ref: (9, C2, C1)         conv2 weights per 3x3 tap, bf16
    # b2_ref : (C2, 1)             f32
    # w3_ref : (1, C2)             conv3 (1x1) weights, bf16
    # b3_ref : (1, 1)              f32
    # o_ref  : (1, 1, TH*width)    flat, lane-dense output tile, f32
    i = pl.program_id(1)
    C1, Hin, Win = c1_ref.shape[1], c1_ref.shape[2], c1_ref.shape[3]
    C2 = b2_ref.shape[0]
    width = awt_ref.shape[2]
    TH = o_ref.shape[2] // width

    # H-direction bilinear resize for this tile's TH+2 halo rows (global
    # zero-pad rows are baked into ahp): one batched matmul over channels.
    start = pl.multiple_of(i * TH, TH)
    ahp_s = ahp_ref[pl.ds(start, TH + 2), :]                      # (TH+2, Hin)
    ahp_b = jnp.broadcast_to(ahp_s[None], (C1, TH + 2, Hin))
    m = jax.lax.dot_general(ahp_b, c1_ref[0],
                            (((2,), (1,)), ((0,), (0,))),
                            preferred_element_type=jnp.float32)   # (C1, TH+2, Win)
    m2 = m.reshape(C1 * (TH + 2), Win).astype(jnp.bfloat16)       # single cast

    # conv2 (3x3) in accumulate form over the 9 taps.  For each kw tap the
    # W-resize is one lane-dense matmul against the pre-shifted matrix, so no
    # cross-lane slicing of the big tile and no 9-piece concat is needed.
    acc = jnp.zeros((C2, TH * width), jnp.float32)
    for kw in range(3):
        r = jnp.dot(m2, awt_ref[kw],
                    preferred_element_type=jnp.float32)           # (C1*(TH+2), width)
        r = r.reshape(C1, TH + 2, width).astype(jnp.bfloat16)     # single cast
        for kh in range(3):
            piece = r[:, kh:kh + TH, :].reshape(C1, TH * width)
            acc = acc + jnp.dot(w2t_ref[kh * 3 + kw], piece,
                                preferred_element_type=jnp.float32)
    y = jnp.maximum(acc + b2_ref[...], 0.0)                       # ReLU

    # conv3 (1x1) + sigmoid; lane-dense flat store (NCHW reshape done outside).
    z = jnp.dot(w3_ref[...], y.astype(jnp.bfloat16),
                preferred_element_type=jnp.float32) + b3_ref[...]
    o_ref[...] = jax.nn.sigmoid(z).reshape(1, 1, TH * width)


# ------------------------------- glue (JAX) --------------------------------

def _bilinear_matrix(in_size, out_size):
    """Interpolation matrix A (out, in) for bilinear, align_corners=True."""
    if out_size == 1:
        src = jnp.zeros((1,), jnp.float32)
    else:
        src = (jnp.arange(out_size, dtype=jnp.float32)
               * (in_size - 1) / (out_size - 1))
    i0 = jnp.clip(jnp.floor(src).astype(jnp.int32), 0, in_size - 1)
    i1 = jnp.clip(i0 + 1, 0, in_size - 1)
    frac = src - i0.astype(jnp.float32)
    rows = jnp.arange(out_size)
    m = jnp.zeros((out_size, in_size), jnp.float32)
    m = m.at[rows, i0].add(1.0 - frac)
    m = m.at[rows, i1].add(frac)
    return m


def _round_up(n, m):
    return -(-n // m) * m


def _vmem_capacity_bytes():
    """Physical VMEM per core (trace-time query; conservative fallback)."""
    try:
        info = pltpu.get_tpu_info()
        cap = getattr(info, "vmem_capacity_bytes", None)
        if cap and int(cap) >= 16 * 1024 * 1024:
            return int(cap)
    except Exception:
        pass
    return 64 * 1024 * 1024  # v7x-sized fallback: safe on every generation


def _tile_vmem_bytes(TH, width, Hin, Win, C1, C2, height):
    """Rough per-tile VMEM working-set estimate for the fused tail kernel."""
    lane = 128
    n_flat = _round_up(TH * width, lane)
    w_pad = _round_up(width, lane)
    win_pad = _round_up(Win, lane)
    hin_pad = _round_up(Hin, lane)
    rows = _round_up(TH + 2, 8)
    acc = _round_up(C2, 8) * n_flat * 4                   # conv2 accumulator (f32)
    m_tmp = C1 * rows * win_pad * (4 + 2)                 # H-resized rows f32 + bf16
    r_tmp = C1 * rows * w_pad * (4 + 2)                   # W-resized rows f32 + bf16
    piece = 2 * C1 * n_flat * 2                           # live im2col pieces (bf16)
    blocks = 2 * (C1 * _round_up(Hin, 8) * win_pad * 4          # c1 block
                  + _round_up(height + 2, 8) * hin_pad * 4      # ahp
                  + 3 * _round_up(Win, 8) * w_pad * 2           # awt
                  + 9 * _round_up(C2, 8) * _round_up(C1, lane) * 2  # w2 taps
                  + n_flat * 4)                                 # output block
    return acc + m_tmp + r_tmp + piece + blocks


def _pick_row_tile(height, width, Hin, Win, C1, C2, budget_bytes):
    """Largest row tile TH (divisor of height, multiple of 8 when possible)
    whose fused-tail working set fits the VMEM budget."""
    cands = sorted({t for t in range(1, height + 1)
                    if height % t == 0 and (t % 8 == 0 or t == height)},
                   reverse=True)
    for t in cands:
        if t <= 512 and _tile_vmem_bytes(t, width, Hin, Win,
                                         C1, C2, height) <= budget_bytes:
            return t
    return cands[-1]


def depth_head_forward(hidden_states, height, width, params):
    """Pallas implementation of DepthAnythingDepthEstimationHead.forward."""
    height, width = int(height), int(width)
    x = hidden_states.astype(jnp.float32)                  # NCHW
    B, Cin, Hin, Win = x.shape
    w1, b1 = params["w1"], params["b1"]
    w2, b2 = params["w2"], params["b2"]
    w3, b3 = params["w3"], params["b3"]
    C1, C2 = w1.shape[0], w2.shape[0]

    # Per-tap packed weights, pre-cast to bf16 in the wrapper (no per-tile casts).
    w1t = jnp.transpose(w1, (2, 3, 0, 1)).reshape(9, C1, Cin).astype(jnp.bfloat16)
    w2t = jnp.transpose(w2, (2, 3, 0, 1)).reshape(9, C2, C1).astype(jnp.bfloat16)
    w3m = w3.reshape(1, C2).astype(jnp.bfloat16)
    b1c = b1.reshape(C1, 1).astype(jnp.float32)
    b2c = b2.reshape(C2, 1).astype(jnp.float32)
    b3c = b3.reshape(1, 1).astype(jnp.float32)

    # Tiny bilinear matrices with conv2's zero padding baked in.
    ah = _bilinear_matrix(Hin, height)                     # (height, Hin)
    ahp = jnp.zeros((height + 2, Hin), jnp.float32).at[1:height + 1].set(ah)
    aw = _bilinear_matrix(Win, width)                      # (width, Win)
    awp = jnp.zeros((Win, width + 2), jnp.float32).at[:, 1:width + 1].set(aw.T)
    # Three column-shifted copies: one per conv2 kw tap (no lane shifts in-kernel).
    awt = jnp.stack([awp[:, kw:kw + width] for kw in range(3)],
                    axis=0).astype(jnp.bfloat16)           # (3, Win, width)

    # VMEM budgeting (generation-aware: fits v7x's 64 MiB and v5e's 16 MiB default).
    cap = _vmem_capacity_bytes()
    budget = min(int(cap * 0.45), 56 * 1024 * 1024)
    TH = _pick_row_tile(height, width, Hin, Win, C1, C2, budget)
    assert height % TH == 0
    n_tiles = height // TH
    ws = _tile_vmem_bytes(TH, width, Hin, Win, C1, C2, height)
    vmem2 = int(min(max(2 * ws, 32 * 1024 * 1024), int(cap * 0.85)))
    vmem1 = int(min(32 * 1024 * 1024, int(cap * 0.85)))

    # ---- kernel 1: conv1 only (small pre-upsample intermediate) ----
    c1 = pl.pallas_call(
        _conv1_kernel,
        out_shape=jax.ShapeDtypeStruct((B, C1, Hin, Win), jnp.float32),
        grid=(B,),
        in_specs=[
            pl.BlockSpec((1, Cin, Hin, Win), lambda b: (b, 0, 0, 0)),
            pl.BlockSpec((9, C1, Cin), lambda b: (0, 0, 0)),
            pl.BlockSpec((C1, 1), lambda b: (0, 0)),
        ],
        out_specs=pl.BlockSpec((1, C1, Hin, Win), lambda b: (b, 0, 0, 0)),
        scratch_shapes=[pltpu.VMEM((Cin, Hin + 2, Win + 2), jnp.float32)],
        compiler_params=pltpu.CompilerParams(
            dimension_semantics=("arbitrary",),       # guarded scratch zero fill
            vmem_limit_bytes=vmem1),
    )(x, w1t, b1c)

    # ---- kernel 2: H-resize + W-resize + conv2 + ReLU + conv3 + sigmoid ----
    out_flat = pl.pallas_call(
        _fused_tail_kernel,
        out_shape=jax.ShapeDtypeStruct((B * n_tiles, 1, TH * width), jnp.float32),
        grid=(B, n_tiles),
        in_specs=[
            pl.BlockSpec((1, C1, Hin, Win), lambda b, i: (b, 0, 0, 0)),
            pl.BlockSpec((height + 2, Hin), lambda b, i: (0, 0)),
            pl.BlockSpec((3, Win, width), lambda b, i: (0, 0, 0)),
            pl.BlockSpec((9, C2, C1), lambda b, i: (0, 0, 0)),
            pl.BlockSpec((C2, 1), lambda b, i: (0, 0)),
            pl.BlockSpec((1, C2), lambda b, i: (0, 0)),
            pl.BlockSpec((1, 1), lambda b, i: (0, 0)),
        ],
        out_specs=pl.BlockSpec((1, 1, TH * width),
                               lambda b, i: (b * n_tiles + i, 0, 0)),
        compiler_params=pltpu.CompilerParams(
            dimension_semantics=("parallel", "parallel"),
            vmem_limit_bytes=vmem2),
    )(c1, ahp, awt, w2t, b2c, w3m, b3c)

    # Lane-dense flat tiles -> NCHW (free reshape in XLA).
    return out_flat.reshape(B, 1, height, width)


def _reference_forward(hidden_states_nchw, height, width, params):
    """Pure-JAX reference (lax conv + matrix bilinear) for sanity checking."""
    x = jnp.transpose(hidden_states_nchw, (0, 2, 3, 1)).astype(jnp.float32)
    dn = ("NHWC", "HWIO", "NHWC")
    y = jax.lax.conv_general_dilated(x, params["w1"], (1, 1), "SAME",
                                     dimension_numbers=dn) + params["b1"]
    ah = _bilinear_matrix(x.shape[1], height)
    aw = _bilinear_matrix(x.shape[2], width)
    y = jnp.einsum("oh,bhwc->bowc", ah, y)
    y = jnp.einsum("pw,bowc->bopc", aw, y)
    y = jax.lax.conv_general_dilated(y, params["w2"], (1, 1), "SAME",
                                     dimension_numbers=dn) + params["b2"]
    y = jnp.maximum(y, 0.0)
    y = jnp.einsum("bhwc,co->bhwo", y, params["w3"]) + params["b3"]
    y = jax.nn.sigmoid(y)
    return jnp.transpose(y, (0, 3, 1, 2))


# ----------------------------------- main -----------------------------------

if __name__ == "__main__":
    # Small, module-consistent shapes: in_features=8 -> conv1 out 4,
    # head_hidden_size=16, output channels 1.  Spatial 8x8 -> upsample 16x16.
    B, Cin, Hin, Win = 2, 8, 8, 8
    C1, C2 = Cin // 2, 16
    height, width = 16, 16

    key = jax.random.PRNGKey(0)
    k_x, k1, k2, k3, k4, k5, k6 = jax.random.split(key, 7)

    hidden_states = jax.random.normal(k_x, (B, Cin, Hin, Win), jnp.float32)

    # Deterministic synthetic parameters (PyTorch OIHW layout).
    w1_oihw = jax.random.normal(k1, (C1, Cin, 3, 3), jnp.float32) * 0.1
    b1 = jax.random.normal(k2, (C1,), jnp.float32) * 0.1
    w2_oihw = jax.random.normal(k3, (C2, C1, 3, 3), jnp.float32) * 0.1
    b2 = jax.random.normal(k4, (C2,), jnp.float32) * 0.1
    w3_oihw = jax.random.normal(k5, (1, C2, 1, 1), jnp.float32) * 0.1
    b3 = jax.random.normal(k6, (1,), jnp.float32) * 0.1

    params = dict(w1=w1_oihw, b1=b1, w2=w2_oihw, b2=b2, w3=w3_oihw, b3=b3)

    fwd = jax.jit(depth_head_forward, static_argnums=(1, 2))
    out = jax.block_until_ready(fwd(hidden_states, height, width, params))
    assert out.shape == (B, 1, height, width), out.shape

    ref_params = dict(
        w1=jnp.transpose(w1_oihw, (2, 3, 1, 0)), b1=b1,   # HWIO
        w2=jnp.transpose(w2_oihw, (2, 3, 1, 0)), b2=b2,
        w3=w3_oihw.reshape(1, C2).T, b3=b3,
    )
    ref = jax.block_until_ready(
        _reference_forward(hidden_states, height, width, ref_params))

    assert jnp.all(jnp.isfinite(out))
    max_err = float(jnp.max(jnp.abs(out - ref)))
    assert jnp.allclose(out, ref, rtol=5e-2, atol=5e-2), max_err

    print("KERNEL_OK")
</pallas_src>

<mosaic_0001>
module attributes {stable_mosaic.version = 11 : i64} {
  func.func private @main(%arg0: i32) attributes {dimension_semantics = [#tpu.dimension_semantics<core_parallel>], iteration_bounds = array<i64: 2>, tpu.core_type = #tpu.core_type<sc_scalar_subcore>, window_params = []} {
    return
  }
}

module attributes {stable_mosaic.version = 11 : i64} {
  func.func private @main(%arg0: i32) attributes {dimension_semantics = [#tpu.dimension_semantics<core_parallel>], iteration_bounds = array<i64: 2>, tpu.core_type = #tpu.core_type<sc_scalar_subcore>, window_params = []} {
    return
  }
}

module attributes {stable_mosaic.version = 11 : i64} {
  func.func @_conv1_kernel(%arg0: i32, %arg1: memref<1x8x8x8xf32, #tpu.memory_space<vmem>>, %arg2: memref<9x4x8xbf16, #tpu.memory_space<vmem>>, %arg3: memref<4x1xf32, #tpu.memory_space<vmem>>, %arg4: memref<1x4x8x8xf32, #tpu.memory_space<vmem>>, %arg5: memref<8x10x10xf32, #tpu.memory_space<vmem>>) attributes {dimension_semantics = [#tpu.dimension_semantics<arbitrary>], iteration_bounds = array<i64: 2>, scalar_prefetch = 0 : i64, scratch_operands = 1 : i64, tpu.core_type = #tpu.core_type<tc>, window_params = [{transform_indices = @transform_0, window_bounds = array<i64: 1, 8, 8, 8>}, {pipeline_mode = #tpu.pipeline_mode<synchronous>, transform_indices = @transform_1, window_bounds = array<i64: 9, 4, 8>}, {pipeline_mode = #tpu.pipeline_mode<synchronous>, transform_indices = @transform_2, window_bounds = array<i64: 4, 1>}, {transform_indices = @transform_3, window_bounds = array<i64: 1, 4, 8, 8>}]} {
    %c0_i32 = arith.constant 0 : i32
    %0 = arith.cmpi eq, %arg0, %c0_i32 : i32
    %1 = arith.extui %0 : i1 to i32
    %c0_i32_0 = arith.constant 0 : i32
    %2 = arith.cmpi ne, %1, %c0_i32_0 : i32
    scf.if %2 {
      %cst_68 = arith.constant 0.000000e+00 : f32
      %75 = vector.broadcast %cst_68 : f32 to vector<8x10x10xf32>
      %c0_69 = arith.constant 0 : index
      %c0_70 = arith.constant 0 : index
      %c0_71 = arith.constant 0 : index
      %76 = vector.load %arg5[%c0_69, %c0_70, %c0_71] : memref<8x10x10xf32, #tpu.memory_space<vmem>>, vector<8x10x10xf32>
      tpu.vector_store %arg5[%c0_69, %c0_70, %c0_71], %75 {strides = array<i32>} : memref<8x10x10xf32, #tpu.memory_space<vmem>>, vector<8x10x10xf32>,
    } else {
    }
    %c0 = arith.constant 0 : index
    %c0_1 = arith.constant 0 : index
    %c0_2 = arith.constant 0 : index
    %c0_3 = arith.constant 0 : index
    %3 = vector.load %arg1[%c0, %c0_1, %c0_2, %c0_3] : memref<1x8x8x8xf32, #tpu.memory_space<vmem>>, vector<1x8x8x8xf32>
    %4 = vector.shape_cast %3 : vector<1x8x8x8xf32> to vector<8x8x8xf32>
    %c0_4 = arith.constant 0 : index
    %c1 = arith.constant 1 : index
    %c1_5 = arith.constant 1 : index
    %5 = vector.load %arg5[%c0_4, %c1, %c1_5] : memref<8x10x10xf32, #tpu.memory_space<vmem>>, vector<8x8x8xf32>
    tpu.vector_store %arg5[%c0_4, %c1, %c1_5], %4 {strides = array<i32>} : memref<8x10x10xf32, #tpu.memory_space<vmem>>, vector<8x8x8xf32>,
    %cst = arith.constant 0.000000e+00 : f32
    %6 = vector.broadcast %cst : f32 to vector<4x64xf32>
    %c0_6 = arith.constant 0 : index
    %c0_7 = arith.constant 0 : index
    %c0_8 = arith.constant 0 : index
    %7 = vector.load %arg5[%c0_6, %c0_7, %c0_8] : memref<8x10x10xf32, #tpu.memory_space<vmem>>, vector<8x8x8xf32>
    %8 = vector.shape_cast %7 : vector<8x8x8xf32> to vector<8x64xf32>
    %c0_9 = arith.constant 0 : index
    %c0_10 = arith.constant 0 : index
    %c0_11 = arith.constant 0 : index
    %9 = vector.load %arg2[%c0_9, %c0_10, %c0_11] : memref<9x4x8xbf16, #tpu.memory_space<vmem>>, vector<1x4x8xbf16>
    %10 = vector.shape_cast %9 : vector<1x4x8xbf16> to vector<4x8xbf16>
    %11 = arith.truncf %8 : vector<8x64xf32> to vector<8x64xbf16>
    %cst_12 = arith.constant dense<0.000000e+00> : vector<4x64xf32>
    %12 = tpu.matmul %10, %11, %cst_12 {dimension_numbers = #tpu.dot_dimension_numbers<[1], [0], [0], [1], [0, 0, 1, 1], [], []>} : vector<4x8xbf16>, vector<8x64xbf16>, vector<4x64xf32> -> vector<4x64xf32>
    %13 = arith.addf %6, %12 : vector<4x64xf32>
    %c0_13 = arith.constant 0 : index
    %c0_14 = arith.constant 0 : index
    %c1_15 = arith.constant 1 : index
    %14 = vector.load %arg5[%c0_13, %c0_14, %c1_15] : memref<8x10x10xf32, #tpu.memory_space<vmem>>, vector<8x8x8xf32>
    %15 = vector.shape_cast %14 : vector<8x8x8xf32> to vector<8x64xf32>
    %c1_16 = arith.constant 1 : index
    %c0_17 = arith.constant 0 : index
    %c0_18 = arith.constant 0 : index
    %16 = vector.load %arg2[%c1_16, %c0_17, %c0_18] : memref<9x4x8xbf16, #tpu.memory_space<vmem>>, vector<1x4x8xbf16>
    %17 = vector.shape_cast %16 : vector<1x4x8xbf16> to vector<4x8xbf16>
    %18 = arith.truncf %15 : vector<8x64xf32> to vector<8x64xbf16>
    %cst_19 = arith.constant dense<0.000000e+00> : vector<4x64xf32>
    %19 = tpu.matmul %17, %18, %cst_19 {dimension_numbers = #tpu.dot_dimension_numbers<[1], [0], [0], [1], [0, 0, 1, 1], [], []>} : vector<4x8xbf16>, vector<8x64xbf16>, vector<4x64xf32> -> vector<4x64xf32>
    %20 = arith.addf %13, %19 : vector<4x64xf32>
    %c0_20 = arith.constant 0 : index
    %c0_21 = arith.constant 0 : index
    %c2 = arith.constant 2 : index
    %21 = vector.load %arg5[%c0_20, %c0_21, %c2] : memref<8x10x10xf32, #tpu.memory_space<vmem>>, vector<8x8x8xf32>
    %22 = vector.shape_cast %21 : vector<8x8x8xf32> to vector<8x64xf32>
    %c2_22 = arith.constant 2 : index
    %c0_23 = arith.constant 0 : index
    %c0_24 = arith.constant 0 : index
    %23 = vector.load %arg2[%c2_22, %c0_23, %c0_24] : memref<9x4x8xbf16, #tpu.memory_space<vmem>>, vector<1x4x8xbf16>
    %24 = vector.shape_cast %23 : vector<1x4x8xbf16> to vector<4x8xbf16>
    %25 = arith.truncf %22 : vector<8x64xf32> to vector<8x64xbf16>
    %cst_25 = arith.constant dense<0.000000e+00> : vector<4x64xf32>
    %26 = tpu.matmul %24, %25, %cst_25 {dimension_numbers = #tpu.dot_dimension_numbers<[1], [0], [0], [1], [0, 0, 1, 1], [], []>} : vector<4x8xbf16>, vector<8x64xbf16>, vector<4x64xf32> -> vector<4x64xf32>
    %27 = arith.addf %20, %26 : vector<4x64xf32>
    %c0_26 = arith.constant 0 : index
    %c1_27 = arith.constant 1 : index
    %c0_28 = arith.constant 0 : index
    %28 = vector.load %arg5[%c0_26, %c1_27, %c0_28] : memref<8x10x10xf32, #tpu.memory_space<vmem>>, vector<8x8x8xf32>
    %29 = vector.shape_cast %28 : vector<8x8x8xf32> to vector<8x64xf32>
    %c3 = arith.constant 3 : index
    %c0_29 = arith.constant 0 : index
    %c0_30 = arith.constant 0 : index
    %30 = vector.load %arg2[%c3, %c0_29, %c0_30] : memref<9x4x8xbf16, #tpu.memory_space<vmem>>, vector<1x4x8xbf16>
    %31 = vector.shape_cast %30 : vector<1x4x8xbf16> to vector<4x8xbf16>
    %32 = arith.truncf %29 : vector<8x64xf32> to vector<8x64xbf16>
    %cst_31 = arith.constant dense<0.000000e+00> : vector<4x64xf32>
    %33 = tpu.matmul %31, %32, %cst_31 {dimension_numbers = #tpu.dot_dimension_numbers<[1], [0], [0], [1], [0, 0, 1, 1], [], []>} : vector<4x8xbf16>, vector<8x64xbf16>, vector<4x64xf32> -> vector<4x64xf32>
    %34 = arith.addf %27, %33 : vector<4x64xf32>
    %c0_32 = arith.constant 0 : index
    %c1_33 = arith.constant 1 : index
    %c1_34 = arith.constant 1 : index
    %35 = vector.load %arg5[%c0_32, %c1_33, %c1_34] : memref<8x10x10xf32, #tpu.memory_space<vmem>>, vector<8x8x8xf32>
    %36 = vector.shape_cast %35 : vector<8x8x8xf32> to vector<8x64xf32>
    %c4 = arith.constant 4 : index
    %c0_35 = arith.constant 0 : index
    %c0_36 = arith.constant 0 : index
    %37 = vector.load %arg2[%c4, %c0_35, %c0_36] : memref<9x4x8xbf16, #tpu.memory_space<vmem>>, vector<1x4x8xbf16>
    %38 = vector.shape_cast %37 : vector<1x4x8xbf16> to vector<4x8xbf16>
    %39 = arith.truncf %36 : vector<8x64xf32> to vector<8x64xbf16>
    %cst_37 = arith.constant dense<0.000000e+00> : vector<4x64xf32>
    %40 = tpu.matmul %38, %39, %cst_37 {dimension_numbers = #tpu.dot_dimension_numbers<[1], [0], [0], [1], [0, 0, 1, 1], [], []>} : vector<4x8xbf16>, vector<8x64xbf16>, vector<4x64xf32> -> vector<4x64xf32>
    %41 = arith.addf %34, %40 : vector<4x64xf32>
    %c0_38 = arith.constant 0 : index
    %c1_39 = arith.constant 1 : index
    %c2_40 = arith.constant 2 : index
    %42 = vector.load %arg5[%c0_38, %c1_39, %c2_40] : memref<8x10x10xf32, #tpu.memory_space<vmem>>, vector<8x8x8xf32>
    %43 = vector.shape_cast %42 : vector<8x8x8xf32> to vector<8x64xf32>
    %c5 = arith.constant 5 : index
    %c0_41 = arith.constant 0 : index
    %c0_42 = arith.constant 0 : index
    %44 = vector.load %arg2[%c5, %c0_41, %c0_42] : memref<9x4x8xbf16, #tpu.memory_space<vmem>>, vector<1x4x8xbf16>
    %45 = vector.shape_cast %44 : vector<1x4x8xbf16> to vector<4x8xbf16>
    %46 = arith.truncf %43 : vector<8x64xf32> to vector<8x64xbf16>
    %cst_43 = arith.constant dense<0.000000e+00> : vector<4x64xf32>
    %47 = tpu.matmul %45, %46, %cst_43 {dimension_numbers = #tpu.dot_dimension_numbers<[1], [0], [0], [1], [0, 0, 1, 1], [], []>} : vector<4x8xbf16>, vector<8x64xbf16>, vector<4x64xf32> -> vector<4x64xf32>
    %48 = arith.addf %41, %47 : vector<4x64xf32>
    %c0_44 = arith.constant 0 : index
    %c2_45 = arith.constant 2 : index
    %c0_46 = arith.constant 0 : index
    %49 = vector.load %arg5[%c0_44, %c2_45, %c0_46] : memref<8x10x10xf32, #tpu.memory_space<vmem>>, vector<8x8x8xf32>
    %50 = vector.shape_cast %49 : vector<8x8x8xf32> to vector<8x64xf32>
    %c6 = arith.constant 6 : index
    %c0_47 = arith.constant 0 : index
    %c0_48 = arith.constant 0 : index
    %51 = vector.load %arg2[%c6, %c0_47, %c0_48] : memref<9x4x8xbf16, #tpu.memory_space<vmem>>, vector<1x4x8xbf16>
    %52 = vector.shape_cast %51 : vector<1x4x8xbf16> to vector<4x8xbf16>
    %53 = arith.truncf %50 : vector<8x64xf32> to vector<8x64xbf16>
    %cst_49 = arith.constant dense<0.000000e+00> : vector<4x64xf32>
    %54 = tpu.matmul %52, %53, %cst_49 {dimension_numbers = #tpu.dot_dimension_numbers<[1], [0], [0], [1], [0, 0, 1, 1], [], []>} : vector<4x8xbf16>, vector<8x64xbf16>, vector<4x64xf32> -> vector<4x64xf32>
    %55 = arith.addf %48, %54 : vector<4x64xf32>
    %c0_50 = arith.constant 0 : index
    %c2_51 = arith.constant 2 : index
    %c1_52 = arith.constant 1 : index
    %56 = vector.load %arg5[%c0_50, %c2_51, %c1_52] : memref<8x10x10xf32, #tpu.memory_space<vmem>>, vector<8x8x8xf32>
    %57 = vector.shape_cast %56 : vector<8x8x8xf32> to vector<8x64xf32>
    %c7 = arith.constant 7 : index
    %c0_53 = arith.constant 0 : index
    %c0_54 = arith.constant 0 : index
    %58 = vector.load %arg2[%c7, %c0_53, %c0_54] : memref<9x4x8xbf16, #tpu.memory_space<vmem>>, vector<1x4x8xbf16>
    %59 = vector.shape_cast %58 : vector<1x4x8xbf16> to vector<4x8xbf16>
    %60 = arith.truncf %57 : vector<8x64xf32> to vector<8x64xbf16>
    %cst_55 = arith.constant dense<0.000000e+00> : vector<4x64xf32>
    %61 = tpu.matmul %59, %60, %cst_55 {dimension_numbers = #tpu.dot_dimension_numbers<[1], [0], [0], [1], [0, 0, 1, 1], [], []>} : vector<4x8xbf16>, vector<8x64xbf16>, vector<4x64xf32> -> vector<4x64xf32>
    %62 = arith.addf %55, %61 : vector<4x64xf32>
    %c0_56 = arith.constant 0 : index
    %c2_57 = arith.constant 2 : index
    %c2_58 = arith.constant 2 : index
    %63 = vector.load %arg5[%c0_56, %c2_57, %c2_58] : memref<8x10x10xf32, #tpu.memory_space<vmem>>, vector<8x8x8xf32>
    %64 = vector.shape_cast %63 : vector<8x8x8xf32> to vector<8x64xf32>
    %c8 = arith.constant 8 : index
    %c0_59 = arith.constant 0 : index
    %c0_60 = arith.constant 0 : index
    %65 = vector.load %arg2[%c8, %c0_59, %c0_60] : memref<9x4x8xbf16, #tpu.memory_space<vmem>>, vector<1x4x8xbf16>
    %66 = vector.shape_cast %65 : vector<1x4x8xbf16> to vector<4x8xbf16>
    %67 = arith.truncf %64 : vector<8x64xf32> to vector<8x64xbf16>
    %cst_61 = arith.constant dense<0.000000e+00> : vector<4x64xf32>
    %68 = tpu.matmul %66, %67, %cst_61 {dimension_numbers = #tpu.dot_dimension_numbers<[1], [0], [0], [1], [0, 0, 1, 1], [], []>} : vector<4x8xbf16>, vector<8x64xbf16>, vector<4x64xf32> -> vector<4x64xf32>
    %69 = arith.addf %62, %68 : vector<4x64xf32>
    %c0_62 = arith.constant 0 : index
    %c0_63 = arith.constant 0 : index
    %70 = vector.load %arg3[%c0_62, %c0_63] : memref<4x1xf32, #tpu.memory_space<vmem>>, vector<4x1xf32>
    %71 = vector.broadcast %70 : vector<4x1xf32> to vector<4x64xf32>
    %72 = arith.addf %69, %71 : vector<4x64xf32>
    %73 = vector.shape_cast %72 : vector<4x64xf32> to vector<1x4x8x8xf32>
    %c0_64 = arith.constant 0 : index
    %c0_65 = arith.constant 0 : index
    %c0_66 = arith.constant 0 : index
    %c0_67 = arith.constant 0 : index
    %74 = vector.load %arg4[%c0_64, %c0_65, %c0_66, %c0_67] : memref<1x4x8x8xf32, #tpu.memory_space<vmem>>, vector<1x4x8x8xf32>
    tpu.vector_store %arg4[%c0_64, %c0_65, %c0_66, %c0_67], %73 {strides = array<i32>} : memref<1x4x8x8xf32, #tpu.memory_space<vmem>>, vector<1x4x8x8xf32>,
    return
  }
  func.func @transform_0(%arg0: i32) -> (i32, i32, i32, i32) {
    %c0_i32 = arith.constant 0 : i32
    %c0_i32_0 = arith.constant 0 : i32
    %c0_i32_1 = arith.constant 0 : i32
    %c0_i32_2 = arith.constant 0 : i32
    return %arg0, %c0_i32, %c0_i32_0, %c0_i32_1 : i32, i32, i32, i32
  }
  func.func @transform_1(%arg0: i32) -> (i32, i32, i32) {
    %c0_i32 = arith.constant 0 : i32
    %c0_i32_0 = arith.constant 0 : i32
    %c0_i32_1 = arith.constant 0 : i32
    %c0_i32_2 = arith.constant 0 : i32
    return %c0_i32, %c0_i32_0, %c0_i32_1 : i32, i32, i32
  }
  func.func @transform_2(%arg0: i32) -> (i32, i32) {
    %c0_i32 = arith.constant 0 : i32
    %c0_i32_0 = arith.constant 0 : i32
    %c0_i32_1 = arith.constant 0 : i32
    return %c0_i32, %c0_i32_0 : i32, i32
  }
  func.func @transform_3(%arg0: i32) -> (i32, i32, i32, i32) {
    %c0_i32 = arith.constant 0 : i32
    %c0_i32_0 = arith.constant 0 : i32
    %c0_i32_1 = arith.constant 0 : i32
    %c0_i32_2 = arith.constant 0 : i32
    return %arg0, %c0_i32, %c0_i32_0, %c0_i32_1 : i32, i32, i32, i32
  }
}

module attributes {stable_mosaic.version = 11 : i64} {
  func.func @_fused_tail_kernel(%arg0: i32, %arg1: i32, %arg2: memref<1x4x8x8xf32, #tpu.memory_space<vmem>>, %arg3: memref<18x8xf32, #tpu.memory_space<vmem>>, %arg4: memref<3x8x16xbf16, #tpu.memory_space<vmem>>, %arg5: memref<9x16x4xbf16, #tpu.memory_space<vmem>>, %arg6: memref<16x1xf32, #tpu.memory_space<vmem>>, %arg7: memref<1x16xbf16, #tpu.memory_space<vmem>>, %arg8: memref<1x1xf32, #tpu.memory_space<vmem>>, %arg9: memref<1x1x256xf32, #tpu.memory_space<vmem>>) attributes {dimension_semantics = [#tpu.dimension_semantics<parallel>, #tpu.dimension_semantics<parallel>], iteration_bounds = array<i64: 2, 1>, scalar_prefetch = 0 : i64, scratch_operands = 0 : i64, tpu.core_type = #tpu.core_type<tc>, window_params = [{transform_indices = @transform_0, window_bounds = array<i64: 1, 4, 8, 8>}, {pipeline_mode = #tpu.pipeline_mode<synchronous>, transform_indices = @transform_1, window_bounds = array<i64: 18, 8>}, {pipeline_mode = #tpu.pipeline_mode<synchronous>, transform_indices = @transform_2, window_bounds = array<i64: 3, 8, 16>}, {pipeline_mode = #tpu.pipeline_mode<synchronous>, transform_indices = @transform_3, window_bounds = array<i64: 9, 16, 4>}, {pipeline_mode = #tpu.pipeline_mode<synchronous>, transform_indices = @transform_4, window_bounds = array<i64: 16, 1>}, {pipeline_mode = #tpu.pipeline_mode<synchronous>, transform_indices = @transform_5, window_bounds = array<i64: 1, 16>}, {pipeline_mode = #tpu.pipeline_mode<synchronous>, transform_indices = @transform_6, window_bounds = array<i64: 1, 1>}, {transform_indices = @transform_7, window_bounds = array<i64: 1, 1, 256>}]} {
    %c16_i32 = arith.constant 16 : i32
    %0 = arith.muli %arg1, %c16_i32 : i32
    %1 = tpu.assume_multiple %0, 16 : i32
    %2 = arith.index_cast %1 : i32 to index
    %c0 = arith.constant 0 : index
    %3 = vector.load %arg3[%2, %c0] : memref<18x8xf32, #tpu.memory_space<vmem>>, vector<18x8xf32>
    %4 = vector.shape_cast %3 : vector<18x8xf32> to vector<1x18x8xf32>
    %5 = vector.shape_cast %4 : vector<1x18x8xf32> to vector<1x18x8xf32>
    %6 = vector.broadcast %5 : vector<1x18x8xf32> to vector<4x18x8xf32>
    %c0_0 = arith.constant 0 : index
    %c0_1 = arith.constant 0 : index
    %c0_2 = arith.constant 0 : index
    %c0_3 = arith.constant 0 : index
    %7 = vector.load %arg2[%c0_0, %c0_1, %c0_2, %c0_3] : memref<1x4x8x8xf32, #tpu.memory_space<vmem>>, vector<1x4x8x8xf32>
    %8 = vector.shape_cast %7 : vector<1x4x8x8xf32> to vector<4x8x8xf32>
    %cst = arith.constant dense<0.000000e+00> : vector<4x18x8xf32>
    %9 = tpu.matmul %6, %8, %cst {dimension_numbers = #tpu.dot_dimension_numbers<[2], [1], [1], [2], [0, 0, 0, 1, 1, 2], [0], [0]>} : vector<4x18x8xf32>, vector<4x8x8xf32>, vector<4x18x8xf32> -> vector<4x18x8xf32>
    %10 = vector.shape_cast %9 : vector<4x18x8xf32> to vector<72x8xf32>
    %11 = arith.truncf %10 : vector<72x8xf32> to vector<72x8xbf16>
    %cst_4 = arith.constant 0.000000e+00 : f32
    %12 = vector.broadcast %cst_4 : f32 to vector<16x256xf32>
    %c0_5 = arith.constant 0 : index
    %c0_6 = arith.constant 0 : index
    %c0_7 = arith.constant 0 : index
    %13 = vector.load %arg4[%c0_5, %c0_6, %c0_7] : memref<3x8x16xbf16, #tpu.memory_space<vmem>>, vector<1x8x16xbf16>
    %14 = vector.shape_cast %13 : vector<1x8x16xbf16> to vector<8x16xbf16>
    %cst_8 = arith.constant dense<0.000000e+00> : vector<72x16xf32>
    %15 = tpu.matmul %11, %14, %cst_8 {dimension_numbers = #tpu.dot_dimension_numbers<[1], [0], [0], [1], [0, 0, 1, 1], [], []>} : vector<72x8xbf16>, vector<8x16xbf16>, vector<72x16xf32> -> vector<72x16xf32>
    %16 = vector.shape_cast %15 : vector<72x16xf32> to vector<4x18x16xf32>
    %17 = arith.truncf %16 : vector<4x18x16xf32> to vector<4x18x16xbf16>
    %18 = vector.extract_strided_slice %17 {offsets = [0, 0, 0], sizes = [4, 16, 16], strides = [1, 1, 1]} : vector<4x18x16xbf16> to vector<4x16x16xbf16>
    %19 = vector.shape_cast %18 : vector<4x16x16xbf16> to vector<4x256xbf16>
    %c0_9 = arith.constant 0 : index
    %c0_10 = arith.constant 0 : index
    %c0_11 = arith.constant 0 : index
    %20 = vector.load %arg5[%c0_9, %c0_10, %c0_11] : memref<9x16x4xbf16, #tpu.memory_space<vmem>>, vector<1x16x4xbf16>
    %21 = vector.shape_cast %20 : vector<1x16x4xbf16> to vector<16x4xbf16>
    %cst_12 = arith.constant dense<0.000000e+00> : vector<16x256xf32>
    %22 = tpu.matmul %21, %19, %cst_12 {dimension_numbers = #tpu.dot_dimension_numbers<[1], [0], [0], [1], [0, 0, 1, 1], [], []>} : vector<16x4xbf16>, vector<4x256xbf16>, vector<16x256xf32> -> vector<16x256xf32>
    %23 = arith.addf %12, %22 : vector<16x256xf32>
    %24 = vector.extract_strided_slice %17 {offsets = [0, 1, 0], sizes = [4, 16, 16], strides = [1, 1, 1]} : vector<4x18x16xbf16> to vector<4x16x16xbf16>
    %25 = vector.shape_cast %24 : vector<4x16x16xbf16> to vector<4x256xbf16>
    %c3 = arith.constant 3 : index
    %c0_13 = arith.constant 0 : index
    %c0_14 = arith.constant 0 : index
    %26 = vector.load %arg5[%c3, %c0_13, %c0_14] : memref<9x16x4xbf16, #tpu.memory_space<vmem>>, vector<1x16x4xbf16>
    %27 = vector.shape_cast %26 : vector<1x16x4xbf16> to vector<16x4xbf16>
    %cst_15 = arith.constant dense<0.000000e+00> : vector<16x256xf32>
    %28 = tpu.matmul %27, %25, %cst_15 {dimension_numbers = #tpu.dot_dimension_numbers<[1], [0], [0], [1], [0, 0, 1, 1], [], []>} : vector<16x4xbf16>, vector<4x256xbf16>, vector<16x256xf32> -> vector<16x256xf32>
    %29 = arith.addf %23, %28 : vector<16x256xf32>
    %30 = vector.extract_strided_slice %17 {offsets = [0, 2, 0], sizes = [4, 16, 16], strides = [1, 1, 1]} : vector<4x18x16xbf16> to vector<4x16x16xbf16>
    %31 = vector.shape_cast %30 : vector<4x16x16xbf16> to vector<4x256xbf16>
    %c6 = arith.constant 6 : index
    %c0_16 = arith.constant 0 : index
    %c0_17 = arith.constant 0 : index
    %32 = vector.load %arg5[%c6, %c0_16, %c0_17] : memref<9x16x4xbf16, #tpu.memory_space<vmem>>, vector<1x16x4xbf16>
    %33 = vector.shape_cast %32 : vector<1x16x4xbf16> to vector<16x4xbf16>
    %cst_18 = arith.constant dense<0.000000e+00> : vector<16x256xf32>
    %34 = tpu.matmul %33, %31, %cst_18 {dimension_numbers = #tpu.dot_dimension_numbers<[1], [0], [0], [1], [0, 0, 1, 1], [], []>} : vector<16x4xbf16>, vector<4x256xbf16>, vector<16x256xf32> -> vector<16x256xf32>
    %35 = arith.addf %29, %34 : vector<16x256xf32>
    %c1 = arith.constant 1 : index
    %c0_19 = arith.constant 0 : index
    %c0_20 = arith.constant 0 : index
    %36 = vector.load %arg4[%c1, %c0_19, %c0_20] : memref<3x8x16xbf16, #tpu.memory_space<vmem>>, vector<1x8x16xbf16>
    %37 = vector.shape_cast %36 : vector<1x8x16xbf16> to vector<8x16xbf16>
    %cst_21 = arith.constant dense<0.000000e+00> : vector<72x16xf32>
    %38 = tpu.matmul %11, %37, %cst_21 {dimension_numbers = #tpu.dot_dimension_numbers<[1], [0], [0], [1], [0, 0, 1, 1], [], []>} : vector<72x8xbf16>, vector<8x16xbf16>, vector<72x16xf32> -> vector<72x16xf32>
    %39 = vector.shape_cast %38 : vector<72x16xf32> to vector<4x18x16xf32>
    %40 = arith.truncf %39 : vector<4x18x16xf32> to vector<4x18x16xbf16>
    %41 = vector.extract_strided_slice %40 {offsets = [0, 0, 0], sizes = [4, 16, 16], strides = [1, 1, 1]} : vector<4x18x16xbf16> to vector<4x16x16xbf16>
    %42 = vector.shape_cast %41 : vector<4x16x16xbf16> to vector<4x256xbf16>
    %c1_22 = arith.constant 1 : index
    %c0_23 = arith.constant 0 : index
    %c0_24 = arith.constant 0 : index
    %43 = vector.load %arg5[%c1_22, %c0_23, %c0_24] : memref<9x16x4xbf16, #tpu.memory_space<vmem>>, vector<1x16x4xbf16>
    %44 = vector.shape_cast %43 : vector<1x16x4xbf16> to vector<16x4xbf16>
    %cst_25 = arith.constant dense<0.000000e+00> : vector<16x256xf32>
    %45 = tpu.matmul %44, %42, %cst_25 {dimension_numbers = #tpu.dot_dimension_numbers<[1], [0], [0], [1], [0, 0, 1, 1], [], []>} : vector<16x4xbf16>, vector<4x256xbf16>, vector<16x256xf32> -> vector<16x256xf32>
    %46 = arith.addf %35, %45 : vector<16x256xf32>
    %47 = vector.extract_strided_slice %40 {offsets = [0, 1, 0], sizes = [4, 16, 16], strides = [1, 1, 1]} : vector<4x18x16xbf16> to vector<4x16x16xbf16>
    %48 = vector.shape_cast %47 : vector<4x16x16xbf16> to vector<4x256xbf16>
    %c4 = arith.constant 4 : index
    %c0_26 = arith.constant 0 : index
    %c0_27 = arith.constant 0 : index
    %49 = vector.load %arg5[%c4, %c0_26, %c0_27] : memref<9x16x4xbf16, #tpu.memory_space<vmem>>, vector<1x16x4xbf16>
    %50 = vector.shape_cast %49 : vector<1x16x4xbf16> to vector<16x4xbf16>
    %cst_28 = arith.constant dense<0.000000e+00> : vector<16x256xf32>
    %51 = tpu.matmul %50, %48, %cst_28 {dimension_numbers = #tpu.dot_dimension_numbers<[1], [0], [0], [1], [0, 0, 1, 1], [], []>} : vector<16x4xbf16>, vector<4x256xbf16>, vector<16x256xf32> -> vector<16x256xf32>
    %52 = arith.addf %46, %51 : vector<16x256xf32>
    %53 = vector.extract_strided_slice %40 {offsets = [0, 2, 0], sizes = [4, 16, 16], strides = [1, 1, 1]} : vector<4x18x16xbf16> to vector<4x16x16xbf16>
    %54 = vector.shape_cast %53 : vector<4x16x16xbf16> to vector<4x256xbf16>
    %c7 = arith.constant 7 : index
    %c0_29 = arith.constant 0 : index
    %c0_30 = arith.constant 0 : index
    %55 = vector.load %arg5[%c7, %c0_29, %c0_30] : memref<9x16x4xbf16, #tpu.memory_space<vmem>>, vector<1x16x4xbf16>
    %56 = vector.shape_cast %55 : vector<1x16x4xbf16> to vector<16x4xbf16>
    %cst_31 = arith.constant dense<0.000000e+00> : vector<16x256xf32>
    %57 = tpu.matmul %56, %54, %cst_31 {dimension_numbers = #tpu.dot_dimension_numbers<[1], [0], [0], [1], [0, 0, 1, 1], [], []>} : vector<16x4xbf16>, vector<4x256xbf16>, vector<16x256xf32> -> vector<16x256xf32>
    %58 = arith.addf %52, %57 : vector<16x256xf32>
    %c2 = arith.constant 2 : index
    %c0_32 = arith.constant 0 : index
    %c0_33 = arith.constant 0 : index
    %59 = vector.load %arg4[%c2, %c0_32, %c0_33] : memref<3x8x16xbf16, #tpu.memory_space<vmem>>, vector<1x8x16xbf16>
    %60 = vector.shape_cast %59 : vector<1x8x16xbf16> to vector<8x16xbf16>
    %cst_34 = arith.constant dense<0.000000e+00> : vector<72x16xf32>
    %61 = tpu.matmul %11, %60, %cst_34 {dimension_numbers = #tpu.dot_dimension_numbers<[1], [0], [0], [1], [0, 0, 1, 1], [], []>} : vector<72x8xbf16>, vector<8x16xbf16>, vector<72x16xf32> -> vector<72x16xf32>
    %62 = vector.shape_cast %61 : vector<72x16xf32> to vector<4x18x16xf32>
    %63 = arith.truncf %62 : vector<4x18x16xf32> to vector<4x18x16xbf16>
    %64 = vector.extract_strided_slice %63 {offsets = [0, 0, 0], sizes = [4, 16, 16], strides = [1, 1, 1]} : vector<4x18x16xbf16> to vector<4x16x16xbf16>
    %65 = vector.shape_cast %64 : vector<4x16x16xbf16> to vector<4x256xbf16>
    %c2_35 = arith.constant 2 : index
    %c0_36 = arith.constant 0 : index
    %c0_37 = arith.constant 0 : index
    %66 = vector.load %arg5[%c2_35, %c0_36, %c0_37] : memref<9x16x4xbf16, #tpu.memory_space<vmem>>, vector<1x16x4xbf16>
    %67 = vector.shape_cast %66 : vector<1x16x4xbf16> to vector<16x4xbf16>
    %cst_38 = arith.constant dense<0.000000e+00> : vector<16x256xf32>
    %68 = tpu.matmul %67, %65, %cst_38 {dimension_numbers = #tpu.dot_dimension_numbers<[1], [0], [0], [1], [0, 0, 1, 1], [], []>} : vector<16x4xbf16>, vector<4x256xbf16>, vector<16x256xf32> -> vector<16x256xf32>
    %69 = arith.addf %58, %68 : vector<16x256xf32>
    %70 = vector.extract_strided_slice %63 {offsets = [0, 1, 0], sizes = [4, 16, 16], strides = [1, 1, 1]} : vector<4x18x16xbf16> to vector<4x16x16xbf16>
    %71 = vector.shape_cast %70 : vector<4x16x16xbf16> to vector<4x256xbf16>
    %c5 = arith.constant 5 : index
    %c0_39 = arith.constant 0 : index
    %c0_40 = arith.constant 0 : index
    %72 = vector.load %arg5[%c5, %c0_39, %c0_40] : memref<9x16x4xbf16, #tpu.memory_space<vmem>>, vector<1x16x4xbf16>
    %73 = vector.shape_cast %72 : vector<1x16x4xbf16> to vector<16x4xbf16>
    %cst_41 = arith.constant dense<0.000000e+00> : vector<16x256xf32>
    %74 = tpu.matmul %73, %71, %cst_41 {dimension_numbers = #tpu.dot_dimension_numbers<[1], [0], [0], [1], [0, 0, 1, 1], [], []>} : vector<16x4xbf16>, vector<4x256xbf16>, vector<16x256xf32> -> vector<16x256xf32>
    %75 = arith.addf %69, %74 : vector<16x256xf32>
    %76 = vector.extract_strided_slice %63 {offsets = [0, 2, 0], sizes = [4, 16, 16], strides = [1, 1, 1]} : vector<4x18x16xbf16> to vector<4x16x16xbf16>
    %77 = vector.shape_cast %76 : vector<4x16x16xbf16> to vector<4x256xbf16>
    %c8 = arith.constant 8 : index
    %c0_42 = arith.constant 0 : index
    %c0_43 = arith.constant 0 : index
    %78 = vector.load %arg5[%c8, %c0_42, %c0_43] : memref<9x16x4xbf16, #tpu.memory_space<vmem>>, vector<1x16x4xbf16>
    %79 = vector.shape_cast %78 : vector<1x16x4xbf16> to vector<16x4xbf16>
    %cst_44 = arith.constant dense<0.000000e+00> : vector<16x256xf32>
    %80 = tpu.matmul %79, %77, %cst_44 {dimension_numbers = #tpu.dot_dimension_numbers<[1], [0], [0], [1], [0, 0, 1, 1], [], []>} : vector<16x4xbf16>, vector<4x256xbf16>, vector<16x256xf32> -> vector<16x256xf32>
    %81 = arith.addf %75, %80 : vector<16x256xf32>
    %c0_45 = arith.constant 0 : index
    %c0_46 = arith.constant 0 : index
    %82 = vector.load %arg6[%c0_45, %c0_46] : memref<16x1xf32, #tpu.memory_space<vmem>>, vector<16x1xf32>
    %83 = vector.broadcast %82 : vector<16x1xf32> to vector<16x256xf32>
    %84 = arith.addf %81, %83 : vector<16x256xf32>
    %cst_47 = arith.constant 0.000000e+00 : f32
    %85 = vector.broadcast %cst_47 : f32 to vector<16x256xf32>
    %86 = arith.maximumf %84, %85 : vector<16x256xf32>
    %c0_48 = arith.constant 0 : index
    %c0_49 = arith.constant 0 : index
    %87 = vector.load %arg7[%c0_48, %c0_49] : memref<1x16xbf16, #tpu.memory_space<vmem>>, vector<1x16xbf16>
    %88 = arith.truncf %86 : vector<16x256xf32> to vector<16x256xbf16>
    %cst_50 = arith.constant dense<0.000000e+00> : vector<1x256xf32>
    %89 = tpu.matmul %87, %88, %cst_50 {dimension_numbers = #tpu.dot_dimension_numbers<[1], [0], [0], [1], [0, 0, 1, 1], [], []>} : vector<1x16xbf16>, vector<16x256xbf16>, vector<1x256xf32> -> vector<1x256xf32>
    %c0_51 = arith.constant 0 : index
    %c0_52 = arith.constant 0 : index
    %90 = vector.load %arg8[%c0_51, %c0_52] : memref<1x1xf32, #tpu.memory_space<vmem>>, vector<1x1xf32>
    %91 = vector.broadcast %90 : vector<1x1xf32> to vector<1x256xf32>
    %92 = arith.addf %89, %91 : vector<1x256xf32>
    %93 = arith.negf %92 : vector<1x256xf32>
    %94 = math.exp %93 : vector<1x256xf32>
    %cst_53 = arith.constant 1.000000e+00 : f32
    %95 = vector.broadcast %cst_53 : f32 to vector<1x256xf32>
    %96 = arith.addf %95, %94 : vector<1x256xf32>
    %97 = arith.divf %95, %96 : vector<1x256xf32>
    %98 = vector.shape_cast %97 : vector<1x256xf32> to vector<1x1x256xf32>
    %c0_54 = arith.constant 0 : index
    %c0_55 = arith.constant 0 : index
    %c0_56 = arith.constant 0 : index
    %99 = vector.load %arg9[%c0_54, %c0_55, %c0_56] : memref<1x1x256xf32, #tpu.memory_space<vmem>>, vector<1x1x256xf32>
    tpu.vector_store %arg9[%c0_54, %c0_55, %c0_56], %98 {strides = array<i32>} : memref<1x1x256xf32, #tpu.memory_space<vmem>>, vector<1x1x256xf32>,
    return
  }
  func.func @transform_0(%arg0: i32, %arg1: i32) -> (i32, i32, i32, i32) {
    %c0_i32 = arith.constant 0 : i32
    %c0_i32_0 = arith.constant 0 : i32
    %c0_i32_1 = arith.constant 0 : i32
    %c0_i32_2 = arith.constant 0 : i32
    return %arg0, %c0_i32, %c0_i32_0, %c0_i32_1 : i32, i32, i32, i32
  }
  func.func @transform_1(%arg0: i32, %arg1: i32) -> (i32, i32) {
    %c0_i32 = arith.constant 0 : i32
    %c0_i32_0 = arith.constant 0 : i32
    %c0_i32_1 = arith.constant 0 : i32
    return %c0_i32, %c0_i32_0 : i32, i32
  }
  func.func @transform_2(%arg0: i32, %arg1: i32) -> (i32, i32, i32) {
    %c0_i32 = arith.constant 0 : i32
    %c0_i32_0 = arith.constant 0 : i32
    %c0_i32_1 = arith.constant 0 : i32
    %c0_i32_2 = arith.constant 0 : i32
    return %c0_i32, %c0_i32_0, %c0_i32_1 : i32, i32, i32
  }
  func.func @transform_3(%arg0: i32, %arg1: i32) -> (i32, i32, i32) {
    %c0_i32 = arith.constant 0 : i32
    %c0_i32_0 = arith.constant 0 : i32
    %c0_i32_1 = arith.constant 0 : i32
    %c0_i32_2 = arith.constant 0 : i32
    return %c0_i32, %c0_i32_0, %c0_i32_1 : i32, i32, i32
  }
  func.func @transform_4(%arg0: i32, %arg1: i32) -> (i32, i32) {
    %c0_i32 = arith.constant 0 : i32
    %c0_i32_0 = arith.constant 0 : i32
    %c0_i32_1 = arith.constant 0 : i32
    return %c0_i32, %c0_i32_0 : i32, i32
  }
  func.func @transform_5(%arg0: i32, %arg1: i32) -> (i32, i32) {
    %c0_i32 = arith.constant 0 : i32
    %c0_i32_0 = arith.constant 0 : i32
    %c0_i32_1 = arith.constant 0 : i32
    return %c0_i32, %c0_i32_0 : i32, i32
  }
  func.func @transform_6(%arg0: i32, %arg1: i32) -> (i32, i32) {
    %c0_i32 = arith.constant 0 : i32
    %c0_i32_0 = arith.constant 0 : i32
    %c0_i32_1 = arith.constant 0 : i32
    return %c0_i32, %c0_i32_0 : i32, i32
  }
  func.func @transform_7(%arg0: i32, %arg1: i32) -> (i32, i32, i32) {
    %c1_i32 = arith.constant 1 : i32
    %0 = arith.muli %arg0, %c1_i32 : i32
    %1 = arith.addi %0, %arg1 : i32
    %c0_i32 = arith.constant 0 : i32
    %c0_i32_0 = arith.constant 0 : i32
    %c0_i32_1 = arith.constant 0 : i32
    return %1, %c0_i32, %c0_i32_0 : i32, i32, i32
  }
}

</mosaic_0001>

<bundles_post_ra>
// kernel: depth_head_forward.2
= control target key start
LH: loop header
LB: loop body
LE: loop exit
PB: predicated region body
PF: predicated region fallthrough
CT: control target
= control target key end

     0   :  { %s2970_s12 = smov 0   ;;  %s3867_s0 = inlined_call_operand.vmem [shape: f32[2,8,8,8], index: 0, kind: input, shape index: {}]   ;;  %s3868_s1 = inlined_call_operand.vmem [shape: bf16[9,4,8], index: 1, kind: input, shape index: {}]   ;;  %s3869_s2 = inlined_call_operand.vmem [shape: f32[4,1], index: 2, kind: input, shape index: {}]   ;;  %s3870_s3 = inlined_call_operand.vmem [shape: f32[2,4,8,8], index: 3, kind: output, shape index: {}]  }
   0x1 LB: > { %s2649_s13 = sadd.s32 4294967295, %s2925_s12   ;;  %p2653_p0 = scmp.ge.s32.totalorder %s2925_s12, 1  ;;  %s2925_s12 = sphi %s2970_s12, %s13_s12  }
   0x2   : > { %p137_p1 = scmp.lt.s32.totalorder %s2925_s12, 3 }
   0x4   : > { %p138_p2 = pnand %p2653_p0, %p137_p1 }
   0x5   : > { %p161_p3 = scmp.lt.s32.totalorder (!%p138_p2), %s2649_s13, 1  ;;  %p2658_p4 = scmp.ne.s32.totalorder (!%p138_p2), %s2649_s13, 0 }
   0x6   : > { %141 = sbr.rel (%p138_p2) target bundleno = 858 (0x35a), region = 32 }
   0xd   : > { %s162_s14 = scalar_select %p161_p3, %s2649_s13, 1 }
   0xe   : > { %175 = sbr.rel (%p2658_p4) target bundleno = 23 (0x17), region = 36  ;;  %vm176_vm0 = vcmask (!%p2658_p4), 80896   ;;  %vm178_vm1 = vcmask (!%p2658_p4), 74752   ;;  %v2927_v0 = vmov (!%p2658_p4), 0.0  }
   0xf   : > { %s2678_s15 = sshll.u32 %s162_s14, 6  ;;  %s2679_s16 = sshll.u32 %s162_s14, 5  ;;  %177 = vst.msk [vmem:[#allocation2] sm:$0xff] (!%p2658_p4), %vm176_vm0, %v2927_v0  ;;  %180 = vst.msk [vmem:[#allocation2 + $0x10] sm:$0xff] (!%p2658_p4), %vm176_vm0, %v2927_v0 }
  0x10   : > { %s2981_s19 = scalar_lea.vmem %s3867_s0, %s2678_s15  ;;  %s2986_s22 = scalar_lea.vmem %s3870_s3, %s2679_s16  ;;  %182 = vst.msk [vmem:[#allocation2 + $0x20] sm:$0xff] (!%p2658_p4), %vm176_vm0, %v2927_v0  ;;  %184 = vst.msk [vmem:[#allocation2 + $0x30] sm:$0xff] (!%p2658_p4), %vm176_vm0, %v2927_v0 }
  0x11   : > { %186 = vst.msk [vmem:[#allocation2 + $0x40] sm:$0xff] (!%p2658_p4), %vm176_vm0, %v2927_v0  ;;  %188 = vst.msk [vmem:[#allocation2 + $0x50] sm:$0xff] (!%p2658_p4), %vm176_vm0, %v2927_v0 }
  0x12   : > { %190 = vst.msk [vmem:[#allocation2 + $0x60] sm:$0xff] (!%p2658_p4), %vm176_vm0, %v2927_v0  ;;  %192 = vst.msk [vmem:[#allocation2 + $0x70] sm:$0xff] (!%p2658_p4), %vm176_vm0, %v2927_v0 }
  0x13   : > { %179 = vst.msk [vmem:[#allocation2 + $0x8] sm:$0x3] (!%p2658_p4), %vm178_vm1, %v2927_v0  ;;  %181 = vst.msk [vmem:[#allocation2 + $0x18] sm:$0x3] (!%p2658_p4), %vm178_vm1, %v2927_v0 }
  0x14   : > { %183 = vst.msk [vmem:[#allocation2 + $0x28] sm:$0x3] (!%p2658_p4), %vm178_vm1, %v2927_v0  ;;  %185 = vst.msk [vmem:[#allocation2 + $0x38] sm:$0x3] (!%p2658_p4), %vm178_vm1, %v2927_v0 }
  0x15   : > { %187 = vst.msk [vmem:[#allocation2 + $0x48] sm:$0x3] %vm178_vm1, %v2927_v0  ;;  %189 = vst.msk [vmem:[#allocation2 + $0x58] sm:$0x3] %vm178_vm1, %v2927_v0 }
  0x16   : > { %191 = vst.msk [vmem:[#allocation2 + $0x68] sm:$0x3] %vm178_vm1, %v2927_v0  ;;  %193 = vst.msk [vmem:[#allocation2 + $0x78] sm:$0x3] %vm178_vm1, %v2927_v0 }
  0x17 PF: > { %v196_v1 = vld [vmem:[%s2981_s19 + $0x10] sm:$0xff]  ;;  %v194_v2 = vld [vmem:[%s2981_s19] sm:$0xff]  ;;  %s2928_s23 = smov 1   ;;  %v197_v3 = vld [vmem:[%s2981_s19 + $0x18] sm:$0xff]  ;;  %vm234_vm2 = vcmask 72712   ;;  %v256_v13 = vlaneseq  ;;  %s2931_s24 = smov 127  }
  0x18   : > { %214 = vrot.lane.b32.xlu1 %v196_v1, %s2928_s23  ;;  %210 = vrot.lane.b32.xlu0 %v194_v2, %s2928_s23  ;;  %v195_v4 = vld [vmem:[%s2981_s19 + $0x8] sm:$0xff]  ;;  %v198_v6 = vld [vmem:[%s2981_s19 + $0x20] sm:$0xff]  ;;  %v2929_v11 = vmov 1983009808   ;;  %v2930_v18 = vmov 1934713408  }
  0x19   : > { %v199_v5 = vld [vmem:[%s2981_s19 + $0x28] sm:$0xff]  ;;  %v201_v7 = vld [vmem:[%s2981_s19 + $0x38] sm:$0xff]  ;;  %v200_v8 = vld [vmem:[%s2981_s19 + $0x30] sm:$0xff]  ;;  %v254_v12 = vunpack.c.l.s4 %v2929_v11  ;;  %v257_v17 = vshrl.u32 %v256_v13, 7  ;;  %v318_v19 = vunpack.c.l.s4 %v2930_v18  ;;  %s2932_s25 = smov 126   ;;  %s2933_s26 = smov 56  }
  0x1a   : > { %s2934_s27 = smov 16   ;;  %s2935_s28 = smov 8   ;;  %vm2941_vm3 = vmmov 0   ;;  %vm415_vm4 = vcmask 64512   ;;  %vm417_vm5 = vcmask 130048   ;;  %vm419_vm6 = vcmask 195584  }
  0x1b   : > { %v255_v16 = vunpack.c.0.s8 %v254_v12  ;;  %v319_v26 = vunpack.c.0.s8 %v318_v19  ;;  %s2936_s29 = smov 32   ;;  %s2937_s30 = smov 24   ;;  %vm421_vm7 = vcmask 261120   ;;  %vm423_vm8 = vcmask 326656  }
  0x1c   : > { %216 = vrot.lane.b32.xlu1 %v197_v3, %s2928_s23  ;;  %212 = vrot.lane.b32.xlu0 %v195_v4, %s2928_s23  ;;  %s2938_s4 = smov 48   ;;  %s2939_s5 = smov 40   ;;  %vm425_vm9 = vcmask 392192   ;;  %vm427_vm10 = vcmask 457728   ;;  %vm640_vm11 = vcmask 1043456  }
  0x1d   : > { %v3012_v24 = vsub.s32 %v255_v16, %v257_v17  ;;  %v3043_v41 = vsub.s32 %v319_v26, %v257_v17  ;;  %s2948_s6 = smov 96   ;;  %s2949_s7 = smov 80  }
  0x20   : > { %220 = vrot.lane.b32.xlu1 %v199_v5, %s2928_s23  ;;  %218 = vrot.lane.b32.xlu0 %v198_v6, %s2928_s23 }
  0x24   : > { %224 = vrot.lane.b32.xlu1 %v201_v7, %s2928_s23  ;;  %222 = vrot.lane.b32.xlu0 %v200_v8, %s2928_s23 }
  0x8a   : > { %v215_v9 = vpop.permute.xlu1 %214  ;;  %v211_v10 = vpop.permute.xlu0 %210 }
  0x8b   : > { %237 = vst.msk [vmem:[#allocation2 + $0x21] sm:$0xff] %vm234_vm2, %v215_v9  ;;  %235 = vst.msk [vmem:[#allocation2 + $0x1] sm:$0xff] %vm234_vm2, %v211_v10 }
  0x8e   : > { %v217_v14 = vpop.permute.xlu1 %216  ;;  %v213_v15 = vpop.permute.xlu0 %212 }
  0x8f   : > { %238 = vst.msk [vmem:[#allocation2 + $0x31] sm:$0xff] %vm234_vm2, %v217_v14  ;;  %236 = vst.msk [vmem:[#allocation2 + $0x11] sm:$0xff] %vm234_vm2, %v213_v15 }
  0x92   : > { %v221_v20 = vpop.permute.xlu1 %220  ;;  %v219_v21 = vpop.permute.xlu0 %218  ;;  %v3008_v22 = vld [vmem:[#allocation2] sm:$0xff] }
  0x93   : > { %v3010_v23 = vld [vmem:[#allocation2 + $0x20] sm:$0xff]  ;;  %240 = vst.msk [vmem:[#allocation2 + $0x51] sm:$0xff] %vm234_vm2, %v221_v20  ;;  %239 = vst.msk [vmem:[#allocation2 + $0x41] sm:$0xff] %vm234_vm2, %v219_v21  ;;  %439 = vrot.lane.b32.xlu0 %v3008_v22, %s2931_s24 }
  0x94   : > { %v3014_v25 = vld [vmem:[#allocation2 + $0x1] sm:$0xff]  ;;  %v251_v27 = vcombine.low %v3008_v22, %v3010_v23  ;;  %v252_v28 = vcombine.high %v3008_v22, %v3010_v23 }
  0x95   : > { %v3024_v29 = vld [vmem:[#allocation2 + $0x21] sm:$0xff] }
  0x96   : > { %v3026_v30 = vld [vmem:[#allocation2 + $0x2] sm:$0xff]  ;;  %v999_v33 = vcombine.low %v3014_v25, %v3024_v29  ;;  %v1000_v34 = vcombine.high %v3014_v25, %v3024_v29  ;;  %v225_v35 = vpop.permute.xlu1 %224  ;;  %v223_v36 = vpop.permute.xlu0 %222  ;;  %v259_v37 = vrot.slane %v251_v27, %v3012_v24  ;;  %v3037_v38 = vld [vmem:[#allocation2 + $0x10] sm:$0xff]  ;;  %v266_v42 = vrot.slane %v252_v28, %v3012_v24 }
  0x97   : > { %v3028_v31 = vld [vmem:[#allocation2 + $0x22] sm:$0xff]  ;;  %v3039_v39 = vld [vmem:[#allocation2 + $0x30] sm:$0xff]  ;;  %242 = vst.msk [vmem:[#allocation2 + $0x71] sm:$0xff] %vm234_vm2, %v225_v35  ;;  %241 = vst.msk [vmem:[#allocation2 + $0x61] sm:$0xff] %vm234_vm2, %v223_v36  ;;  %443 = vrot.lane.b32.xlu0 %v3010_v23, %s2931_s24  ;;  %441 = vrot.lane.b32.xlu1 %v3037_v38, %s2931_s24 }
  0x98   : > { %v1751_v32 = vcombine.high %v3026_v30, %v3028_v31  ;;  %v3041_v40 = vld [vmem:[#allocation2 + $0x11] sm:$0xff]  ;;  %v267_v43 = vcombine.low %v3037_v38, %v3039_v39  ;;  %v268_v44 = vcombine.high %v3037_v38, %v3039_v39  ;;  %v3074_v54 = vrot.slane %v999_v33, %v3012_v24 }
  0x99   : > { %v3056_v45 = vld [vmem:[#allocation2 + $0x31] sm:$0xff]  ;;  %v3087_v59 = vrot.slane %v1000_v34, %v3012_v24  ;;  %v1750_v11 = vcombine.low %v3026_v30, %v3028_v31 }
  0x9a   : > { %v3058_v46 = vld [vmem:[#allocation2 + $0x12] sm:$0xff]  ;;  %v3063_v48 = vrot.slane %v1751_v32, %v3012_v24  ;;  %v1015_v50 = vcombine.low %v3041_v40, %v3056_v45  ;;  %v1016_v51 = vcombine.high %v3041_v40, %v3056_v45  ;;  %v275_v52 = vrot.slane %v267_v43, %v3012_v24  ;;  %v3078_v56 = vld [vmem:[#allocation2 + $0x40] sm:$0xff] }
  0x9b   : > { %v3060_v47 = vld [vmem:[#allocation2 + $0x32] sm:$0xff]  ;;  %v282_v53 = vrot.slane %v268_v44, %v3012_v24  ;;  %445 = vrot.lane.b32.xlu1 %v3039_v39, %s2931_s24  ;;  %447 = vrot.lane.b32.xlu0 %v3078_v56, %s2931_s24  ;;  %v3098_v2 = vld [vmem:[#allocation2 + $0x41] sm:$0xff] }
  0x9c   : > { %v1767_v49 = vcombine.high %v3058_v46, %v3060_v47  ;;  %v1766_v55 = vcombine.low %v3058_v46, %v3060_v47  ;;  %v3084_v58 = vrot.slane %v1015_v50, %v3012_v24  ;;  %v3090_v60 = vrot.slane %v1016_v51, %v3012_v24  ;;  %v3096_v1 = vld [vmem:[#allocation2 + $0x50] sm:$0xff]  ;;  %v3108_v7 = vld [vmem:[#allocation2 + $0x42] sm:$0xff] }
  0x9d   : > { %v315_v61 = vcombine.low %v259_v37, %v275_v52  ;;  %v316_v62 = vcombine.high %v259_v37, %v275_v52  ;;  %v331_v63 = vcombine.low %v266_v42, %v282_v53  ;;  %v332_v0 = vcombine.high %v266_v42, %v282_v53  ;;  %v3106_v6 = vld [vmem:[#allocation2 + $0x51] sm:$0xff] }
  0x9e   : > { %v3081_v57 = vrot.slane %v1767_v49, %v3012_v24  ;;  %v1064_v3 = vcombine.high %v3074_v54, %v3084_v58  ;;  %v1063_v4 = vcombine.low %v3074_v54, %v3084_v58  ;;  %v1079_v5 = vcombine.low %v3087_v59, %v3090_v60  ;;  %v3110_v8 = vld [vmem:[#allocation2 + $0x52] sm:$0xff]  ;;  %v3122_v13 = vld [vmem:[#allocation2 + $0x60] sm:$0xff] }
  0x9f   : > { %v3115_v10 = vrot.slane %v316_v62, %v3043_v41  ;;  %v3120_v12 = vrot.slane %v1766_v55, %v3012_v24  ;;  %v3124_v14 = vld [vmem:[#allocation2 + $0x70] sm:$0xff]  ;;  %v3126_v15 = vld [vmem:[#allocation2 + $0x61] sm:$0xff]  ;;  %v3129_v16 = vrot.slane %v315_v61, %v3043_v41  ;;  %v3132_v17 = vrot.slane %v331_v63, %v3043_v41  ;;  %449 = vrot.lane.b32.xlu1 %v3096_v1, %s2931_s24 }
  0xa0   : > { %v1831_v9 = vcombine.high %v3063_v48, %v3081_v57  ;;  %v3135_v18 = vrot.slane %v332_v0, %v3043_v41  ;;  %v3138_v19 = vrot.slane %v1064_v3, %v3043_v41  ;;  %v283_v20 = vcombine.low %v3078_v56, %v3122_v13  ;;  %v3150_v28 = vld [vmem:[#allocation2 + $0x71] sm:$0xff]  ;;  %v3152_v32 = vld [vmem:[#allocation2 + $0x62] sm:$0xff]  ;;  %451 = vrot.lane.b32.xlu0 %v3122_v13, %s2931_s24 }
  0xa1   : > { %v284_v21 = vcombine.high %v3078_v56, %v3122_v13  ;;  %v299_v26 = vcombine.low %v3096_v1, %v3124_v14  ;;  %v300_v27 = vcombine.high %v3096_v1, %v3124_v14  ;;  %v3154_v33 = vld [vmem:[#allocation2 + $0x72] sm:$0xff]  ;;  %v1783_v34 = vcombine.high %v3108_v7, %v3152_v32 }
  0xa2   : > { %v1799_v35 = vcombine.high %v3110_v8, %v3154_v33  ;;  %v1031_v36 = vcombine.low %v3098_v2, %v3126_v15  ;;  %v1047_v37 = vcombine.low %v3106_v6, %v3150_v28  ;;  %v291_v42 = vrot.slane %v283_v20, %v3012_v24 }
  0xa3   : > { %v298_v43 = vrot.slane %v284_v21, %v3012_v24  ;;  %v307_v44 = vrot.slane %v299_v26, %v3012_v24  ;;  %v314_v49 = vrot.slane %v300_v27, %v3012_v24  ;;  %v1797_v50 = vrot.slane %v1783_v34, %v3012_v24  ;;  %453 = vrot.lane.b32.xlu1 %v3124_v14, %s2931_s24 }
  0xa4   : > { %v1813_v51 = vrot.slane %v1799_v35, %v3012_v24  ;;  %v1039_v52 = vrot.slane %v1031_v36, %v3012_v24  ;;  %v1055_v53 = vrot.slane %v1047_v37, %v3012_v24  ;;  %746 = vrot.lane.b32.xlu0 %v3008_v22, %s2932_s25  ;;  %v1032_v3 = vcombine.high %v3098_v2, %v3126_v15 }
  0xa5   : > { %v347_v54 = vcombine.low %v291_v42, %v307_v44  ;;  %v348_v55 = vcombine.high %v291_v42, %v307_v44  ;;  %v363_v58 = vcombine.low %v298_v43, %v314_v49  ;;  %v364_v61 = vcombine.high %v298_v43, %v314_v49 }
  0xa6   : > { %v1863_v62 = vcombine.high %v1797_v50, %v1813_v51  ;;  %v1096_v63 = vcombine.high %v1039_v52, %v1055_v53  ;;  %v1095_v0 = vcombine.low %v1039_v52, %v1055_v53  ;;  %v3199_v35 = vrot.slane %v1063_v4, %v3043_v41 }
  0xa7   : > { %v3181_v20 = vrot.slane %v348_v55, %v3043_v41  ;;  %v3184_v21 = vrot.slane %v347_v54, %v3043_v41  ;;  %v3187_v26 = vrot.slane %v363_v58, %v3043_v41  ;;  %v3190_v27 = vrot.slane %v364_v61, %v3043_v41  ;;  %748 = vrot.lane.b32.xlu1 %v3037_v38, %s2932_s25 }
  0xa8   : > { %v3193_v22 = vrot.slane %v1863_v62, %v3043_v41  ;;  %v3196_v34 = vrot.slane %v1096_v63, %v3043_v41  ;;  %v3202_v36 = vrot.slane %v1095_v0, %v3043_v41  ;;  %750 = vrot.lane.b32.xlu0 %v3010_v23, %s2932_s25  ;;  %v1046_v52 = vrot.slane %v1032_v3, %v3012_v24 }
  0xa9   : > { %v381_v37 = vcombine.low %v3115_v10, %v3181_v20  ;;  %v380_v43 = vcombine.high %v3129_v16, %v3184_v21  ;;  %v383_v44 = vcombine.low %v3132_v17, %v3187_v26  ;;  %v382_v4 = vcombine.high %v3115_v10, %v3181_v20 }
  0xaa   : > { %v385_v38 = vcombine.low %v3135_v18, %v3190_v27  ;;  %v1048_v58 = vcombine.high %v3106_v6, %v3150_v28  ;;  %v1080_v62 = vcombine.high %v3087_v59, %v3090_v60  ;;  %v1782_v63 = vcombine.low %v3108_v7, %v3152_v32 }
  0xab   : > { %752 = vrot.lane.b32.xlu1 %v3039_v39, %s2932_s25  ;;  %v3245_v0 = vrot.slane %v1750_v11, %v3012_v24  ;;  %v1798_v3 = vcombine.low %v3110_v8, %v3154_v33  ;;  %v1830_v23 = vcombine.low %v3063_v48, %v3081_v57  ;;  %v3257_v39 = vrot.slane %v1831_v9, %v3043_v41 }
  0xac   : > { %754 = vrot.lane.b32.xlu0 %v3078_v56, %s2932_s25  ;;  %v1062_v42 = vrot.slane %v1048_v58, %v3012_v24  ;;  %v3261_v11 = vrot.slane %v1782_v63, %v3012_v24  ;;  %v1862_v61 = vcombine.low %v1797_v50, %v1813_v51  ;;  %v3282_v9 = vrot.slane %v1079_v5, %v3043_v41 }
  0xad   : > { %v3264_v55 = vrot.slane %v1798_v3, %v3012_v24  ;;  %v1814_v54 = vcombine.low %v3245_v0, %v3120_v12  ;;  %v3269_v56 = vrot.slane %v1830_v23, %v3043_v41  ;;  %v3285_v50 = vrot.slane %v1080_v62, %v3043_v41 }
  0xae   : > { %v1111_v53 = vcombine.low %v1046_v52, %v1062_v42  ;;  %v1112_v49 = vcombine.high %v1046_v52, %v1062_v42  ;;  %v3272_v48 = vrot.slane %v1862_v61, %v3043_v41 }
  0xaf   : > { %756 = vrot.lane.b32.xlu1 %v3096_v1, %s2932_s25  ;;  %v1846_v51 = vcombine.low %v3261_v11, %v3264_v55  ;;  %v3302_v5 = vrot.slane %v1814_v54, %v3043_v41 }
  0xb0   : > { %758 = vrot.lane.b32.xlu0 %v3122_v13, %s2932_s25  ;;  %v3292_v42 = vrot.slane %v1111_v53, %v3043_v41  ;;  %v3295_v1 = vrot.slane %v1112_v49, %v3043_v41 }
  0xb1   : > { %v3305_v52 = vrot.slane %v1846_v51, %v3043_v41 }
  0xb2   : > { %v1131_v13 = vcombine.low %v3282_v9, %v3292_v42  ;;  %v1133_v53 = vcombine.low %v3285_v50, %v3295_v1  ;;  %v1132_v49 = vcombine.high %v3282_v9, %v3292_v42  ;;  %v1134_v23 = vcombine.high %v3285_v50, %v3295_v1 }
  0xb3   : > { %760 = vrot.lane.b32.xlu1 %v3124_v14, %s2932_s25 }
  0xb4   : > { %1236 = vrot.lane.b32.xlu0 %v3014_v25, %s2931_s24 }
  0xb7   : > { %1238 = vrot.lane.b32.xlu1 %v3041_v40, %s2931_s24 }
  0xb8   : > { %1240 = vrot.lane.b32.xlu0 %v3024_v29, %s2931_s24 }
  0xbb   : > { %1242 = vrot.lane.b32.xlu1 %v3056_v45, %s2931_s24 }
  0xbc   : > { %1244 = vrot.lane.b32.xlu0 %v3098_v2, %s2931_s24 }
  0xbf   : > { %1246 = vrot.lane.b32.xlu1 %v3106_v6, %s2931_s24 }
  0xc0   : > { %1248 = vrot.lane.b32.xlu0 %v3126_v15, %s2931_s24 }
  0xc3   : > { %1250 = vrot.lane.b32.xlu1 %v3150_v28, %s2931_s24 }
  0xc4   : > { %1497 = vrot.lane.b32.xlu0 %v3014_v25, %s2932_s25  ;;  %v1885_v25 = vcombine.high %v3257_v39, %v3193_v22 }
  0xc7   : > { %1499 = vrot.lane.b32.xlu1 %v3041_v40, %s2932_s25 }
  0xc8   : > { %1501 = vrot.lane.b32.xlu0 %v3024_v29, %s2932_s25 }
  0xcb   : > { %1503 = vrot.lane.b32.xlu1 %v3056_v45, %s2932_s25 }
  0xcc   : > { %1505 = vrot.lane.b32.xlu0 %v3098_v2, %s2932_s25 }
  0xcf   : > { %1507 = vrot.lane.b32.xlu1 %v3106_v6, %s2932_s25 }
  0xd0   : > { %1509 = vrot.lane.b32.xlu0 %v3126_v15, %s2932_s25 }
  0xd3   : > { %1511 = vrot.lane.b32.xlu1 %v3150_v28, %s2932_s25 }
  0xd4   : > { %1987 = vrot.lane.b32.xlu0 %v3026_v30, %s2931_s24 }
  0xd7   : > { %1989 = vrot.lane.b32.xlu1 %v3058_v46, %s2931_s24 }
  0xd8   : > { %1991 = vrot.lane.b32.xlu0 %v3028_v31, %s2931_s24 }
  0xdb   : > { %1993 = vrot.lane.b32.xlu1 %v3060_v47, %s2931_s24 }
  0xdc   : > { %1995 = vrot.lane.b32.xlu0 %v3108_v7, %s2931_s24 }
  0xdf   : > { %1997 = vrot.lane.b32.xlu1 %v3110_v8, %s2931_s24 }
  0xe0   : > { %1999 = vrot.lane.b32.xlu0 %v3152_v32, %s2931_s24 }
  0xe3   : > { %2001 = vrot.lane.b32.xlu1 %v3154_v33, %s2931_s24 }
  0xe4   : > { %2248 = vrot.lane.b32.xlu0 %v3026_v30, %s2932_s25 }
  0xe7   : > { %2250 = vrot.lane.b32.xlu1 %v3058_v46, %s2932_s25 }
  0xe8   : > { %2252 = vrot.lane.b32.xlu0 %v3028_v31, %s2932_s25 }
  0xeb   : > { %2254 = vrot.lane.b32.xlu1 %v3060_v47, %s2932_s25 }
  0xec   : > { %2256 = vrot.lane.b32.xlu0 %v3108_v7, %s2932_s25 }
  0xef   : > { %2258 = vrot.lane.b32.xlu1 %v3110_v8, %s2932_s25 }
  0xf0   : > { %2260 = vrot.lane.b32.xlu0 %v3152_v32, %s2932_s25 }
  0xf3   : > { %2262 = vrot.lane.b32.xlu1 %v3154_v33, %s2932_s25 }
  0xf7   : > { %1911 = vrot.lane.b32.xlu1 %v1885_v25, %s2933_s26 }
 0x105   : > { %v440_v29 = vpop.permute.xlu0 %439 }
 0x109   : > { %v442_v30 = vpop.permute.xlu1 %441  ;;  %v444_v31 = vpop.permute.xlu0 %443 }
 0x10a   : > { %v463_v47 = vcombine.low %v440_v29, %v444_v31  ;;  %v464_v8 = vcombine.high %v440_v29, %v444_v31 }
 0x10c   : > { %v471_v32 = vrot.slane %v463_v47, %v3012_v24  ;;  %v478_v3 = vrot.slane %v464_v8, %v3012_v24 }
 0x10d   : > { %v446_v40 = vpop.permute.xlu1 %445  ;;  %v448_v45 = vpop.permute.xlu0 %447 }
 0x10e   : > { %v479_v46 = vcombine.low %v442_v30, %v446_v40  ;;  %v480_v6 = vcombine.high %v442_v30, %v446_v40 }
 0x110   : > { %v487_v14 = vrot.slane %v479_v46, %v3012_v24  ;;  %v494_v58 = vrot.slane %v480_v6, %v3012_v24 }
 0x111   : > { %v450_v2 = vpop.permute.xlu1 %449 }
 0x112   : > { %v452_v7 = vpop.permute.xlu0 %451  ;;  %v527_v51 = vcombine.low %v471_v32, %v487_v14  ;;  %v528_v25 = vcombine.high %v471_v32, %v487_v14  ;;  %v543_v46 = vcombine.low %v478_v3, %v494_v58 }
 0x113   : > { %v495_v15 = vcombine.low %v448_v45, %v452_v7  ;;  %v496_v28 = vcombine.high %v448_v45, %v452_v7 }
 0x114   : > { %v542_v14 = vrot.slane %v528_v25, %v3043_v41  ;;  %v551_v54 = vrot.slane %v543_v46, %v3043_v41 }
 0x115   : > { %v454_v33 = vpop.permute.xlu1 %453  ;;  %v503_v30 = vrot.slane %v495_v15, %v3012_v24  ;;  %v510_v29 = vrot.slane %v496_v28, %v3012_v24 }
 0x116   : > { %v511_v61 = vcombine.low %v450_v2, %v454_v33  ;;  %v512_v62 = vcombine.high %v450_v2, %v454_v33  ;;  %v3389_v63 = vpop.permute.xlu0 %746  ;;  %v3397_v33 = vrot.slane %v527_v51, %v3043_v41 }
 0x118   : > { %v519_v31 = vrot.slane %v511_v61, %v3012_v24  ;;  %v526_v40 = vrot.slane %v512_v62, %v3012_v24  ;;  %v544_v61 = vcombine.high %v478_v3, %v494_v58 }
 0x119   : > { %v749_v45 = vpop.permute.xlu1 %748 }
 0x11a   : > { %v559_v47 = vcombine.low %v503_v30, %v519_v31  ;;  %v560_v6 = vcombine.high %v503_v30, %v519_v31  ;;  %v575_v7 = vcombine.low %v510_v29, %v526_v40  ;;  %v751_v2 = vpop.permute.xlu0 %750  ;;  %v576_v8 = vcombine.high %v510_v29, %v526_v40 }
 0x11b   : > { %v558_v3 = vrot.slane %v544_v61, %v3043_v41  ;;  %v770_v46 = vcombine.low %v3389_v63, %v751_v2 }
 0x11c   : > { %v3401_v15 = vrot.slane %v559_v47, %v3043_v41  ;;  %v574_v28 = vrot.slane %v560_v6, %v3043_v41  ;;  %v583_v32 = vrot.slane %v575_v7, %v3043_v41  ;;  %v3409_v29 = vrot.slane %v576_v8, %v3043_v41 }
 0x11d   : > { %v753_v62 = vpop.permute.xlu1 %752 }
 0x11e   : > { %v755_v31 = vpop.permute.xlu0 %754  ;;  %v593_v51 = vcombine.low %v542_v14, %v574_v28  ;;  %v786_v25 = vcombine.low %v749_v45, %v753_v62  ;;  %v592_v40 = vcombine.high %v3397_v33, %v3401_v15  ;;  %v595_v58 = vcombine.low %v551_v54, %v583_v32 }
 0x11f   : > { %v594_v8 = vcombine.high %v542_v14, %v574_v28  ;;  %v787_v60 = vcombine.high %v749_v45, %v753_v62  ;;  %v778_v14 = vrot.slane %v770_v46, %v3012_v24  ;;  %v596_v62 = vcombine.high %v551_v54, %v583_v32 }
 0x120   : > { %v2788_v47 = vpack.i.bf16 %v381_v37, %v593_v51  ;;  %v2783_v7 = vpack.i.bf16 %v380_v43, %v592_v40  ;;  %v794_v57 = vrot.slane %v786_v25, %v3012_v24  ;;  %v597_v37 = vcombine.low %v558_v3, %v3409_v29 }
 0x121   : > { %v757_v6 = vpop.permute.xlu1 %756  ;;  %v2798_v59 = vpack.i.bf16 %v383_v44, %v595_v58  ;;  %v771_v43 = vcombine.high %v3389_v63, %v751_v2  ;;  %v2793_v45 = vpack.i.bf16 %v382_v4, %v594_v8  ;;  %v598_v32 = vcombine.high %v558_v3, %v3409_v29 }
 0x122   : > { %v759_v30 = vpop.permute.xlu0 %758  ;;  %2789 = vrot.lane.b32.xlu1 %v2788_v47, %s2934_s27  ;;  %2784 = vrot.lane.b32.xlu0 %v2783_v7, %s2935_s28  ;;  %v834_v44 = vcombine.low %v778_v14, %v794_v57  ;;  %v2808_v10 = vpack.i.bf16 %v385_v38, %v597_v37  ;;  %v2940_v8 = vmov 0.0  }
 0x123   : > { %v802_v61 = vcombine.low %v755_v31, %v759_v30  ;;  %v803_v51 = vcombine.high %v755_v31, %v759_v30  ;;  %v801_v30 = vrot.slane %v787_v60, %v3012_v24  ;;  %v835_v31 = vcombine.high %v778_v14, %v794_v57  ;;  %2698 = vmatprep.subr.bf16.mxu0 %v2940_v8 }
 0x124   : > { %v3871_v57 = vcombine.high %v3132_v17, %v3187_v26  ;;  %v3458_v17 = vrot.slane %v834_v44, %v3043_v41  ;;  %2704 = vmatprep.subr.bf16.mxu1 %v2940_v8  ;;  %2700 = vmatprep.mubr.msk.bf16.mxu0 %vm2941_vm3, %v2940_v8 }
 0x125   : > { %v761_v28 = vpop.permute.xlu1 %760  ;;  %v810_v20 = vrot.slane %v802_v61, %v3012_v24  ;;  %v817_v4 = vrot.slane %v803_v51, %v3012_v24  ;;  %v849_v26 = vrot.slane %v835_v31, %v3043_v41  ;;  %2706 = vmatprep.mubr.msk.bf16.mxu1 %vm2941_vm3, %v2940_v8 }
 0x126   : > { %v818_v25 = vcombine.low %v757_v6, %v761_v28  ;;  %v819_v40 = vcombine.high %v757_v6, %v761_v28  ;;  %v3433_v47 = vpop.permute.xlu0 %1236  ;;  %2799 = vrot.lane.b32.xlu1 %v2798_v59, %s2936_s29  ;;  %2794 = vrot.lane.b32.xlu0 %v2793_v45, %s2937_s30  ;;  %v785_v59 = vrot.slane %v771_v43, %v3012_v24 }
 0x127   : > { %v2803_v2 = vpack.i.bf16 %v3871_v57, %v596_v62  ;;  %v3872_v43 = vcombine.high %v3135_v18, %v3190_v27  ;;  %v3873_v18 = vcombine.low %v3138_v19, %v3196_v34 }
 0x128   : > { %v826_v54 = vrot.slane %v818_v25, %v3012_v24  ;;  %v833_v63 = vrot.slane %v819_v40, %v3012_v24  ;;  %v850_v7 = vcombine.low %v785_v59, %v801_v30  ;;  %v851_v25 = vcombine.high %v785_v59, %v801_v30 }
 0x129   : > { %v3446_v60 = vpop.permute.xlu1 %1238  ;;  %v2813_v14 = vpack.i.bf16 %v3872_v43, %v598_v32  ;;  %v3874_v30 = vcombine.high %v3199_v35, %v3202_v36 }
 0x12a   : > { %v866_v58 = vcombine.low %v810_v20, %v826_v54  ;;  %v867_v38 = vcombine.high %v810_v20, %v826_v54  ;;  %v882_v46 = vcombine.low %v817_v4, %v833_v63  ;;  %v3452_v6 = vpop.permute.xlu0 %1240  ;;  %2809 = vrot.lane.b32.xlu1 %v2808_v10, %s2938_s4  ;;  %2804 = vrot.lane.b32.xlu0 %v2803_v2, %s2939_s5 }
 0x12b   : > { %v883_v37 = vcombine.high %v817_v4, %v833_v63  ;;  %v858_v40 = vrot.slane %v850_v7, %v3043_v41  ;;  %v1260_v59 = vcombine.low %v3433_v47, %v3452_v6  ;;  %v865_v2 = vrot.slane %v851_v25, %v3043_v41 }
 0x12c   : > { %v3462_v29 = vrot.slane %v866_v58, %v3043_v41  ;;  %v881_v3 = vrot.slane %v867_v38, %v3043_v41  ;;  %v890_v61 = vrot.slane %v882_v46, %v3043_v41  ;;  %v3875_v7 = vcombine.high %v3138_v19, %v3196_v34 }
 0x12d   : > { %v3467_v51 = vpop.permute.xlu1 %1242  ;;  %v897_v10 = vrot.slane %v883_v37, %v3043_v41  ;;  %v3509_v43 = vrot.slane %v1260_v59, %v3012_v24 }
 0x12e   : > { %v898_v28 = vcombine.low %v3458_v17, %v3462_v29  ;;  %v3474_v45 = vpop.permute.xlu0 %1244  ;;  %v900_v62 = vcombine.low %v849_v26, %v881_v3  ;;  %2814 = vrot.lane.b32.xlu0 %v2813_v14, %s2933_s26  ;;  %v899_v44 = vcombine.high %v3458_v17, %v3462_v29  ;;  %v1276_v31 = vcombine.low %v3446_v60, %v3467_v51 }
 0x12f   : > { %v902_v54 = vcombine.low %v858_v40, %v890_v61  ;;  %v901_v63 = vcombine.high %v849_v26, %v881_v3  ;;  %v904_v3 = vcombine.low %v865_v2, %v897_v10  ;;  %v903_v37 = vcombine.high %v858_v40, %v890_v61 }
 0x130   : > { %v2823_v27 = vpack.i.bf16 %v3873_v18, %v900_v62  ;;  %v2818_v4 = vpack.i.bf16 %v3874_v30, %v899_v44  ;;  %v3495_v32 = vrot.slane %v1276_v31, %v3012_v24  ;;  %v905_v44 = vcombine.high %v865_v2, %v897_v10 }
 0x131   : > { %v1247_v20 = vpop.permute.xlu1 %1246  ;;  %v2833_v46 = vpack.i.bf16 %v1131_v13, %v902_v54  ;;  %v2828_v26 = vpack.i.bf16 %v3875_v7, %v901_v63  ;;  %v2843_v25 = vpack.i.bf16 %v1133_v53, %v904_v3  ;;  %v2838_v40 = vpack.i.bf16 %v1132_v49, %v903_v37 }
 0x132   : > { %v1249_v57 = vpop.permute.xlu0 %1248  ;;  %2824 = vrot.lane.b32.xlu0 %v2823_v27, %s2934_s27  ;;  %2819 = vrot.lane.b32.xlu1 %v2818_v4, %s2935_s28  ;;  %v1324_v13 = vcombine.low %v3509_v43, %v3495_v32  ;;  %v2848_v53 = vpack.i.bf16 %v1134_v23, %v905_v44  ;;  %v1261_v10 = vcombine.high %v3433_v47, %v3452_v6 }
 0x133   : > { %v1292_v58 = vcombine.low %v3474_v45, %v1249_v57  ;;  %v1277_v54 = vcombine.high %v3446_v60, %v3467_v51  ;;  %v1293_v50 = vcombine.high %v3474_v45, %v1249_v57 }
 0x134   : > { %v3526_v27 = vrot.slane %v1324_v13, %v3043_v41  ;;  %v1275_v7 = vrot.slane %v1261_v10, %v3012_v24 }
 0x135   : > { %v1251_v38 = vpop.permute.xlu1 %1250  ;;  %v1300_v19 = vrot.slane %v1292_v58, %v3012_v24  ;;  %v1291_v37 = vrot.slane %v1277_v54, %v3012_v24 }
 0x136   : > { %v1308_v14 = vcombine.low %v1247_v20, %v1251_v38  ;;  %v1498_v62 = vpop.permute.xlu0 %1497  ;;  %2834 = vrot.lane.b32.xlu0 %v2833_v46, %s2936_s29  ;;  %2829 = vrot.lane.b32.xlu1 %v2828_v26, %s2937_s30  ;;  %v1309_v63 = vcombine.high %v1247_v20, %v1251_v38  ;;  %v1325_v20 = vcombine.high %v3509_v43, %v3495_v32 }
 0x137   : > { %v1340_v43 = vcombine.low %v1275_v7, %v1291_v37 }
 0x138   : > { %v1316_v34 = vrot.slane %v1308_v14, %v3012_v24  ;;  %v1323_v47 = vrot.slane %v1309_v63, %v3012_v24  ;;  %v1339_v54 = vrot.slane %v1325_v20, %v3043_v41 }
 0x139   : > { %v1500_v61 = vpop.permute.xlu1 %1499 }
 0x13a   : > { %v1356_v31 = vcombine.low %v1300_v19, %v1316_v34  ;;  %v1502_v18 = vpop.permute.xlu0 %1501  ;;  %2844 = vrot.lane.b32.xlu0 %v2843_v25, %s2938_s4  ;;  %2839 = vrot.lane.b32.xlu1 %v2838_v40, %s2939_s5  ;;  %v1357_v6 = vcombine.high %v1300_v19, %v1316_v34 }
 0x13b   : > { %v1521_v59 = vcombine.low %v1498_v62, %v1502_v18  ;;  %v1522_v1 = vcombine.high %v1498_v62, %v1502_v18  ;;  %v1307_v62 = vrot.slane %v1293_v50, %v3012_v24 }
 0x13c   : > { %v3529_v30 = vrot.slane %v1356_v31, %v3043_v41  ;;  %v1371_v44 = vrot.slane %v1357_v6, %v3043_v41 }
 0x13d   : > { %v1504_v4 = vpop.permute.xlu1 %1503  ;;  %v1529_v60 = vrot.slane %v1521_v59, %v3012_v24  ;;  %v1536_v13 = vrot.slane %v1522_v1, %v3012_v24  ;;  %v1372_v31 = vcombine.low %v1307_v62, %v1323_v47  ;;  %v1373_v63 = vcombine.high %v1307_v62, %v1323_v47 }
 0x13e   : > { %v1388_v9 = vcombine.low %v3526_v27, %v3529_v30  ;;  %v1506_v42 = vpop.permute.xlu0 %1505  ;;  %v1537_v49 = vcombine.low %v1500_v61, %v1504_v4  ;;  %2849 = vrot.lane.b32.xlu1 %v2848_v53, %s2933_s26  ;;  %v1538_v58 = vcombine.high %v1500_v61, %v1504_v4  ;;  %v1390_v20 = vcombine.low %v1339_v54, %v1371_v44 }
 0x140   : > { %v1545_v23 = vrot.slane %v1537_v49, %v3012_v24  ;;  %v1552_v45 = vrot.slane %v1538_v58, %v3012_v24 }
 0x141   : > { %v1508_v2 = vpop.permute.xlu1 %1507 }
 0x142   : > { %v1510_v46 = vpop.permute.xlu0 %1509  ;;  %v1585_v61 = vcombine.low %v1529_v60, %v1545_v23  ;;  %v1586_v25 = vcombine.high %v1529_v60, %v1545_v23  ;;  %v1601_v4 = vcombine.low %v1536_v13, %v1552_v45  ;;  %v1341_v23 = vcombine.high %v1275_v7, %v1291_v37 }
 0x143   : > { %v1553_v26 = vcombine.low %v1506_v42, %v1510_v46  ;;  %v1554_v3 = vcombine.high %v1506_v42, %v1510_v46  ;;  %v1348_v37 = vrot.slane %v1340_v43, %v3043_v41  ;;  %v1815_v43 = vcombine.high %v3245_v0, %v3120_v12 }
 0x144   : > { %v3563_v59 = vrot.slane %v1585_v61, %v3043_v41  ;;  %v1600_v58 = vrot.slane %v1586_v25, %v3043_v41  ;;  %v1609_v47 = vrot.slane %v1601_v4, %v3043_v41  ;;  %v1389_v61 = vcombine.high %v3526_v27, %v3529_v30 }
 0x145   : > { %v1512_v51 = vpop.permute.xlu1 %1511  ;;  %v1561_v19 = vrot.slane %v1553_v26, %v3012_v24  ;;  %v1568_v34 = vrot.slane %v1554_v3, %v3012_v24  ;;  %v1380_v26 = vrot.slane %v1372_v31, %v3043_v41  ;;  %v1602_v3 = vcombine.high %v1536_v13, %v1552_v45 }
 0x146   : > { %v1569_v57 = vcombine.low %v1508_v2, %v1512_v51  ;;  %v1570_v38 = vcombine.high %v1508_v2, %v1512_v51  ;;  %v3550_v14 = vpop.permute.xlu0 %1987  ;;  %v3584_v45 = vrot.slane %v1373_v63, %v3043_v41  ;;  %v1355_v4 = vrot.slane %v1341_v23, %v3043_v41 }
 0x148   : > { %v1577_v40 = vrot.slane %v1569_v57, %v3012_v24  ;;  %v1584_v32 = vrot.slane %v1570_v38, %v3012_v24 }
 0x149   : > { %v1990_v18 = vpop.permute.xlu1 %1989 }
 0x14a   : > { %v1617_v53 = vcombine.low %v1561_v19, %v1577_v40  ;;  %v1618_v42 = vcombine.high %v1561_v19, %v1577_v40  ;;  %v1633_v49 = vcombine.low %v1568_v34, %v1584_v32  ;;  %v3559_v10 = vpop.permute.xlu0 %1991  ;;  %v1634_v2 = vcombine.high %v1568_v34, %v1584_v32 }
 0x14b   : > { %v1616_v19 = vrot.slane %v1602_v3, %v3043_v41  ;;  %v2011_v34 = vcombine.low %v3550_v14, %v3559_v10  ;;  %v2012_v23 = vcombine.high %v3550_v14, %v3559_v10 }
 0x14c   : > { %v3567_v46 = vrot.slane %v1617_v53, %v3043_v41  ;;  %v1632_v50 = vrot.slane %v1618_v42, %v3043_v41  ;;  %v1641_v1 = vrot.slane %v1633_v49, %v3043_v41  ;;  %v3576_v38 = vrot.slane %v1634_v2, %v3043_v41 }
 0x14d   : > { %v1994_v6 = vpop.permute.xlu1 %1993  ;;  %v1392_v42 = vcombine.low %v1348_v37, %v1380_v26  ;;  %v1391_v2 = vcombine.high %v1339_v54, %v1371_v44  ;;  %v1393_v44 = vcombine.high %v1348_v37, %v1380_v26  ;;  %v1847_v54 = vcombine.high %v3261_v11, %v3264_v55 }
 0x14e   : > { %v1649_v60 = vcombine.low %v3563_v59, %v3567_v46  ;;  %v1996_v51 = vpop.permute.xlu0 %1995  ;;  %v1651_v57 = vcombine.low %v1600_v58, %v1632_v50  ;;  %v2027_v62 = vcombine.low %v1990_v18, %v1994_v6  ;;  %v1650_v7 = vcombine.high %v3563_v59, %v3567_v46 }
 0x14f   : > { %v1653_v25 = vcombine.low %v1609_v47, %v1641_v1  ;;  %v1652_v31 = vcombine.high %v1600_v58, %v1632_v50  ;;  %v2028_v49 = vcombine.high %v1990_v18, %v1994_v6  ;;  %v1655_v3 = vcombine.low %v1616_v19, %v3576_v38 }
 0x150   : > { %v2858_v13 = vpack.i.bf16 %v1651_v57, %v1390_v20  ;;  %v2853_v32 = vpack.i.bf16 %v1650_v7, %v1389_v61  ;;  %v2035_v63 = vrot.slane %v2027_v62, %v3012_v24  ;;  %v1394_v50 = vcombine.low %v1355_v4, %v3584_v45 }
 0x151   : > { %v1998_v40 = vpop.permute.xlu1 %1997  ;;  %v2868_v58 = vpack.i.bf16 %v1653_v25, %v1392_v42  ;;  %v2019_v61 = vrot.slane %v2011_v34, %v3012_v24  ;;  %v2863_v12 = vpack.i.bf16 %v1652_v31, %v1391_v2  ;;  %v1654_v0 = vcombine.high %v1609_v47, %v1641_v1 }
 0x152   : > { %v2000_v53 = vpop.permute.xlu0 %1999  ;;  %2859 = vrot.lane.b32.xlu1 %v2858_v13, %s2934_s27  ;;  %2854 = vrot.lane.b32.xlu0 %v2853_v32, %s2935_s28  ;;  %v2878_v14 = vpack.i.bf16 %v1655_v3, %v1394_v50  ;;  %v2026_v26 = vrot.slane %v2012_v23, %v3012_v24  ;;  %v1656_v55 = vcombine.high %v1616_v19, %v3576_v38 }
 0x153   : > { %v2043_v20 = vcombine.low %v1996_v51, %v2000_v53  ;;  %v2044_v57 = vcombine.high %v1996_v51, %v2000_v53  ;;  %v2042_v51 = vrot.slane %v2028_v49, %v3012_v24  ;;  %v2075_v13 = vcombine.low %v2019_v61, %v2035_v63 }
 0x154   : > { %v2076_v25 = vcombine.high %v2019_v61, %v2035_v63  ;;  %v1861_v42 = vrot.slane %v1847_v54, %v3043_v41  ;;  %v1395_v63 = vcombine.high %v1355_v4, %v3584_v45  ;;  %v1829_v2 = vrot.slane %v1815_v43, %v3043_v41 }
 0x155   : > { %v2002_v7 = vpop.permute.xlu1 %2001  ;;  %v2051_v10 = vrot.slane %v2043_v20, %v3012_v24  ;;  %v2058_v1 = vrot.slane %v2044_v57, %v3012_v24  ;;  %v2091_v49 = vcombine.low %v2026_v26, %v2042_v51  ;;  %v3619_v3 = vrot.slane %v2075_v13, %v3043_v41 }
 0x156   : > { %v2059_v18 = vcombine.low %v1998_v40, %v2002_v7  ;;  %v2060_v6 = vcombine.high %v1998_v40, %v2002_v7  ;;  %v3600_v62 = vpop.permute.xlu0 %2248  ;;  %2869 = vrot.lane.b32.xlu1 %v2868_v58, %s2936_s29  ;;  %2864 = vrot.lane.b32.xlu0 %v2863_v12, %s2937_s30  ;;  %v2873_v40 = vpack.i.bf16 %v1654_v0, %v1393_v44 }
 0x157   : > { %v2090_v38 = vrot.slane %v2076_v25, %v3043_v41  ;;  %v2883_v23 = vpack.i.bf16 %v1656_v55, %v1395_v63  ;;  %v1880_v43 = vcombine.low %v1829_v2, %v1861_v42  ;;  %v1879_v7 = vcombine.high %v3302_v5, %v3305_v52 }
 0x158   : > { %v2067_v47 = vrot.slane %v2059_v18, %v3012_v24  ;;  %v2074_v34 = vrot.slane %v2060_v6, %v3012_v24  ;;  %v2092_v12 = vcombine.high %v2026_v26, %v2042_v51  ;;  %v2099_v0 = vrot.slane %v2091_v49, %v3043_v41 }
 0x159   : > { %v2251_v37 = vpop.permute.xlu1 %2250  ;;  %v3876_v63 = vcombine.low %v3269_v56, %v3272_v48 }
 0x15a   : > { %v2107_v11 = vcombine.low %v2051_v10, %v2067_v47  ;;  %v2108_v32 = vcombine.high %v2051_v10, %v2067_v47  ;;  %v2123_v31 = vcombine.low %v2058_v1, %v2074_v34  ;;  %v2253_v53 = vpop.permute.xlu0 %2252  ;;  %2879 = vrot.lane.b32.xlu1 %v2878_v14, %s2938_s4  ;;  %2874 = vrot.lane.b32.xlu0 %v2873_v40, %s2939_s5 }
 0x15b   : > { %v2124_v57 = vcombine.high %v2058_v1, %v2074_v34  ;;  %v2272_v44 = vcombine.low %v3600_v62, %v2253_v53  ;;  %v1881_v34 = vcombine.high %v1829_v2, %v1861_v42  ;;  %v2106_v51 = vrot.slane %v2092_v12, %v3043_v41 }
 0x15c   : > { %v3623_v19 = vrot.slane %v2107_v11, %v3043_v41  ;;  %v2122_v20 = vrot.slane %v2108_v32, %v3043_v41  ;;  %v2131_v58 = vrot.slane %v2123_v31, %v3043_v41  ;;  %v2273_v55 = vcombine.high %v3600_v62, %v2253_v53 }
 0x15d   : > { %v2255_v50 = vpop.permute.xlu1 %2254  ;;  %v2138_v13 = vrot.slane %v2124_v57, %v3043_v41  ;;  %v2280_v11 = vrot.slane %v2272_v44, %v3012_v24 }
 0x15e   : > { %v2139_v45 = vcombine.low %v3619_v3, %v3623_v19  ;;  %v2257_v4 = vpop.permute.xlu0 %2256  ;;  %v2141_v61 = vcombine.low %v2090_v38, %v2122_v20  ;;  %v2288_v18 = vcombine.low %v2251_v37, %v2255_v50  ;;  %2884 = vrot.lane.b32.xlu0 %v2883_v23, %s2933_s26  ;;  %v2140_v6 = vcombine.high %v3619_v3, %v3623_v19 }
 0x15f   : > { %v2143_v10 = vcombine.low %v2099_v0, %v2131_v58  ;;  %v2142_v1 = vcombine.high %v2090_v38, %v2122_v20  ;;  %v2289_v26 = vcombine.high %v2251_v37, %v2255_v50  ;;  %v2145_v38 = vcombine.low %v2106_v51, %v2138_v13 }
 0x160   : > { %v2893_v54 = vpack.i.bf16 %v2141_v61, %v1880_v43  ;;  %v2888_v14 = vpack.i.bf16 %v2140_v6, %v1879_v7  ;;  %v2296_v40 = vrot.slane %v2288_v18, %v3012_v24  ;;  %v2144_v37 = vcombine.high %v2099_v0, %v2131_v58 }
 0x161   : > { %v2259_v25 = vpop.permute.xlu1 %2258  ;;  %v2903_v42 = vpack.i.bf16 %v2143_v10, %v3876_v63  ;;  %v2898_v2 = vpack.i.bf16 %v2142_v1, %v1881_v34  ;;  %v2303_v50 = vrot.slane %v2289_v26, %v3012_v24  ;;  %v2287_v58 = vrot.slane %v2273_v55, %v3012_v24 }
 0x162   : > { %v2261_v47 = vpop.permute.xlu0 %2260  ;;  %2894 = vrot.lane.b32.xlu0 %v2893_v54, %s2934_s27  ;;  %2889 = vrot.lane.b32.xlu1 %v2888_v14, %s2935_s28  ;;  %v2336_v23 = vcombine.low %v2280_v11, %v2296_v40  ;;  %v2337_v43 = vcombine.high %v2280_v11, %v2296_v40  ;;  %v3877_v7 = vcombine.low %v3257_v39, %v3193_v22 }
 0x163   : > { %v2304_v32 = vcombine.low %v2257_v4, %v2261_v47  ;;  %v2305_v31 = vcombine.high %v2257_v4, %v2261_v47  ;;  %v3878_v0 = vcombine.high %v3269_v56, %v3272_v48  ;;  %v2353_v11 = vcombine.high %v2287_v58, %v2303_v50 }
 0x164   : > { %v2913_v12 = vpack.i.bf16 %v2145_v38, %v3877_v7  ;;  %v2351_v14 = vrot.slane %v2337_v43, %v3043_v41  ;;  %v3665_v1 = vrot.slane %v2336_v23, %v3043_v41 }
 0x165   : > { %v2263_v49 = vpop.permute.xlu1 %2262  ;;  %v2312_v62 = vrot.slane %v2304_v32, %v3012_v24  ;;  %v2319_v53 = vrot.slane %v2305_v31, %v3012_v24  ;;  %v2908_v18 = vpack.i.bf16 %v2144_v37, %v3878_v0  ;;  %v2146_v31 = vcombine.high %v2106_v51, %v2138_v13  ;;  %v2493_v13 = vld [vmem:[%s3869_s2] sm:$0xf] }
 0x166   : > { %v2320_v20 = vcombine.low %v2259_v25, %v2263_v49  ;;  %v2321_v57 = vcombine.high %v2259_v25, %v2263_v49  ;;  %2904 = vrot.lane.b32.xlu0 %v2903_v42, %s2936_s29  ;;  %2899 = vrot.lane.b32.xlu1 %v2898_v2, %s2937_s30  ;;  %v2352_v25 = vcombine.low %v2287_v58, %v2303_v50  ;;  %v2942_v42 = vmov 0  }
 0x167   : > { %v2367_v63 = vrot.slane %v2353_v11, %v3043_v41  ;;  %2918 = vset.pattern.permute.xlu0 %v2942_v42 }
 0x168   : > { %v2328_v4 = vrot.slane %v2320_v20, %v3012_v24  ;;  %v2335_v61 = vrot.slane %v2321_v57, %v3012_v24  ;;  %v2360_v34 = vrot.slane %v2352_v25, %v3043_v41 }
 0x169   : > { %v3689_v51 = vpop.permute.xlu1 %1911 }
 0x16a   : > { %v2368_v6 = vcombine.low %v2312_v62, %v2328_v4  ;;  %v2369_v44 = vcombine.high %v2312_v62, %v2328_v4  ;;  %v2384_v54 = vcombine.low %v2319_v53, %v2335_v61  ;;  %2914 = vrot.lane.b32.xlu0 %v2913_v12, %s2938_s4  ;;  %2909 = vrot.lane.b32.xlu1 %v2908_v18, %s2939_s5 }
 0x16b   : > { %v2385_v26 = vcombine.high %v2319_v53, %v2335_v61  ;;  %v3879_v62 = vcombine.low %v3129_v16, %v3184_v21  ;;  %v3880_v4 = vcombine.low %v3397_v33, %v3401_v15 }
 0x16c   : > { %v2383_v10 = vrot.slane %v2369_v44, %v3043_v41  ;;  %v3668_v22 = vrot.slane %v2368_v6, %v3043_v41  ;;  %v2392_v48 = vrot.slane %v2384_v54, %v3043_v41 }
 0x16d   : > { %v2399_v49 = vrot.slane %v2385_v26, %v3043_v41 }
 0x16e   : > { %v2402_v39 = vcombine.low %v2351_v14, %v2383_v10  ;;  %v2401_v56 = vcombine.high %v3665_v1, %v3668_v22  ;;  %v2400_v47 = vcombine.low %v3665_v1, %v3668_v22  ;;  %v2404_v40 = vcombine.low %v2360_v34, %v2392_v48 }
 0x16f   : > { %v2403_v55 = vcombine.high %v2351_v14, %v2383_v10  ;;  %v2405_v32 = vcombine.high %v2360_v34, %v2392_v48  ;;  %v2407_v2 = vcombine.high %v2367_v63, %v2399_v49  ;;  %v2406_v38 = vcombine.low %v2367_v63, %v2399_v49 }
 0x170   : > { %2413 = vrot.lane.b32.xlu1 %v2402_v39, %s2934_s27  ;;  %2409 = vrot.lane.b32.xlu0 %v2401_v56, %s2935_s28  ;;  %s2943_s28 = smov 104  }
 0x174   : > { %2421 = vrot.lane.b32.xlu1 %v2404_v40, %s2936_s29  ;;  %2417 = vrot.lane.b32.xlu0 %v2403_v55, %s2937_s30  ;;  %s2944_s29 = smov 120   ;;  %s2945_s30 = smov 88  }
 0x178   : > { %2425 = vrot.lane.b32.xlu1 %v2405_v32, %s2939_s5  ;;  %2172 = vrot.lane.b32.xlu0 %v2146_v31, %s2933_s26  ;;  %s2947_s5 = smov 72  }
 0x17c   : > { %2433 = vrot.lane.b32.xlu1 %v2407_v2, %s2933_s26  ;;  %2429 = vrot.lane.b32.xlu0 %v2406_v38, %s2938_s4  ;;  %s2946_s4 = smov 112  }
 0x180   : > { %2496 = vperm.xlu0 %2918, %v2493_v13  }
 0x194   : > { %v2790_v37 = vpop.permute.xlu1 %2789  ;;  %v2785_v20 = vpop.permute.xlu0 %2784 }
 0x195   : > { %v2787_v57 = vunpack.i.h.bf16 %v2785_v20  ;;  %v2786_v50 = vunpack.i.l.bf16 %v2785_v20  ;;  %v2792_v23 = vunpack.i.h.bf16 %v2790_v37  ;;  %v2791_v43 = vunpack.i.l.bf16 %v2790_v37 }
 0x197   : > { %v416_v53 = vsel %vm415_vm4, %v3879_v62, %v2787_v57  ;;  %v627_v61 = vsel %vm415_vm4, %v3880_v4, %v2786_v50  ;;  %v3881_v62 = vcombine.low %v3199_v35, %v3202_v36 }
 0x198   : > { %v2800_v58 = vpop.permute.xlu1 %2799  ;;  %v2795_v7 = vpop.permute.xlu0 %2794  ;;  %v418_v44 = vsel %vm417_vm5, %v416_v53, %v2792_v23  ;;  %v628_v54 = vsel %vm417_vm5, %v627_v61, %v2791_v43  ;;  %v2659_v61 = vld [vmem:[%s3868_s1 + $0x2] sm:$0x3] }
 0x199   : > { %v2797_v12 = vunpack.i.h.bf16 %v2795_v7  ;;  %v2796_v0 = vunpack.i.l.bf16 %v2795_v7  ;;  %v2802_v18 = vunpack.i.h.bf16 %v2800_v58  ;;  %v2801_v6 = vunpack.i.l.bf16 %v2800_v58  ;;  %v429_v58 = vld [vmem:[%s3868_s1] sm:$0x3] }
 0x19b   : > { %v420_v16 = vsel %vm419_vm6, %v418_v44, %v2797_v12  ;;  %v629_v21 = vsel %vm419_vm6, %v628_v54, %v2796_v0 }
 0x19c   : > { %v2810_v25 = vpop.permute.xlu1 %2809  ;;  %v2805_v33 = vpop.permute.xlu0 %2804  ;;  %v422_v56 = vsel %vm421_vm7, %v420_v16, %v2802_v18  ;;  %v630_v48 = vsel %vm421_vm7, %v629_v21, %v2801_v6 }
 0x19d   : > { %v2807_v15 = vunpack.i.h.bf16 %v2805_v33  ;;  %v2806_v14 = vunpack.i.l.bf16 %v2805_v33  ;;  %v2812_v10 = vunpack.i.h.bf16 %v2810_v25  ;;  %v2811_v39 = vunpack.i.l.bf16 %v2810_v25 }
 0x19f   : > { %v424_v34 = vsel %vm423_vm8, %v422_v56, %v2807_v15  ;;  %v631_v26 = vsel %vm423_vm8, %v630_v48, %v2806_v14 }
 0x1a0   : > { %v2815_v40 = vpop.permute.xlu0 %2814  ;;  %v632_v32 = vsel %vm425_vm9, %v631_v26, %v2811_v39  ;;  %v426_v31 = vsel %vm425_vm9, %v424_v34, %v2812_v10 }
 0x1a1   : > { %v2817_v55 = vunpack.i.h.bf16 %v2815_v40  ;;  %v2816_v11 = vunpack.i.l.bf16 %v2815_v40 }
 0x1a3   : > { %v633_v49 = vsel %vm427_vm10, %v632_v32, %v2816_v11  ;;  %v428_v63 = vsel %vm427_vm10, %v426_v31, %v2817_v55 }
 0x1a4   : > { %v2820_v42 = vpop.permute.xlu1 %2819  ;;  %v2825_v2 = vpop.permute.xlu0 %2824  ;;  %v636_v38 = vpack.c.bf16 %v633_v49, %v633_v49  ;;  %v430_v13 = vpack.c.bf16 %v428_v63, %v428_v63 }
 0x1a5   : > { %v2822_v37 = vunpack.i.h.bf16 %v2820_v42  ;;  %v2821_v20 = vunpack.i.l.bf16 %v2820_v42  ;;  %v2827_v57 = vunpack.i.h.bf16 %v2825_v2  ;;  %v2826_v50 = vunpack.i.l.bf16 %v2825_v2  ;;  %v2662_v42 = vld [vmem:[%s3868_s1 + $0x4] sm:$0x3]  ;;  %v2664_v2 = vld [vmem:[%s3868_s1 + $0x6] sm:$0x3] }
 0x1a6   : > { %v642_v23 = vsel %vm640_vm11, %v636_v38, 0  ;;  %v688_v43 = vsel %vm640_vm11, %v430_v13, 0 }
 0x1a7   : > { %v1163_v53 = vsel %vm415_vm4, %v3881_v62, %v2822_v37  ;;  %v934_v4 = vsel %vm415_vm4, %v898_v28, %v2821_v20  ;;  %2699 = vmatpush3.bf16.msra.mxu0 %v642_v23  ;;  %2705 = vmatpush3.bf16.msra.mxu1 %v688_v43 }
 0x1a8   : > { %v2830_v7 = vpop.permute.xlu1 %2829  ;;  %v2835_v12 = vpop.permute.xlu0 %2834  ;;  %2710 = vmatprep.subr.bf16.mxu0 %v2940_v8  ;;  %2716 = vmatprep.subr.bf16.mxu1 %v2940_v8  ;;  %v1164_v17 = vsel %vm417_vm5, %v1163_v53, %v2827_v57  ;;  %v935_v29 = vsel %vm417_vm5, %v934_v4, %v2826_v50 }
 0x1a9   : > { %v2832_v35 = vunpack.i.h.bf16 %v2830_v7  ;;  %v2831_v36 = vunpack.i.l.bf16 %v2830_v7  ;;  %v2837_v28 = vunpack.i.h.bf16 %v2835_v12  ;;  %v2836_v0 = vunpack.i.l.bf16 %v2835_v12 }
 0x1aa   : > { %2701 = vmatmul.mubr.msk.bf16.vlgmr.msra.gmra.mrb[0].mxu0 %vm415_vm4, %v2659_v61  ;;  %2707 = vmatmul.mubr.msk.bf16.vlgmr.msra.gmra.mrb[0].mxu1 %vm415_vm4, %v429_v58 }
 0x1ab   : > { %v936_v18 = vsel %vm419_vm6, %v935_v29, %v2831_v36  ;;  %v1165_v6 = vsel %vm419_vm6, %v1164_v17, %v2832_v35  ;;  %2712 = vmatprep.mubr.msk.bf16.mxu0 %vm2941_vm3, %v2940_v8  ;;  %2718 = vmatprep.mubr.msk.bf16.mxu1 %vm2941_vm3, %v2940_v8 }
 0x1ac   : > { %v2840_v44 = vpop.permute.xlu1 %2839  ;;  %v2845_v54 = vpop.permute.xlu0 %2844  ;;  %v937_v25 = vsel %vm421_vm7, %v936_v18, %v2836_v0  ;;  %v1166_v33 = vsel %vm421_vm7, %v1165_v6, %v2837_v28 }
 0x1ad   : > { %v2842_v16 = vunpack.i.h.bf16 %v2840_v44  ;;  %v2841_v21 = vunpack.i.l.bf16 %v2840_v44  ;;  %v2847_v15 = vunpack.i.h.bf16 %v2845_v54  ;;  %v2846_v14 = vunpack.i.l.bf16 %v2845_v54 }
 0x1af   : > { %v938_v10 = vsel %vm423_vm8, %v937_v25, %v2841_v21  ;;  %v1167_v39 = vsel %vm423_vm8, %v1166_v33, %v2842_v16 }
 0x1b0   : > { %v2850_v56 = vpop.permute.xlu1 %2849  ;;  %v939_v26 = vsel %vm425_vm9, %v938_v10, %v2846_v14  ;;  %v1168_v40 = vsel %vm425_vm9, %v1167_v39, %v2847_v15 }
 0x1b1   : > { %v2852_v48 = vunpack.i.h.bf16 %v2850_v56  ;;  %v2851_v34 = vunpack.i.l.bf16 %v2850_v56 }
 0x1b3   : > { %v940_v55 = vsel %vm427_vm10, %v939_v26, %v2851_v34  ;;  %v1169_v11 = vsel %vm427_vm10, %v1168_v40, %v2852_v48  ;;  %v3882_v40 = vcombine.low %v3302_v5, %v3305_v52 }
 0x1b4   : > { %v943_v32 = vpack.c.bf16 %v940_v55, %v940_v55  ;;  %v1172_v31 = vpack.c.bf16 %v1169_v11, %v1169_v11  ;;  %v2666_v11 = vld [vmem:[%s3868_s1 + $0x8] sm:$0x3] }
 0x1b6   : > { %v948_v49 = vsel %vm640_vm11, %v943_v32, 0  ;;  %v1177_v63 = vsel %vm640_vm11, %v1172_v31, 0  ;;  %v2668_v32 = vld [vmem:[%s3868_s1 + $0xa] sm:$0x3] }
 0x1b7   : > { %2711 = vmatpush3.bf16.msra.mxu0 %v948_v49  ;;  %2717 = vmatpush3.bf16.msra.mxu1 %v1177_v63 }
 0x1b8   : > { %2722 = vmatprep.subr.bf16.mxu0 %v2940_v8  ;;  %2728 = vmatprep.subr.bf16.mxu1 %v2940_v8 }
 0x1ba   : > { %2713 = vmatmul.mubr.msk.bf16.vlgmr.msra.gmra.mrb[4].mxu0 %vm415_vm4, %v2662_v42  ;;  %2719 = vmatmul.mubr.msk.bf16.vlgmr.msra.gmra.mrb[4].mxu1 %vm415_vm4, %v2664_v2 }
 0x1bb   : > { %2724 = vmatprep.mubr.msk.bf16.mxu0 %vm2941_vm3, %v2940_v8  ;;  %2730 = vmatprep.mubr.msk.bf16.mxu1 %vm2941_vm3, %v2940_v8 }
 0x1c4   : > { %v2860_v38 = vpop.permute.xlu1 %2859  ;;  %v2855_v13 = vpop.permute.xlu0 %2854 }
 0x1c5   : > { %v2857_v37 = vunpack.i.h.bf16 %v2855_v13  ;;  %v2856_v20 = vunpack.i.l.bf16 %v2855_v13  ;;  %v2862_v57 = vunpack.i.h.bf16 %v2860_v38  ;;  %v2861_v50 = vunpack.i.l.bf16 %v2860_v38 }
 0x1c7   : > { %v1685_v23 = vsel %vm415_vm4, %v1649_v60, %v2857_v37  ;;  %v1424_v43 = vsel %vm415_vm4, %v1388_v9, %v2856_v20 }
 0x1c8   : > { %v2870_v62 = vpop.permute.xlu1 %2869  ;;  %v2865_v53 = vpop.permute.xlu0 %2864  ;;  %v1425_v12 = vsel %vm417_vm5, %v1424_v43, %v2861_v50  ;;  %v1686_v35 = vsel %vm417_vm5, %v1685_v23, %v2862_v57 }
 0x1c9   : > { %v2867_v4 = vunpack.i.h.bf16 %v2865_v53  ;;  %v2866_v61 = vunpack.i.l.bf16 %v2865_v53  ;;  %v2872_v58 = vunpack.i.h.bf16 %v2870_v62  ;;  %v2871_v7 = vunpack.i.l.bf16 %v2870_v62 }
 0x1cb   : > { %v1426_v36 = vsel %vm419_vm6, %v1425_v12, %v2866_v61  ;;  %v1687_v59 = vsel %vm419_vm6, %v1686_v35, %v2867_v4 }
 0x1cc   : > { %v2880_v46 = vpop.permute.xlu1 %2879  ;;  %v2875_v60 = vpop.permute.xlu0 %2874  ;;  %v1427_v29 = vsel %vm421_vm7, %v1426_v36, %v2871_v7  ;;  %v1688_v28 = vsel %vm421_vm7, %v1687_v59, %v2872_v58 }
 0x1cd   : > { %v2877_v17 = vunpack.i.h.bf16 %v2875_v60  ;;  %v2876_v27 = vunpack.i.l.bf16 %v2875_v60  ;;  %v2882_v30 = vunpack.i.h.bf16 %v2880_v46  ;;  %v2881_v9 = vunpack.i.l.bf16 %v2880_v46 }
 0x1cf   : > { %v1428_v0 = vsel %vm423_vm8, %v1427_v29, %v2876_v27  ;;  %v1689_v18 = vsel %vm423_vm8, %v1688_v28, %v2877_v17 }
 0x1d0   : > { %v2885_v6 = vpop.permute.xlu0 %2884  ;;  %v1429_v16 = vsel %vm425_vm9, %v1428_v0, %v2881_v9  ;;  %v1690_v21 = vsel %vm425_vm9, %v1689_v18, %v2882_v30 }
 0x1d1   : > { %v2887_v44 = vunpack.i.h.bf16 %v2885_v6  ;;  %v2886_v54 = vunpack.i.l.bf16 %v2885_v6 }
 0x1d3   : > { %v1430_v25 = vsel %vm427_vm10, %v1429_v16, %v2886_v54  ;;  %v1691_v33 = vsel %vm427_vm10, %v1690_v21, %v2887_v44  ;;  %v2672_v21 = vld [vmem:[%s3868_s1 + $0xe] sm:$0x3] }
 0x1d4   : > { %v2890_v15 = vpop.permute.xlu1 %2889  ;;  %v2895_v14 = vpop.permute.xlu0 %2894  ;;  %v1433_v10 = vpack.c.bf16 %v1430_v25, %v1430_v25  ;;  %v1694_v39 = vpack.c.bf16 %v1691_v33, %v1691_v33 }
 0x1d5   : > { %v2891_v56 = vunpack.i.l.bf16 %v2890_v15  ;;  %v2896_v48 = vunpack.i.l.bf16 %v2895_v14  ;;  %v2892_v5 = vunpack.i.h.bf16 %v2890_v15  ;;  %v2897_v37 = vunpack.i.h.bf16 %v2895_v14  ;;  %v2674_v15 = vld [vmem:[%s3868_s1 + $0x10] sm:$0x3] }
 0x1d6   : > { %v1438_v34 = vsel %vm640_vm11, %v1433_v10, 0  ;;  %v1699_v26 = vsel %vm640_vm11, %v1694_v39, 0 }
 0x1d7   : > { %v1914_v55 = vsel %vm415_vm4, %v3882_v40, %v2891_v56  ;;  %2723 = vmatpush3.bf16.msra.mxu0 %v1438_v34  ;;  %2729 = vmatpush3.bf16.msra.mxu1 %v1699_v26  ;;  %v2175_v50 = vsel %vm415_vm4, %v2139_v45, %v2892_v5 }
 0x1d8   : > { %v2900_v31 = vpop.permute.xlu1 %2899  ;;  %v2905_v49 = vpop.permute.xlu0 %2904  ;;  %2734 = vmatprep.subr.bf16.mxu0 %v2940_v8  ;;  %2740 = vmatprep.subr.bf16.mxu1 %v2940_v8  ;;  %v1915_v52 = vsel %vm417_vm5, %v1914_v55, %v2896_v48  ;;  %v2176_v4 = vsel %vm417_vm5, %v2175_v50, %v2897_v37 }
 0x1d9   : > { %v2901_v63 = vunpack.i.l.bf16 %v2900_v31  ;;  %v2906_v42 = vunpack.i.l.bf16 %v2905_v49  ;;  %v2902_v23 = vunpack.i.h.bf16 %v2900_v31  ;;  %v2907_v61 = vunpack.i.h.bf16 %v2905_v49 }
 0x1da   : > { %2725 = vmatmul.mubr.msk.bf16.vlgmr.msra.gmra.mrb[8].mxu0 %vm415_vm4, %v2666_v11  ;;  %2731 = vmatmul.mubr.msk.bf16.vlgmr.msra.gmra.mrb[8].mxu1 %vm415_vm4, %v2668_v32 }
 0x1db   : > { %v1916_v2 = vsel %vm419_vm6, %v1915_v52, %v2901_v63  ;;  %2736 = vmatprep.mubr.msk.bf16.mxu0 %vm2941_vm3, %v2940_v8  ;;  %2742 = vmatprep.mubr.msk.bf16.mxu1 %vm2941_vm3, %v2940_v8  ;;  %v2177_v35 = vsel %vm419_vm6, %v2176_v4, %v2902_v23 }
 0x1dc   : > { %v2910_v38 = vpop.permute.xlu1 %2909  ;;  %v2915_v13 = vpop.permute.xlu0 %2914  ;;  %v1917_v43 = vsel %vm421_vm7, %v1916_v2, %v2906_v42  ;;  %v2178_v36 = vsel %vm421_vm7, %v2177_v35, %v2907_v61 }
 0x1dd   : > { %v2911_v20 = vunpack.i.l.bf16 %v2910_v38  ;;  %v2916_v57 = vunpack.i.l.bf16 %v2915_v13  ;;  %v2912_v3 = vunpack.i.h.bf16 %v2910_v38  ;;  %v2917_v59 = vunpack.i.h.bf16 %v2915_v13 }
 0x1df   : > { %v1918_v62 = vsel %vm423_vm8, %v1917_v43, %v2911_v20  ;;  %v2179_v27 = vsel %vm423_vm8, %v2178_v36, %v2912_v3 }
 0x1e0   : > { %v1919_v53 = vsel %vm425_vm9, %v1918_v62, %v2916_v57 }
 0x1e1   : > { %v1920_v12 = vsel %vm427_vm10, %v1919_v53, %v3689_v51  ;;  %v2670_v51 = vld [vmem:[%s3868_s1 + $0xc] sm:$0x3] }
 0x1e2   : > { %v2414_v58 = vpop.permute.xlu1 %2413  ;;  %v2410_v7 = vpop.permute.xlu0 %2409  ;;  %v1923_v19 = vpack.c.bf16 %v1920_v12, %v1920_v12 }
 0x1e3   : > { %v2436_v46 = vsel %vm415_vm4, %v2400_v47, %v2410_v7  ;;  %v2180_v47 = vsel %vm425_vm9, %v2179_v27, %v2917_v59 }
 0x1e4   : > { %v1928_v45 = vsel %vm640_vm11, %v1923_v19, 0  ;;  %v2437_v30 = vsel %vm417_vm5, %v2436_v46, %v2414_v58 }
 0x1e5   : > { %2735 = vmatpush3.bf16.msra.mxu0 %v1928_v45 }
 0x1e6   : > { %v2422_v60 = vpop.permute.xlu1 %2421  ;;  %v2418_v17 = vpop.permute.xlu0 %2417  ;;  %2746 = vmatprep.subr.bf16.mxu0 %v2940_v8 }
 0x1e7   : > { %v2438_v9 = vsel %vm419_vm6, %v2437_v30, %v2418_v17 }
 0x1e8   : > { %2737 = vmatmul.mubr.msk.bf16.vlgmr.msra.gmra.mrb[12].mxu0 %vm415_vm4, %v2670_v51  ;;  %v2439_v0 = vsel %vm421_vm7, %v2438_v9, %v2422_v60 }
 0x1e9   : > { %2748 = vmatprep.mubr.msk.bf16.mxu0 %vm2941_vm3, %v2940_v8 }
 0x1ea   : > { %v2426_v1 = vpop.permute.xlu1 %2425  ;;  %v2173_v22 = vpop.permute.xlu0 %2172 }
 0x1eb   : > { %v2181_v29 = vsel %vm427_vm10, %v2180_v47, %v2173_v22  ;;  %v2440_v18 = vsel %vm423_vm8, %v2439_v0, %v2426_v1 }
 0x1ec   : > { %v2184_v28 = vpack.c.bf16 %v2181_v29, %v2181_v29 }
 0x1ee   : > { %v2434_v6 = vpop.permute.xlu1 %2433  ;;  %v2430_v44 = vpop.permute.xlu0 %2429  ;;  %v2189_v54 = vsel %vm640_vm11, %v2184_v28, 0 }
 0x1ef   : > { %v2441_v16 = vsel %vm425_vm9, %v2440_v18, %v2430_v44  ;;  %2741 = vmatpush3.bf16.msra.mxu1 %v2189_v54 }
 0x1f0   : > { %v2442_v8 = vsel %vm427_vm10, %v2441_v16, %v2434_v6 }
 0x1f1   : > { %v2445_v25 = vpack.c.bf16 %v2442_v8, %v2442_v8 }
 0x1f2   : > { %2743 = vmatmul.mubr.msk.bf16.vlgmr.msra.gmra.mrb[12].mxu1 %vm415_vm4, %v2672_v21 }
 0x1f3   : > { %v2450_v33 = vsel %vm640_vm11, %v2445_v25, 0 }
 0x1f4   : > { %2747 = vmatpush3.bf16.msra.mxu0 %v2450_v33 }
 0x1f7   : > { %2749 = vmatmul.mubr.msk.bf16.vlgmr.msra.gmra.mrb[16].mxu0 %vm415_vm4, %v2674_v15 }
 0x1ff   : > { %v2497_v60 = vpop.permute.xlu0 %2496 }
 0x27d   : > { %v678_v14 = vpop.f32.mrb[0].mxu0  ;;  %v724_v10 = vpop.f32.mrb[0].mxu1 }
 0x27e   : > { %v2702_v39 = vpop.f32.mrb[1].mxu0  ;;  %v725_v56 = vadd.f32 %v724_v10, %v678_v14  ;;  %v2708_v48 = vpop.f32.mrb[1].mxu1 }
 0x27f   : > { %v681_v34 = vpop.f32.mrb[2].mxu0  ;;  %v727_v26 = vpop.f32.mrb[2].mxu1 }
 0x280   : > { %v2703_v40 = vpop.f32.mrb[3].mxu0  ;;  %v2709_v55 = vpop.f32.mrb[3].mxu1 }
 0x28d   : > { %v984_v11 = vpop.f32.mrb[4].mxu0  ;;  %v1213_v32 = vpop.f32.mrb[4].mxu1 }
 0x28e   : > { %v990_v31 = vadd.f32 %v984_v11, %v725_v56  ;;  %v2714_v49 = vpop.f32.mrb[5].mxu0  ;;  %v2720_v63 = vpop.f32.mrb[5].mxu1 }
 0x28f   : > { %v987_v5 = vpop.f32.mrb[6].mxu0  ;;  %v1216_v52 = vpop.f32.mrb[6].mxu1 }
 0x290   : > { %v1219_v42 = vadd.f32 %v1213_v32, %v990_v31  ;;  %v2715_v2 = vpop.f32.mrb[7].mxu0  ;;  %v2721_v38 = vpop.f32.mrb[7].mxu1 }
 0x2ad   : > { %v1474_v13 = vpop.f32.mrb[8].mxu0  ;;  %v1735_v37 = vpop.f32.mrb[8].mxu1 }
 0x2ae   : > { %v1480_v20 = vadd.f32 %v1474_v13, %v1219_v42  ;;  %v2726_v57 = vpop.f32.mrb[9].mxu0  ;;  %v2732_v50 = vpop.f32.mrb[9].mxu1 }
 0x2af   : > { %v1477_v23 = vpop.f32.mrb[10].mxu0  ;;  %v1738_v43 = vpop.f32.mrb[10].mxu1 }
 0x2b0   : > { %v1741_v62 = vadd.f32 %v1735_v37, %v1480_v20  ;;  %v2727_v53 = vpop.f32.mrb[11].mxu0  ;;  %v2733_v4 = vpop.f32.mrb[11].mxu1 }
 0x2bb   : > { %v1964_v61 = vpop.f32.mrb[12].mxu0 }
 0x2bc   : > { %v1970_v58 = vadd.f32 %v1964_v61, %v1741_v62  ;;  %v2738_v7 = vpop.f32.mrb[13].mxu0 }
 0x2bd   : > { %v1967_v12 = vpop.f32.mrb[14].mxu0 }
 0x2be   : > { %v2739_v35 = vpop.f32.mrb[15].mxu0 }
 0x2c5   : > { %v2225_v3 = vpop.f32.mrb[12].mxu1 }
 0x2c6   : > { %v2231_v19 = vadd.f32 %v2225_v3, %v1970_v58  ;;  %v2744_v45 = vpop.f32.mrb[13].mxu1 }
 0x2c7   : > { %v2228_v36 = vpop.f32.mrb[14].mxu1 }
 0x2c8   : > { %v2745_v59 = vpop.f32.mrb[15].mxu1 }
 0x2ca   : > { %v2486_v46 = vpop.f32.mrb[16].mxu0 }
 0x2cb   : > { %v2492_v17 = vadd.f32 %v2486_v46, %v2231_v19  ;;  %v2750_v51 = vpop.f32.mrb[17].mxu0 }
 0x2cc   : > { %v2489_v27 = vpop.f32.mrb[18].mxu0 }
 0x2cd   : > { %v2499_v30 = vadd.f32 %v2497_v60, %v2492_v17  ;;  %v2751_v9 = vpop.f32.mrb[19].mxu0 }
 0x2cf   : > { %2507 = vrot.lane.b32.xlu0 %v2499_v30, %s2943_s28  ;;  %2501 = vrot.lane.b32.xlu1 %v2499_v30, %s2944_s29 }
 0x2d3   : > { %2513 = vrot.lane.b32.xlu0 %v2499_v30, %s2945_s30  ;;  %2504 = vrot.lane.b32.xlu1 %v2499_v30, %s2946_s4 }
 0x2d7   : > { %2519 = vrot.lane.b32.xlu0 %v2499_v30, %s2947_s5  ;;  %2510 = vrot.lane.b32.xlu1 %v2499_v30, %s2948_s6 }
 0x2db   : > { %2516 = vrot.lane.b32.xlu1 %v2499_v30, %s2949_s7 }
 0x341   : > { %v2508_v1 = vpop.permute.xlu0 %2507  ;;  %v2502_v22 = vpop.permute.xlu1 %2501 }
 0x342   : > { %v2530_v6 = vcombine.low %v2502_v22, %v2508_v1 }
 0x344   : > { %v2537_v21 = vrot.slane %v2530_v6, %v3012_v24 }
 0x345   : > { %v2514_v47 = vpop.permute.xlu0 %2513  ;;  %v2505_v29 = vpop.permute.xlu1 %2504 }
 0x346   : > { %v2522_v28 = vcombine.low %v2499_v30, %v2505_v29 }
 0x348   : > { %v2529_v44 = vrot.slane %v2522_v28, %v3012_v24 }
 0x349   : > { %v2520_v0 = vpop.permute.xlu0 %2519  ;;  %v2511_v18 = vpop.permute.xlu1 %2510 }
 0x34a   : > { %v2546_v54 = vcombine.low %v2514_v47, %v2520_v0  ;;  %v2554_v25 = vcombine.low %v2529_v44, %v2537_v21  ;;  %v2555_v33 = vcombine.high %v2529_v44, %v2537_v21 }
 0x34c   : > { %v2553_v15 = vrot.slane %v2546_v54, %v3012_v24  ;;  %v2562_v56 = vrot.slane %v2554_v25, %v3043_v41  ;;  %v2569_v48 = vrot.slane %v2555_v33, %v3043_v41 }
 0x34d   : > { %v2517_v16 = vpop.permute.xlu1 %2516 }
 0x34e   : > { %v2538_v8 = vcombine.low %v2511_v18, %v2517_v16 }
 0x350   : > { %v2545_v14 = vrot.slane %v2538_v8, %v3012_v24 }
 0x352   : > { %v2570_v10 = vcombine.low %v2545_v14, %v2553_v15  ;;  %v2571_v39 = vcombine.high %v2545_v14, %v2553_v15 }
 0x354   : > { %v2578_v34 = vrot.slane %v2570_v10, %v3043_v41  ;;  %v2585_v26 = vrot.slane %v2571_v39, %v3043_v41 }
 0x356   : > { %v2586_v40 = vcombine.low %v2562_v56, %v2578_v34  ;;  %v2587_v55 = vcombine.high %v2562_v56, %v2578_v34  ;;  %v2588_v11 = vcombine.low %v2569_v48, %v2585_v26  ;;  %v2589_v32 = vcombine.high %v2569_v48, %v2585_v26 }
 0x358   : > { %2590 = vst.msk [vmem:[%s2986_s22] sm:$0xff] %vm415_vm4, %v2586_v40  ;;  %2591 = vst.msk [vmem:[%s2986_s22 + $0x8] sm:$0xff] %vm415_vm4, %v2587_v55 }
 0x359   : > { %2592 = vst.msk [vmem:[%s2986_s22 + $0x10] sm:$0xff] %vm415_vm4, %v2588_v11  ;;  %2593 = vst.msk [vmem:[%s2986_s22 + $0x18] sm:$0xff] %vm415_vm4, %v2589_v32 }
 0x35a PF: > { %s13_s12 = sadd.s32 1, %s2925_s12  }
 0x35b   : > { %p10_p5 = scmp.ge.s32.totalorder %s13_s12, 4  }
 0x35d   :  { %12 = sbr.rel (!%p10_p5) target bundleno = 1 (0x1), region = 74 }

// kernel: depth_head_forward.3
= control target key start
LH: loop header
LB: loop body
LE: loop exit
PB: predicated region body
PF: predicated region fallthrough
CT: control target
= control target key end

     0   :  { %s5566_s26 = smov 0   ;;  %s5568_s27 = smov 0   ;;  %s7157_s0 = inlined_call_operand.vmem [shape: f32[2,4,8,8], index: 0, kind: input, shape index: {}]   ;;  %s7158_s1 = inlined_call_operand.vmem [shape: f32[18,8], index: 1, kind: input, shape index: {}]   ;;  %s7159_s2 = inlined_call_operand.vmem [shape: bf16[3,8,16], index: 2, kind: input, shape index: {}]   ;;  %s7160_s3 = inlined_call_operand.vmem [shape: bf16[9,16,4], index: 3, kind: input, shape index: {}]   ;;  %s7161_s4 = inlined_call_operand.vmem [shape: f32[16,1], index: 4, kind: input, shape index: {}]   ;;  %s7162_s5 = inlined_call_operand.vmem [shape: bf16[1,16], index: 5, kind: input, shape index: {}]   ;;  %s7163_s6 = inlined_call_operand.<no memory space> [shape: f32[1,1], index: 6, kind: input, shape index: {}]   ;;  %s7164_s7 = inlined_call_operand.vmem [shape: f32[2,1,256], index: 7, kind: output, shape index: {}]  }
   0x1   :  { %v12_v0 = vstv %s7163_s6  ;;  %s5570_s28 = smov 0  }
   0x2   :  { %13 = vst [vmem:[#allocation2] sm:$0x1] %v12_v0 }
   0x3 LB: > { %s31_s6 = sadd.s32 1, %s5504_s27  ;;  %p5172_p0 = scmp.ge.s32.totalorder %s5508_s28, 1  ;;  %s5508_s28 = sphi %s5570_s28, %s19_s28   ;;  %s5504_s27 = sphi %s5568_s27, %s7216_s27   ;;  %s5500_s26 = sphi %s5566_s26, %s7215_s26  }
   0x4   : > { %p33_p1 = scmp.ge.s32.totalorder %s31_s6, 2  ;;  %p253_p2 = scmp.lt.s32.totalorder %s5508_s28, 3 }
   0x6   : > { %s7218_s6 = smov (%p33_p1, %s31_s6), 0  ;;  %p254_p3 = pnand %p5172_p0, %p253_p2 }
   0x8   : > { %257 = sbr.rel (%p254_p3) target bundleno = 1733 (0x6c5), region = 48 }
   0xf   : > { %p285_p4 = scmp.lt.s32.totalorder %s5500_s26, 1  ;;  %v7166_v1 = vmov 0.0   ;;  %vm5511_vm0 = vmmov 0   ;;  %v299_v2 = vld [vmem:[%s7158_s1] sm:$0xff]  ;;  %vm306_vm1 = vcmask 64512   ;;  %v300_v6 = vld [vmem:[%s7158_s1 + $0x8] sm:$0xff]  ;;  %v7165_v13 = vlaneseq }
  0x10   : > { %5288 = vmatprep.subr.mxu0 %v7166_v1  ;;  %5290 = vmatprep.mubr.msk.f32.mxu0 %vm5511_vm0, %v7166_v1  ;;  %v301_v7 = vld [vmem:[%s7158_s1 + $0x10] sm:$0x3]  ;;  %v979_v9 = vld [vmem:[%s7159_s2] sm:$0xf]  ;;  %vm995_vm2 = vcmask 1043456   ;;  %vm2036_vm3 = vcmask 1046528  }
  0x11   : > { %s7220_s26 = smov (!%p285_p4, %s5500_s26), 1  ;;  %5321 = vmatprep.subr.mxu1 %v7166_v1  ;;  %5323 = vmatprep.mubr.msk.f32.mxu1 %vm5511_vm0, %v7166_v1  ;;  %v997_v10 = vsel %vm995_vm2, %v979_v9, 0  ;;  %v5512_v11 = vmov 1983009808   ;;  %v5648_v15 = vshrl.u32 %v7165_v13, 7  ;;  %s5515_s20 = smov 64  }
  0x12   : > { %s5253_s8 = sshll.u32 %s7220_s26, 5  ;;  %v650_v12 = vunpack.c.l.s4 %v5512_v11  ;;  %vm1652_vm4 = vsmask.f32 7424  ;;  %s5516_s21 = smov 16   ;;  %vm1613_vm5 = vcmask 130048   ;;  %vm1617_vm6 = vcmask 261120  }
  0x13   : > { %s289_s11 = scalar_lea.vmem %s7157_s0, %s5253_s8  ;;  %7180 = vst [vmem:[#allocation3_spill] sm:$0xff] %v5648_v15  ;;  %s5517_s22 = smov 32   ;;  %vm1620_vm7 = vcmask 392192   ;;  %vm1623_vm8 = vcmask 523264   ;;  %vm1626_vm9 = vcmask 654336   ;;  %vm1629_vm10 = vcmask 785408  }
  0x14   : > { %v302_v3 = vld [vmem:[%s289_s11] sm:$0xff]  ;;  %v303_v4 = vld [vmem:[%s289_s11 + $0x8] sm:$0xff]  ;;  %v305_v5 = vld [vmem:[%s289_s11 + $0x18] sm:$0xff]  ;;  %v651_v14 = vunpack.c.0.s8 %v650_v12  ;;  %s5518_s23 = smov 80   ;;  %s5519_s24 = smov 96   ;;  %vm1632_vm11 = vcmask 916480  }
  0x15   : > { %5289 = vmatpush3.msra.mxu0 %v302_v3  ;;  %5322 = vmatpush3.msra.mxu1 %v305_v5  ;;  %v304_v8 = vld [vmem:[%s289_s11 + $0x10] sm:$0xff]  ;;  %s5520_s25 = smov 48   ;;  %s5521_s29 = smov 112   ;;  %vm1925_vm12 = vcmask 1041408   ;;  %vm1921_vm13 = vcmask 31744  }
  0x16   : > { %5291 = vmatmul.mubr.msk.f32.vlgmr.msra.gmra.mrb[0].mxu0 %vm306_vm1, %v299_v2  ;;  %5299 = vmatprep.subr.mxu0 %v7166_v1  ;;  %v5651_v16 = vsub.s32 %v651_v14, %v5648_v15  ;;  %v5227_v14 = vld [vmem:[%s7159_s2 + $0x8] sm:$0xf]  ;;  %s5175_s13 = sshll.u32 %s7220_s26, 1 }
  0x17   : > { %5293 = vmatprep.mubr.msk.f32.mxu0 %vm5511_vm0, %v7166_v1  ;;  %5300 = vmatpush3.msra.mxu0 %v303_v4  ;;  %s294_s16 = scalar_lea.vmem %s7164_s7, %s5175_s13 }
  0x18   : > { %5310 = vmatprep.subr.mxu0 %v7166_v1  ;;  %5324 = vmatmul.mubr.msk.f32.vlgmr.msra.gmra.mrb[0].mxu1 %vm306_vm1, %v299_v2 }
  0x19   : > { %5326 = vmatprep.mubr.msk.f32.mxu1 %vm5511_vm0, %v7166_v1 }
  0x1a   : > { %5294 = vmatmul.mubr.msk.f32.gmra.mrb[2].mxu0 %vm306_vm1, %v300_v6 }
  0x1b   : > { %5296 = vmatprep.mubr.msk.f32.mxu0 %vm5511_vm0, %v7166_v1 }
  0x1c   : > { %5327 = vmatmul.mubr.msk.f32.gmra.mrb[2].mxu1 %vm306_vm1, %v300_v6 }
  0x1d   : > { %5329 = vmatprep.mubr.msk.f32.mxu1 %vm5511_vm0, %v7166_v1 }
  0x1e   : > { %5297 = vmatmul.mubr.msk.f32.gmra.mrb[4].mxu0 %vm306_vm1, %v301_v7 }
  0x1f   : > { %5301 = vmatprep.mubr.msk.f32.mxu0 %vm5511_vm0, %v7166_v1 }
  0x20   : > { %5330 = vmatmul.mubr.msk.f32.gmra.mrb[4].mxu1 %vm306_vm1, %v301_v7 }
  0x22   : > { %5302 = vmatmul.mubr.msk.f32.vlgmr.msra.gmra.mrb[6].mxu0 %vm306_vm1, %v299_v2 }
  0x23   : > { %5304 = vmatprep.mubr.msk.f32.mxu0 %vm5511_vm0, %v7166_v1  ;;  %5311 = vmatpush3.msra.mxu0 %v304_v8 }
  0x24   : > { %5332 = vmatprep.subr.bf16.mxu0 %v7166_v1 }
  0x26   : > { %5305 = vmatmul.mubr.msk.f32.gmra.mrb[8].mxu0 %vm306_vm1, %v300_v6 }
  0x27   : > { %5307 = vmatprep.mubr.msk.f32.mxu0 %vm5511_vm0, %v7166_v1 }
  0x2a   : > { %5308 = vmatmul.mubr.msk.f32.gmra.mrb[10].mxu0 %vm306_vm1, %v301_v7 }
  0x2b   : > { %5312 = vmatprep.mubr.msk.f32.mxu0 %vm5511_vm0, %v7166_v1 }
  0x2e   : > { %5313 = vmatmul.mubr.msk.f32.vlgmr.msra.gmra.mrb[12].mxu0 %vm306_vm1, %v299_v2 }
  0x2f   : > { %5315 = vmatprep.mubr.msk.f32.mxu0 %vm5511_vm0, %v7166_v1  ;;  %5333 = vmatpush3.bf16.msra.mxu0 %v997_v10 }
  0x30   : > { %5376 = vmatprep.subr.bf16.mxu0 %v7166_v1 }
  0x32   : > { %5316 = vmatmul.mubr.msk.f32.gmra.mrb[14].mxu0 %vm306_vm1, %v300_v6 }
  0x33   : > { %5318 = vmatprep.mubr.msk.f32.mxu0 %vm5511_vm0, %v7166_v1 }
  0x36   : > { %5319 = vmatmul.mubr.msk.f32.gmra.mrb[16].mxu0 %vm306_vm1, %v301_v7 }
  0x37   : > { %5334 = vmatprep.mubr.msk.bf16.mxu0 %vm5511_vm0, %v7166_v1 }
  0xe9   : > { %v382_v17 = vpop.f32.mrb[0].mxu0 }
  0xea   : > { %v648_v18 = vcombine.high %v382_v17, %v382_v17  ;;  %v655_v19 = vrot.slane %v382_v17, %v5651_v16  ;;  %v5292_v20 = vpop.f32.mrb[1].mxu0 }
  0xeb   : > { %v622_v23 = vpop.f32.mrb[0].mxu1 }
  0xec   : > { %v662_v21 = vrot.slane %v648_v18, %v5651_v16  ;;  %v663_v22 = vcombine.high %v655_v19, %v655_v19  ;;  %v771_v25 = vcombine.high %v622_v23, %v622_v23  ;;  %v5656_v26 = vrot.slane %v622_v23, %v5651_v16  ;;  %v5325_v27 = vpop.f32.mrb[1].mxu1 }
  0xed   : > { %v387_v24 = vpop.f32.mrb[2].mxu0  ;;  %v3663_v27 = vsel %vm995_vm2, %v5227_v14, 0 }
  0xee   : > { %v664_v28 = vcombine.high %v662_v21, %v662_v21  ;;  %v665_v29 = vcombine.high %v387_v24, %v387_v24  ;;  %v672_v30 = vrot.slane %v387_v24, %v5651_v16  ;;  %v5295_v31 = vpop.f32.mrb[3].mxu0  ;;  %v785_v32 = vrot.slane %v771_v25, %v5651_v16 }
  0xef   : > { %v786_v33 = vcombine.high %v5656_v26, %v5656_v26  ;;  %v812_v34 = vcombine.low %v655_v19, %v663_v22  ;;  %v627_v38 = vpop.f32.mrb[2].mxu1 }
  0xf0   : > { %v813_v35 = vcombine.low %v662_v21, %v664_v28  ;;  %v679_v36 = vrot.slane %v665_v29, %v5651_v16  ;;  %v680_v37 = vcombine.high %v672_v30, %v672_v30  ;;  %v787_v41 = vcombine.high %v785_v32, %v785_v32  ;;  %v5328_v44 = vpop.f32.mrb[3].mxu1 }
  0xf1   : > { %v392_v39 = vpop.f32.mrb[4].mxu0  ;;  %v931_v40 = vcombine.low %v786_v33, %v785_v32  ;;  %v788_v42 = vcombine.high %v627_v38, %v627_v38  ;;  %v795_v43 = vrot.slane %v627_v38, %v5651_v16  ;;  %v820_v53 = vrot.slane %v812_v34, %v5651_v16 }
  0xf2   : > { %v827_v45 = vrot.slane %v813_v35, %v5651_v16  ;;  %v681_v46 = vcombine.high %v679_v36, %v679_v36  ;;  %v829_v47 = vcombine.low %v672_v30, %v680_v37  ;;  %v5298_v48 = vpop.f32.mrb[5].mxu0  ;;  %v688_v55 = vrot.slane %v392_v39, %v5651_v16 }
  0xf3   : > { %v939_v49 = vrot.slane %v931_v40, %v5651_v16  ;;  %v802_v50 = vrot.slane %v788_v42, %v5651_v16  ;;  %v803_v51 = vcombine.high %v795_v43, %v795_v43  ;;  %v932_v52 = vcombine.low %v787_v41, %v795_v43  ;;  %v632_v56 = vpop.f32.mrb[4].mxu1 }
  0xf4   : > { %v830_v54 = vcombine.low %v679_v36, %v681_v46  ;;  %v811_v61 = vrot.slane %v632_v56, %v5651_v16  ;;  %v5331_v62 = vpop.f32.mrb[5].mxu1  ;;  %v837_v63 = vrot.slane %v829_v47, %v5651_v16  ;;  %v828_v5 = vcombine.low %v820_v53, %v827_v45 }
  0xf5   : > { %v462_v57 = vpop.f32.mrb[6].mxu0  ;;  %v946_v58 = vrot.slane %v932_v52, %v5651_v16  ;;  %v948_v59 = vcombine.low %v803_v51, %v802_v50  ;;  %v804_v60 = vcombine.high %v802_v50, %v802_v50 }
  0xf6   : > { %v844_v0 = vrot.slane %v830_v54, %v5651_v16  ;;  %v689_v2 = vcombine.high %v462_v57, %v462_v57  ;;  %v696_v3 = vrot.slane %v462_v57, %v5651_v16  ;;  %v5303_v4 = vpop.f32.mrb[7].mxu0 }
  0xf7   : > { %v5674_v6 = vcombine.low %v939_v49, %v946_v58  ;;  %v956_v7 = vrot.slane %v948_v59, %v5651_v16  ;;  %v949_v8 = vcombine.low %v804_v60, %v811_v61 }
  0xf8   : > { %v845_v9 = vcombine.low %v837_v63, %v844_v0  ;;  %v703_v10 = vrot.slane %v689_v2, %v5651_v16  ;;  %v704_v11 = vcombine.high %v696_v3, %v696_v3  ;;  %v846_v12 = vcombine.low %v688_v55, %v696_v3 }
  0xf9   : > { %v467_v17 = vpop.f32.mrb[8].mxu0  ;;  %v963_v18 = vrot.slane %v949_v8, %v5651_v16 }
  0xfa   : > { %v5682_v19 = vpack.c.bf16 %v845_v9, %v828_v5  ;;  %v847_v20 = vcombine.low %v704_v11, %v703_v10  ;;  %v705_v21 = vcombine.high %v703_v10, %v703_v10  ;;  %v5306_v22 = vpop.f32.mrb[9].mxu0  ;;  %v706_v23 = vcombine.high %v467_v17, %v467_v17 }
  0xfb   : > { %v713_v24 = vrot.slane %v467_v17, %v5651_v16  ;;  %v964_v25 = vcombine.low %v956_v7, %v963_v18  ;;  %v854_v28 = vrot.slane %v846_v12, %v5651_v16 }
  0xfc   : > { %v861_v29 = vrot.slane %v847_v20, %v5651_v16  ;;  %5335 = vmatmul.mubr.msk.bf16.vlgmr.msra.gmra.mrb[20].mxu0 %vm306_vm1, %v5682_v19  ;;  %v720_v30 = vrot.slane %v706_v23, %v5651_v16 }
  0xfd   : > { %v721_v31 = vcombine.high %v713_v24, %v713_v24  ;;  %v863_v32 = vcombine.low %v705_v21, %v713_v24  ;;  %v472_v33 = vpop.f32.mrb[10].mxu0  ;;  %5338 = vmatprep.mubr.msk.bf16.mxu0 %vm5511_vm0, %v7166_v1  ;;  %5377 = vmatpush3.bf16.msra.mxu0 %v3663_v27 }
  0xfe   : > { %v862_v34 = vcombine.low %v854_v28, %v861_v29  ;;  %v729_v35 = vrot.slane %v472_v33, %v5651_v16  ;;  %v5309_v36 = vpop.f32.mrb[11].mxu0  ;;  %v722_v38 = vcombine.high %v720_v30, %v720_v30 }
  0xff   : > { %v864_v37 = vcombine.low %v721_v31, %v720_v30  ;;  %v871_v39 = vrot.slane %v863_v32, %v5651_v16 }
 0x100   : > { %v880_v41 = vcombine.low %v722_v38, %v729_v35 }
 0x101   : > { %v878_v40 = vrot.slane %v864_v37, %v5651_v16  ;;  %v542_v42 = vpop.f32.mrb[12].mxu0 }
 0x102   : > { %v730_v43 = vcombine.high %v542_v42, %v542_v42  ;;  %v737_v44 = vrot.slane %v542_v42, %v5651_v16  ;;  %v5314_v45 = vpop.f32.mrb[13].mxu0  ;;  %v888_v56 = vrot.slane %v880_v41, %v5651_v16 }
 0x103   : > { %v879_v46 = vcombine.low %v871_v39, %v878_v40 }
 0x104   : > { %v744_v47 = vrot.slane %v730_v43, %v5651_v16  ;;  %v745_v48 = vcombine.high %v737_v44, %v737_v44 }
 0x105   : > { %v547_v49 = vpop.f32.mrb[14].mxu0  ;;  %v5698_v50 = vpack.c.bf16 %v879_v46, %v862_v34 }
 0x106   : > { %v746_v51 = vcombine.high %v744_v47, %v744_v47  ;;  %v881_v52 = vcombine.low %v737_v44, %v745_v48  ;;  %v747_v53 = vcombine.high %v547_v49, %v547_v49  ;;  %v754_v54 = vrot.slane %v547_v49, %v5651_v16  ;;  %v5317_v55 = vpop.f32.mrb[15].mxu0 }
 0x107   : > { %5339 = vmatmul.mubr.msk.bf16.gmra.mrb[24].mxu0 %vm306_vm1, %v5698_v50 }
 0x108   : > { %v895_v57 = vrot.slane %v881_v52, %v5651_v16  ;;  %v897_v58 = vcombine.low %v744_v47, %v746_v51  ;;  %v761_v59 = vrot.slane %v747_v53, %v5651_v16  ;;  %v762_v60 = vcombine.high %v754_v54, %v754_v54  ;;  %5342 = vmatprep.mubr.msk.bf16.mxu0 %vm5511_vm0, %v7166_v1 }
 0x109   : > { %v552_v61 = vpop.f32.mrb[16].mxu0 }
 0x10a   : > { %v896_v62 = vcombine.low %v888_v56, %v895_v57  ;;  %v763_v63 = vcombine.high %v761_v59, %v761_v59  ;;  %v898_v0 = vcombine.low %v754_v54, %v762_v60  ;;  %v5320_v2 = vpop.f32.mrb[17].mxu0  ;;  %v770_v3 = vrot.slane %v552_v61, %v5651_v16 }
 0x10b   : > { %v905_v4 = vrot.slane %v897_v58, %v5651_v16 }
 0x10c   : > { %v912_v5 = vrot.slane %v898_v0, %v5651_v16  ;;  %v914_v7 = vcombine.low %v761_v59, %v763_v63  ;;  %v915_v8 = vcombine.low %v770_v3, %v5656_v26  ;;  %v5727_v26 = vpack.c.bf16 %v964_v25, %v964_v25 }
 0x10e   : > { %v913_v9 = vcombine.low %v905_v4, %v912_v5  ;;  %v922_v10 = vrot.slane %v914_v7, %v5651_v16  ;;  %v929_v11 = vrot.slane %v915_v8, %v5651_v16 }
 0x110   : > { %v5714_v12 = vpack.c.bf16 %v913_v9, %v896_v62  ;;  %v930_v14 = vcombine.low %v922_v10, %v929_v11 }
 0x112   : > { %5343 = vmatmul.mubr.msk.bf16.gmra.mrb[28].mxu0 %vm306_vm1, %v5714_v12  ;;  %v5721_v17 = vpack.c.bf16 %v5674_v6, %v930_v14  ;;  %v7168_v6 = vmov 0  }
 0x113   : > { %5346 = vmatprep.mubr.msk.bf16.mxu0 %vm5511_vm0, %v7166_v1  ;;  %1962 = vmatprep.mubr.bf16.mxu1 %v7168_v6 }
 0x114   : > { %5468 = vset.pattern.permute.xlu1 %v7168_v6  ;;  %5467 = vset.pattern.permute.xlu0 %v7168_v6 }
 0x11a   : > { %5347 = vmatmul.mubr.msk.bf16.gmra.mrb[32].mxu0 %vm306_vm1, %v5721_v17 }
 0x11b   : > { %5350 = vmatprep.mubr.msk.bf16.mxu0 %vm5511_vm0, %v7166_v1 }
 0x122   : > { %5351 = vmatmul.mubr.msk.bf16.gmra.mrb[36].mxu0 %vm306_vm1, %v5727_v26 }
 0x123   : > { %5378 = vmatprep.mubr.msk.bf16.mxu0 %vm5511_vm0, %v7166_v1 }
 0x12a   : > { %5379 = vmatmul.mubr.msk.bf16.vlgmr.msra.gmra.mrb[40].mxu0 %vm306_vm1, %v5682_v19 }
 0x12b   : > { %5382 = vmatprep.mubr.msk.bf16.mxu0 %vm5511_vm0, %v7166_v1 }
 0x132   : > { %5383 = vmatmul.mubr.msk.bf16.gmra.mrb[44].mxu0 %vm306_vm1, %v5698_v50 }
 0x133   : > { %5386 = vmatprep.mubr.msk.bf16.mxu0 %vm5511_vm0, %v7166_v1 }
 0x13a   : > { %5387 = vmatmul.mubr.msk.bf16.gmra.mrb[48].mxu0 %vm306_vm1, %v5714_v12 }
 0x13b   : > { %5390 = vmatprep.mubr.msk.bf16.mxu0 %vm5511_vm0, %v7166_v1 }
 0x142   : > { %5391 = vmatmul.mubr.msk.bf16.gmra.mrb[52].mxu0 %vm306_vm1, %v5721_v17 }
 0x143   : > { %5394 = vmatprep.mubr.msk.bf16.mxu0 %vm5511_vm0, %v7166_v1 }
 0x14a   : > { %5395 = vmatmul.mubr.msk.bf16.gmra.mrb[56].mxu0 %vm306_vm1, %v5727_v26 }
 0x14b   : > { %5057 = vmatprep.mubr.bf16.mxu0 %v7168_v6 }
 0x1cf   : > { %v1033_v18 = vpop.f32.mrb[20].mxu0 }
 0x1d0   : > { %v1080_v20 = vcombine.high %v1033_v18, %v1033_v18  ;;  %v1087_v21 = vrot.slane %v1033_v18, %v5651_v16  ;;  %v5336_v22 = vpop.f32.mrb[21].mxu0 }
 0x1d1   : > { %v1036_v23 = vpop.f32.mrb[22].mxu0 }
 0x1d2   : > { %v1094_v24 = vrot.slane %v1080_v20, %v5651_v16  ;;  %v1095_v25 = vcombine.high %v1087_v21, %v1087_v21  ;;  %v1097_v27 = vcombine.high %v1036_v23, %v1036_v23  ;;  %v1104_v28 = vrot.slane %v1036_v23, %v5651_v16  ;;  %v5337_v29 = vpop.f32.mrb[23].mxu0 }
 0x1d4   : > { %v1096_v30 = vcombine.high %v1094_v24, %v1094_v24  ;;  %v1111_v31 = vrot.slane %v1097_v27, %v5651_v16  ;;  %v1112_v32 = vcombine.high %v1104_v28, %v1104_v28  ;;  %v1233_v33 = vcombine.low %v1087_v21, %v1095_v25 }
 0x1d6   : > { %v1234_v34 = vcombine.low %v1094_v24, %v1096_v30  ;;  %v1113_v35 = vcombine.high %v1111_v31, %v1111_v31  ;;  %v1250_v36 = vcombine.low %v1104_v28, %v1112_v32  ;;  %v1241_v39 = vrot.slane %v1233_v33, %v5651_v16 }
 0x1d8   : > { %v1248_v37 = vrot.slane %v1234_v34, %v5651_v16  ;;  %v1251_v38 = vcombine.low %v1111_v31, %v1113_v35  ;;  %v1258_v40 = vrot.slane %v1250_v36, %v5651_v16 }
 0x1da   : > { %v1265_v41 = vrot.slane %v1251_v38, %v5651_v16  ;;  %v1041_v42 = vpop.f32.mrb[24].mxu0  ;;  %v1249_v46 = vcombine.low %v1241_v39, %v1248_v37 }
 0x1db   : > { %v1114_v43 = vcombine.high %v1041_v42, %v1041_v42  ;;  %v1121_v44 = vrot.slane %v1041_v42, %v5651_v16  ;;  %v5340_v45 = vpop.f32.mrb[25].mxu0 }
 0x1dc   : > { %v1266_v47 = vcombine.low %v1258_v40, %v1265_v41  ;;  %v1044_v48 = vpop.f32.mrb[26].mxu0 }
 0x1dd   : > { %v1128_v49 = vrot.slane %v1114_v43, %v5651_v16  ;;  %v1129_v51 = vcombine.high %v1121_v44, %v1121_v44  ;;  %v1273_v52 = vrot.slane %v1121_v44, %v5651_v16  ;;  %v1131_v53 = vcombine.high %v1044_v48, %v1044_v48  ;;  %v5341_v54 = vpop.f32.mrb[27].mxu0 }
 0x1de   : > { %v5766_v55 = vpack.c.bf16 %v1266_v47, %v1249_v46  ;;  %v1138_v56 = vrot.slane %v1044_v48, %v5651_v16  ;;  %v5514_v54 = vmov 1934713408  }
 0x1df   : > { %v1274_v57 = vcombine.low %v1129_v51, %v1128_v49  ;;  %v1410_v58 = vpack.c.bf16 %v1273_v52, %v1273_v52  ;;  %v1130_v59 = vcombine.high %v1128_v49, %v1128_v49  ;;  %v1145_v61 = vrot.slane %v1131_v53, %v5651_v16 }
 0x1e0   : > { %v2037_v60 = vrot.slane %v5766_v55, 1  ;;  %v1654_v62 = vshll.u32 %v5766_v55, 16  ;;  %v1146_v2 = vcombine.high %v1138_v56, %v1138_v56  ;;  %v1421_v4 = vshrl.u32 %v5766_v55, 16 }
 0x1e1   : > { %v1659_v63 = vshll.u32 %v1410_v58, 16  ;;  %v2038_v0 = vrot.slane %v1410_v58, 1  ;;  %v1275_v3 = vcombine.low %v1130_v59, %v1138_v56  ;;  %v1282_v7 = vrot.slane %v1274_v57, %v5651_v16 }
 0x1e2   : > { %v1656_v5 = vrot.slane %v1654_v62, 1  ;;  %v1291_v18 = vcombine.low %v1146_v2, %v1145_v61  ;;  %v1147_v21 = vcombine.high %v1145_v61, %v1145_v61  ;;  %v1472_v56 = vunpack.c.l.s4 %v5514_v54 }
 0x1e3   : > { %v5775_v8 = vsel %vm2036_vm3, %v2037_v60, %v2038_v0  ;;  %v1289_v9 = vrot.slane %v1275_v3, %v5651_v16  ;;  %v1661_v10 = vrot.slane %v1659_v63, 1 }
 0x1e4   : > { %v1657_v11 = vor.u32 %v1656_v5, %v1421_v4  ;;  %v1299_v33 = vrot.slane %v1291_v18, %v5651_v16 }
 0x1e5   : > { %v1290_v14 = vcombine.low %v1282_v7, %v1289_v9  ;;  %v1049_v20 = vpop.f32.mrb[28].mxu0 }
 0x1e6   : > { %v1148_v22 = vcombine.high %v1049_v20, %v1049_v20  ;;  %v1155_v23 = vrot.slane %v1049_v20, %v5651_v16  ;;  %v5344_v24 = vpop.f32.mrb[29].mxu0  ;;  %v5782_v25 = vsel %vm1652_vm4, %v1657_v11, %v1661_v10 }
 0x1e7   : > { %v1052_v27 = vpop.f32.mrb[30].mxu0 }
 0x1e8   : > { %v1162_v28 = vrot.slane %v1148_v22, %v5651_v16  ;;  %v1163_v29 = vcombine.high %v1155_v23, %v1155_v23  ;;  %v1292_v30 = vcombine.low %v1147_v21, %v1155_v23  ;;  %v1165_v31 = vcombine.high %v1052_v27, %v1052_v27  ;;  %v5345_v32 = vpop.f32.mrb[31].mxu0 }
 0x1e9   : > { %v1172_v34 = vrot.slane %v1052_v27, %v5651_v16  ;;  %v1473_v21 = vunpack.c.0.s8 %v1472_v56  ;;  %v5806_v22 = vpack.i.b16 %v7168_v6, %v7168_v6 }
 0x1ea   : > { %v1164_v35 = vcombine.high %v1162_v28, %v1162_v28  ;;  %v1306_v36 = vrot.slane %v1292_v30, %v5651_v16  ;;  %v1314_v37 = vrot.slane %v1163_v29, %v5651_v16  ;;  %v1179_v38 = vrot.slane %v1165_v31, %v5651_v16 }
 0x1eb   : > { %v1180_v39 = vcombine.high %v1172_v34, %v1172_v34 }
 0x1ec   : > { %v1307_v40 = vcombine.low %v1299_v33, %v1306_v36  ;;  %v1315_v41 = vcombine.low %v1162_v28, %v1164_v35  ;;  %v1412_v42 = vpack.c.bf16 %v1314_v37, %v1314_v37  ;;  %v1181_v43 = vcombine.high %v1179_v38, %v1179_v38 }
 0x1ed   : > { %v1316_v44 = vcombine.low %v1172_v34, %v1180_v39  ;;  %v1057_v45 = vpop.f32.mrb[32].mxu0 }
 0x1ee   : > { %v1323_v46 = vrot.slane %v1315_v41, %v5651_v16  ;;  %v5791_v47 = vpack.c.bf16 %v1307_v40, %v1290_v14  ;;  %v5348_v48 = vpop.f32.mrb[33].mxu0  ;;  %v1182_v51 = vcombine.high %v1057_v45, %v1057_v45  ;;  %v1189_v52 = vrot.slane %v1057_v45, %v5651_v16 }
 0x1ef   : > { %v1330_v49 = vrot.slane %v1316_v44, %v5651_v16  ;;  %v1060_v53 = vpop.f32.mrb[34].mxu0  ;;  %v2041_v58 = vrot.slane %v1412_v42, 1  ;;  %v1332_v63 = vcombine.low %v1179_v38, %v1181_v43  ;;  %v1669_v35 = vshll.u32 %v1412_v42, 16 }
 0x1f0   : > { %v2040_v57 = vrot.slane %v5791_v47, 1  ;;  %v1199_v59 = vcombine.high %v1060_v53, %v1060_v53  ;;  %v1206_v60 = vrot.slane %v1060_v53, %v5651_v16  ;;  %v5349_v61 = vpop.f32.mrb[35].mxu0  ;;  %v1196_v0 = vrot.slane %v1182_v51, %v5651_v16 }
 0x1f1   : > { %v1331_v62 = vcombine.low %v1323_v46, %v1330_v49  ;;  %v1197_v2 = vcombine.high %v1189_v52, %v1189_v52  ;;  %v1419_v9 = vpack.i.b16 %v5791_v47, %v5766_v55  ;;  %v1422_v18 = vshrl.u32 %v5791_v47, 16 }
 0x1f2   : > { %v2042_v3 = vsel %vm2036_vm3, %v2040_v57, %v2041_v58  ;;  %v1213_v5 = vrot.slane %v1199_v59, %v5651_v16  ;;  %v1214_v7 = vcombine.high %v1206_v60, %v1206_v60  ;;  %v1355_v11 = vrot.slane %v1196_v0, %v5651_v16 }
 0x1f3   : > { %v1333_v10 = vcombine.low %v1189_v52, %v1197_v2  ;;  %v1198_v14 = vcombine.high %v1196_v0, %v1196_v0  ;;  %v1340_v23 = vrot.slane %v1332_v63, %v5651_v16  ;;  %v5812_v29 = vpack.i.b16 %v1422_v18, %v1421_v4 }
 0x1f4   : > { %v1357_v20 = vcombine.low %v1214_v7, %v1213_v5  ;;  %v1215_v31 = vcombine.high %v1213_v5, %v1213_v5  ;;  %v1414_v37 = vpack.c.bf16 %v1355_v11, %v1355_v11  ;;  %v5821_v45 = vsub.s32 %v1473_v21, %v5648_v15 }
 0x1f5   : > { %v1347_v24 = vrot.slane %v1333_v10, %v5651_v16  ;;  %v1356_v27 = vcombine.low %v1198_v14, %v1206_v60  ;;  %v1065_v28 = vpop.f32.mrb[36].mxu0  ;;  %v1664_v46 = vshll.u32 %v5791_v47, 16  ;;  %v2053_v42 = vshrl.u32 %v5775_v8, 16 }
 0x1f6   : > { %v1371_v30 = vrot.slane %v1357_v20, %v5651_v16  ;;  %v1216_v32 = vcombine.high %v1065_v28, %v1065_v28  ;;  %v1223_v33 = vrot.slane %v1065_v28, %v5651_v16  ;;  %v5352_v34 = vpop.f32.mrb[37].mxu0  ;;  %v1439_v49 = vcombine.high %v1419_v9, %v5806_v22 }
 0x1f7   : > { %v1348_v36 = vcombine.low %v1340_v23, %v1347_v24  ;;  %v1364_v38 = vrot.slane %v1356_v27, %v5651_v16  ;;  %v1068_v39 = vpop.f32.mrb[38].mxu0  ;;  %v1697_v51 = vshrl.u32 %v5782_v25, 16  ;;  %v1671_v52 = vrot.slane %v1669_v35, 1 }
 0x1f8   : > { %v1230_v40 = vrot.slane %v1216_v32, %v5651_v16  ;;  %v1231_v41 = vcombine.high %v1223_v33, %v1223_v33  ;;  %v1373_v43 = vcombine.low %v1215_v31, %v1223_v33  ;;  %v5353_v55 = vpop.f32.mrb[39].mxu0  ;;  %v2044_v54 = vrot.slane %v1414_v37, 1 }
 0x1f9   : > { %v5818_v4 = vpack.c.bf16 %v1348_v36, %v1331_v62  ;;  %v1372_v44 = vcombine.low %v1364_v38, %v1371_v30  ;;  %v1666_v56 = vrot.slane %v1664_v46, 1  ;;  %v1679_v57 = vshll.u32 %v1414_v37, 16 }
 0x1fa   : > { %v1374_v48 = vcombine.low %v1231_v41, %v1230_v40  ;;  %v1381_v58 = vrot.slane %v1373_v43, %v5651_v16  ;;  %v2054_v60 = vshrl.u32 %v2042_v3, 16  ;;  %v5834_v62 = vrot.slane %v1419_v9, %v5651_v16 }
 0x1fb   : > { %v2043_v53 = vrot.slane %v5818_v4, 1  ;;  %v1667_v63 = vor.u32 %v1666_v56, %v1422_v18  ;;  %v5837_v0 = vpack.i.b16 %v2042_v3, %v5775_v8  ;;  %v5841_v11 = vrot.slane %v1439_v49, %v5651_v16 }
 0x1fc   : > { %v1388_v59 = vrot.slane %v1374_v48, %v5651_v16  ;;  %v1232_v14 = vcombine.high %v1230_v40, %v1230_v40  ;;  %v5845_v21 = vrot.slane %v5812_v29, %v5651_v16  ;;  %v5847_v9 = vpack.i.b16 %v2054_v60, %v2053_v42 }
 0x1fd   : > { %v5831_v47 = vsel %vm2036_vm3, %v2043_v53, %v2044_v54  ;;  %v3699_v61 = vpop.f32.mrb[40].mxu0  ;;  %v5850_v18 = vsel %vm1652_vm4, %v1667_v63, %v1671_v52  ;;  %v5852_v8 = vrot.slane %v1679_v57, 1  ;;  %v1505_v27 = vcombine.high %v5812_v29, %v5806_v22 }
 0x1fe   : > { %v1389_v2 = vcombine.low %v1381_v58, %v1388_v59  ;;  %v3746_v5 = vcombine.high %v3699_v61, %v3699_v61  ;;  %v3753_v7 = vrot.slane %v3699_v61, %v5651_v16  ;;  %v5380_v10 = vpop.f32.mrb[41].mxu0  ;;  %v1674_v32 = vshll.u32 %v5818_v4, 16 }
 0x1ff   : > { %v3702_v20 = vpop.f32.mrb[42].mxu0  ;;  %v1429_v35 = vshrl.u32 %v5818_v4, 16  ;;  %v1396_v37 = vrot.slane %v1232_v14, %v5651_v16  ;;  %v5876_v48 = vrot.slane %v1505_v27, %v5651_v16 }
 0x200   : > { %v5854_v3 = vpack.c.bf16 %v1389_v2, %v1372_v44  ;;  %v3760_v23 = vrot.slane %v3746_v5, %v5651_v16  ;;  %v5381_v24 = vpop.f32.mrb[43].mxu0  ;;  %v3761_v28 = vcombine.high %v3753_v7, %v3753_v7  ;;  %v3763_v30 = vcombine.high %v3702_v20, %v3702_v20 }
 0x201   : > { %v3770_v31 = vrot.slane %v3702_v20, %v5651_v16  ;;  %v1676_v42 = vrot.slane %v1674_v32, 1 }
 0x202   : > { %v3762_v33 = vcombine.high %v3760_v23, %v3760_v23  ;;  %v1427_v34 = vpack.i.b16 %v5854_v3, %v5818_v4  ;;  %v1430_v36 = vshrl.u32 %v5854_v3, 16  ;;  %v3899_v38 = vcombine.low %v3753_v7, %v3761_v28 }
 0x203   : > { %v3777_v39 = vrot.slane %v3763_v30, %v5651_v16  ;;  %v3778_v29 = vcombine.high %v3770_v31, %v3770_v31 }
 0x204   : > { %v3900_v40 = vcombine.low %v3760_v23, %v3762_v33  ;;  %v5868_v41 = vrot.slane %v1427_v34, %v5651_v16  ;;  %v1454_v43 = vcombine.high %v1427_v34, %v5806_v22  ;;  %v5873_v55 = vpack.i.b16 %v1430_v36, %v1429_v35 }
 0x205   : > { %v3779_v44 = vcombine.high %v3777_v39, %v3777_v39  ;;  %v3916_v4 = vcombine.low %v3770_v31, %v3778_v29  ;;  %v3707_v46 = vpop.f32.mrb[44].mxu0  ;;  %v3907_v49 = vrot.slane %v3899_v38, %v5651_v16 }
 0x206   : > { %v3780_v52 = vcombine.high %v3707_v46, %v3707_v46  ;;  %v3787_v53 = vrot.slane %v3707_v46, %v5651_v16  ;;  %v5384_v54 = vpop.f32.mrb[45].mxu0  ;;  %v1470_v56 = vcombine.high %v5834_v62, %v5868_v41  ;;  %v3914_v57 = vrot.slane %v3900_v40, %v5651_v16 }
 0x207   : > { %v3917_v58 = vcombine.low %v3777_v39, %v3779_v44  ;;  %v3710_v59 = vpop.f32.mrb[46].mxu0  ;;  %v1469_v60 = vcombine.low %v5834_v62, %v5868_v41  ;;  %v5886_v61 = vrot.slane %v1454_v43, %v5651_v16  ;;  %v3924_v63 = vrot.slane %v3916_v4, %v5651_v16 }
 0x208   : > { %v3794_v2 = vrot.slane %v3780_v52, %v5651_v16  ;;  %v3795_v5 = vcombine.high %v3787_v53, %v3787_v53  ;;  %v3939_v7 = vrot.slane %v3787_v53, %v5651_v16  ;;  %v5385_v10 = vpop.f32.mrb[47].mxu0  ;;  %v3797_v20 = vcombine.high %v3710_v59, %v3710_v59 }
 0x209   : > { %v3931_v14 = vrot.slane %v3917_v58, %v5651_v16  ;;  %v3804_v23 = vrot.slane %v3710_v59, %v5651_v16  ;;  %v5894_v24 = vrot.slane %v1470_v56, %v5821_v45  ;;  %v1486_v31 = vcombine.high %v5841_v11, %v5886_v61 }
 0x20a   : > { %v3940_v27 = vcombine.low %v3795_v5, %v3794_v2  ;;  %v4076_v28 = vpack.c.bf16 %v3939_v7, %v3939_v7  ;;  %v3796_v30 = vcombine.high %v3794_v2, %v3794_v2  ;;  %v3915_v32 = vcombine.low %v3907_v49, %v3914_v57 }
 0x20b   : > { %v3932_v33 = vcombine.low %v3924_v63, %v3931_v14  ;;  %v3811_v34 = vrot.slane %v3797_v20, %v5651_v16  ;;  %v3812_v38 = vcombine.high %v3804_v23, %v3804_v23  ;;  %1581 = vrot.lane.b32.xlu0 %v5894_v24, %s5515_s20  ;;  %v5901_v39 = vpack.c.bf16 %v1396_v37, %v1396_v37 }
 0x20c   : > { %v4371_v29 = vshll.u32 %v4076_v28, 16  ;;  %v3941_v40 = vcombine.low %v3796_v30, %v3804_v23  ;;  %v5903_v43 = vor.u32 %v1676_v42, %v1429_v35  ;;  %v5908_v4 = vrot.slane %v1486_v31, %v5821_v45 }
 0x20d   : > { %v5905_v44 = vpack.c.bf16 %v3932_v33, %v3915_v32  ;;  %v1485_v46 = vcombine.low %v5841_v11, %v5886_v61  ;;  %v3715_v49 = vpop.f32.mrb[48].mxu0  ;;  %v1684_v52 = vshll.u32 %v5854_v3, 16  ;;  %v3948_v53 = vrot.slane %v3940_v27, %v5651_v16 }
 0x20e   : > { %v3955_v37 = vrot.slane %v3941_v40, %v5651_v16  ;;  %v3957_v54 = vcombine.low %v3812_v38, %v3811_v34  ;;  %v3814_v56 = vcombine.high %v3715_v49, %v3715_v49  ;;  %v5388_v57 = vpop.f32.mrb[49].mxu0  ;;  %v4373_v42 = vrot.slane %v4371_v29, 1  ;;  %1602 = vrot.lane.b32.xlu1 %v5908_v4, %s5515_s20 }
 0x20f   : > { %v4366_v35 = vshll.u32 %v5905_v44, 16  ;;  %v4695_v58 = vrot.slane %v5905_v44, 1  ;;  %v4696_v59 = vrot.slane %v4076_v28, 1  ;;  %v3718_v11 = vpop.f32.mrb[50].mxu0  ;;  %v3813_v63 = vcombine.high %v3811_v34, %v3811_v34 }
 0x210   : > { %v3956_v61 = vcombine.low %v3948_v53, %v3955_v37  ;;  %v3821_v2 = vrot.slane %v3715_v49, %v5651_v16  ;;  %v3828_v5 = vrot.slane %v3814_v56, %v5651_v16  ;;  %v5389_v7 = vpop.f32.mrb[51].mxu0  ;;  %v4087_v10 = vshrl.u32 %v5905_v44, 16 }
 0x211   : > { %v4368_v14 = vrot.slane %v4366_v35, 1  ;;  %v5923_v20 = vsel %vm2036_vm3, %v4695_v58, %v4696_v59  ;;  %v1527_v23 = vrot.slane %v5873_v55, %v5651_v16  ;;  %v3965_v27 = vrot.slane %v3957_v54, %v5651_v16 }
 0x212   : > { %v3829_v28 = vcombine.high %v3821_v2, %v3821_v2  ;;  %v3830_v30 = vcombine.high %v3828_v5, %v3828_v5  ;;  %v3958_v31 = vcombine.low %v3813_v63, %v3821_v2  ;;  %v3831_v34 = vcombine.high %v3718_v11, %v3718_v11 }
 0x213   : > { %v4369_v32 = vor.u32 %v4368_v14, %v4087_v10  ;;  %v1535_v33 = vcombine.low %v5845_v21, %v1527_v23  ;;  %v3838_v38 = vrot.slane %v3718_v11, %v5651_v16  ;;  %v1520_v53 = vcombine.high %v5873_v55, %v5806_v22 }
 0x214   : > { %v3972_v29 = vrot.slane %v3958_v31, %v5651_v16  ;;  %v3980_v40 = vrot.slane %v3829_v28, %v5651_v16  ;;  %v3981_v49 = vcombine.low %v3828_v5, %v3830_v30  ;;  %v3845_v56 = vrot.slane %v3831_v34, %v5651_v16 }
 0x215   : > { %v5937_v37 = vsel %vm1652_vm4, %v4369_v32, %v4373_v42  ;;  %v5940_v54 = vrot.slane %v1535_v33, %v5821_v45  ;;  %v3846_v57 = vcombine.high %v3838_v38, %v3838_v38  ;;  %v3723_v35 = vpop.f32.mrb[52].mxu0  ;;  %v5946_v11 = vrot.slane %v1520_v53, %v5651_v16 }
 0x216   : > { %v3973_v58 = vcombine.low %v3965_v27, %v3972_v29  ;;  %v5943_v59 = vpack.c.bf16 %v3980_v40, %v3980_v40  ;;  %v5392_v63 = vpop.f32.mrb[53].mxu0  ;;  %v2061_v2 = vshrl.u32 %v5831_v47, 16  ;;  %v3989_v55 = vrot.slane %v3981_v49, %v5651_v16 }
 0x217   : > { %1572 = vrot.lane.b32.xlu0 %v5940_v54, %s5516_s21  ;;  %v3847_v42 = vcombine.high %v3845_v56, %v3845_v56  ;;  %v3982_v5 = vcombine.low %v3838_v38, %v3846_v57  ;;  %v5956_v7 = vrot.slane %v1469_v60, %v5821_v45  ;;  %v3726_v14 = vpop.f32.mrb[54].mxu0  ;;  %v1689_v27 = vshll.u32 %v5901_v39, 16 }
 0x218   : > { %v2047_v28 = vrot.slane %v5901_v39, 1  ;;  %v5960_v30 = vpack.c.bf16 %v3973_v58, %v3956_v61  ;;  %v1551_v31 = vcombine.low %v5876_v48, %v5946_v11  ;;  %v5393_v32 = vpop.f32.mrb[55].mxu0  ;;  %v1686_v33 = vrot.slane %v1684_v52, 1 }
 0x219   : > { %v3996_v34 = vrot.slane %v3982_v5, %v5651_v16  ;;  %v1501_v38 = vcombine.high %v5956_v7, %v7168_v6  ;;  %v5968_v62 = vrot.slane %v1485_v46, %v5821_v45  ;;  %v4699_v60 = vrot.slane %v5943_v59, 1 }
 0x21a   : > { %v4698_v41 = vrot.slane %v5960_v30, 1  ;;  %v5973_v61 = vrot.slane %v1551_v31, %v5821_v45  ;;  %v3848_v29 = vcombine.high %v3723_v35, %v3723_v35  ;;  %v3998_v49 = vcombine.low %v3845_v56, %v3847_v42 }
 0x21b   : > { %v3997_v40 = vcombine.low %v3989_v55, %v3996_v34  ;;  %1575 = vrot.lane.b32.xlu0 %v1501_v38, %s5517_s22  ;;  %v3855_v52 = vrot.slane %v3723_v35, %v5651_v16  ;;  %v1536_v53 = vcombine.high %v5845_v21, %v1527_v23  ;;  %v3865_v58 = vcombine.high %v3726_v14, %v3726_v14 }
 0x21c   : > { %v5979_v46 = vsel %vm2036_vm3, %v4698_v41, %v4699_v60  ;;  %1593 = vrot.lane.b32.xlu1 %v5973_v61, %s5516_s21  ;;  %v3862_v57 = vrot.slane %v3848_v29, %v5651_v16  ;;  %v3872_v63 = vrot.slane %v3726_v14, %v5651_v16  ;;  %v1503_v35 = vcombine.high %v5968_v62, %v7168_v6 }
 0x21d   : > { %v5987_v56 = vpack.i.b16 %v5979_v46, %v5923_v20  ;;  %v3863_v55 = vcombine.high %v3855_v52, %v3855_v52  ;;  %v1550_v21 = vrot.slane %v1536_v53, %v5821_v45  ;;  %v3731_v23 = vpop.f32.mrb[56].mxu0  ;;  %v3879_v31 = vrot.slane %v3865_v58, %v5651_v16 }
 0x21e   : > { %v4021_v42 = vrot.slane %v3862_v57, %v5651_v16  ;;  %v3864_v5 = vcombine.high %v3862_v57, %v3862_v57  ;;  %v3880_v32 = vcombine.high %v3872_v63, %v3872_v63  ;;  %v5396_v34 = vpop.f32.mrb[57].mxu0  ;;  %v1552_v14 = vcombine.high %v5876_v48, %v5946_v11 }
 0x21f   : > { %v3999_v38 = vcombine.low %v3855_v52, %v3863_v55  ;;  %1584 = vrot.lane.b32.xlu0 %v1550_v21, %s5518_s23  ;;  %v3882_v41 = vcombine.high %v3731_v23, %v3731_v23  ;;  %v3889_v60 = vrot.slane %v3731_v23, %v5651_v16  ;;  %v3734_v29 = vpop.f32.mrb[58].mxu0  ;;  %v1502_v53 = vcombine.high %v5894_v24, %v7168_v6 }
 0x220   : > { %v4006_v57 = vrot.slane %v3998_v49, %v5651_v16  ;;  %1596 = vrot.lane.b32.xlu1 %v1503_v35, %s5517_s22  ;;  %v4022_v58 = vcombine.low %v3864_v5, %v3872_v63  ;;  %v4023_v34 = vcombine.low %v3880_v32, %v3879_v31  ;;  %v5397_v52 = vpop.f32.mrb[59].mxu0  ;;  %v3881_v13 = vcombine.high %v3879_v31, %v3879_v31 }
 0x221   : > { %v4013_v55 = vrot.slane %v3999_v38, %v5651_v16  ;;  %v3896_v1 = vrot.slane %v3882_v41, %v5651_v16  ;;  %v3897_v48 = vcombine.high %v3889_v60, %v3889_v60  ;;  %v6004_v11 = vpack.c.bf16 %v4021_v42, %v4021_v42 }
 0x222   : > { %v4030_v23 = vrot.slane %v4022_v58, %v5651_v16  ;;  %v4037_v29 = vrot.slane %v4023_v34, %v5651_v16  ;;  %v1566_v24 = vrot.slane %v1552_v14, %v5821_v45  ;;  %v4039_v35 = vcombine.low %v3881_v13, %v3889_v60 }
 0x223   : > { %v4014_v49 = vcombine.low %v4006_v57, %v4013_v55  ;;  %1587 = vrot.lane.b32.xlu0 %v1502_v53, %s5519_s24  ;;  %v3898_v63 = vcombine.high %v3896_v1, %v3896_v1  ;;  %v4040_v5 = vcombine.low %v3897_v48, %v3896_v1  ;;  %v1687_v31 = vor.u32 %v1686_v33, %v1430_v36 }
 0x224   : > { %v4038_v32 = vcombine.low %v4030_v23, %v4037_v29  ;;  %1605 = vrot.lane.b32.xlu1 %v1566_v24, %s5518_s23  ;;  %v1567_v42 = vcombine.high %v5940_v54, %v7168_v6  ;;  %v6017_v38 = vrot.slane %v5847_v9, %v5651_v16  ;;  %v4047_v41 = vrot.slane %v4039_v35, %v5651_v16 }
 0x225   : > { %v6019_v14 = vpack.c.bf16 %v4014_v49, %v3997_v40  ;;  %v4054_v13 = vrot.slane %v4040_v5, %v5651_v16  ;;  %v4062_v1 = vrot.slane %v3898_v63, %v5651_v16  ;;  %v1691_v36 = vrot.slane %v1689_v27, 1 }
 0x226   : > { %v1504_v33 = vcombine.high %v5908_v4, %v7168_v6  ;;  %v4702_v54 = vrot.slane %v6004_v11, 1  ;;  %v2046_v60 = vrot.slane %v5854_v3, 1  ;;  %v1682_v58 = vsel %vm1652_vm4, %v5903_v43, %v5852_v8 }
 0x227   : > { %v4701_v53 = vrot.slane %v6019_v14, 1  ;;  %v4055_v40 = vcombine.low %v4047_v41, %v4054_v13  ;;  %v6031_v57 = vpack.c.bf16 %v4062_v1, %v4062_v1  ;;  %1578 = vrot.lane.b32.xlu0 %v1567_v42, %s5520_s25  ;;  %v1569_v4 = vcombine.high %v5973_v61, %v7168_v6 }
 0x228   : > { %1608 = vrot.lane.b32.xlu1 %v1504_v33, %s5519_s24  ;;  %v2048_v3 = vsel %vm2036_vm3, %v2046_v60, %v2047_v28  ;;  %v1692_v27 = vsel %vm1652_vm4, %v1687_v31, %v1691_v36  ;;  %v1695_v34 = vpack.i.b16 %v5850_v18, %v5782_v25  ;;  %v1568_v8 = vcombine.high %v1550_v21, %v7168_v6 }
 0x229   : > { %v6047_v52 = vsel %vm2036_vm3, %v4701_v53, %v4702_v54  ;;  %v6049_v55 = vpack.c.bf16 %v4055_v40, %v4038_v32  ;;  %v1570_v43 = vcombine.high %v1566_v24, %v7168_v6  ;;  %v4705_v61 = vrot.slane %v6031_v57, 1 }
 0x22a   : > { %v2062_v48 = vshrl.u32 %v2048_v3, 16  ;;  %v2131_v39 = vcombine.high %v5847_v9, %v5806_v22  ;;  %v1703_v28 = vpack.i.b16 %v1692_v27, %v1682_v58  ;;  %v1716_v29 = vrot.slane %v1695_v34, %v5651_v16 }
 0x22b   : > { %v4704_v23 = vrot.slane %v6049_v55, 1  ;;  %1590 = vrot.lane.b32.xlu0 %v1568_v8, %s5521_s29  ;;  %v1698_v49 = vshrl.u32 %v5850_v18, 16  ;;  %v1705_v63 = vshrl.u32 %v1682_v58, 16  ;;  %v1706_v35 = vshrl.u32 %v1692_v27, 16 }
 0x22c   : > { %1599 = vrot.lane.b32.xlu1 %v1569_v4, %s5520_s25  ;;  %v2063_v21 = vpack.i.b16 %v2062_v48, %v2061_v2  ;;  %v1731_v24 = vrot.slane %v1703_v28, %v5651_v16  ;;  %v1709_v9 = vcombine.high %v1695_v34, %v5806_v22  ;;  %v1724_v32 = vcombine.high %v1703_v28, %v5806_v22 }
 0x22d   : > { %v6066_v5 = vsel %vm2036_vm3, %v4704_v23, %v4705_v61  ;;  %v1699_v31 = vpack.i.b16 %v1698_v49, %v1697_v51  ;;  %v2059_v18 = vpack.i.b16 %v2048_v3, %v5831_v47  ;;  %v1707_v1 = vpack.i.b16 %v1706_v35, %v1705_v63 }
 0x22e   : > { %v6073_v42 = vrot.slane %v2063_v21, %v5651_v16  ;;  %v2146_v2 = vcombine.high %v2063_v21, %v5806_v22  ;;  %v1740_v41 = vcombine.high %v1716_v29, %v1731_v24  ;;  %v1739_v13 = vcombine.low %v1716_v29, %v1731_v24 }
 0x22f   : > { %v1723_v36 = vrot.slane %v1709_v9, %v5651_v16  ;;  %v1738_v33 = vrot.slane %v1724_v32, %v5651_v16  ;;  %v6082_v51 = vrot.slane %v2131_v39, %v5651_v16  ;;  %v1782_v54 = vrot.slane %v1699_v31, %v5651_v16 }
 0x230   : > { %1611 = vrot.lane.b32.xlu1 %v1570_v43, %s5521_s29  ;;  %v2161_v25 = vcombine.low %v6017_v38, %v6073_v42  ;;  %v6085_v47 = vrot.slane %v2146_v2, %v5651_v16  ;;  %v1797_v60 = vrot.slane %v1707_v1, %v5651_v16  ;;  %v1775_v58 = vcombine.high %v1699_v31, %v5806_v22 }
 0x231   : > { %v1756_v53 = vcombine.high %v1723_v36, %v1738_v33  ;;  %v1755_v40 = vcombine.low %v1723_v36, %v1738_v33  ;;  %v6096_v27 = vrot.slane %v1739_v13, %v5821_v45  ;;  %v1790_v61 = vcombine.high %v1707_v1, %v5806_v22 }
 0x232   : > { %v6091_v4 = vrot.slane %v2161_v25, %v5821_v45  ;;  %v2177_v3 = vcombine.low %v6082_v51, %v6085_v47  ;;  %v1805_v34 = vcombine.low %v1782_v54, %v1797_v60  ;;  %v1806_v8 = vcombine.high %v1782_v54, %v1797_v60 }
 0x233   : > { %v1754_v48 = vrot.slane %v1740_v41, %v5821_v45  ;;  %v6106_v39 = vrot.slane %v1775_v58, %v5651_v16  ;;  %v6110_v28 = vrot.slane %v5837_v0, %v5651_v16  ;;  %v1804_v23 = vrot.slane %v1790_v61, %v5651_v16 }
 0x234   : > { %2198 = vrot.lane.b32.xlu0 %v6091_v4, %s5516_s21  ;;  %v6101_v43 = vrot.slane %v2177_v3, %v5821_v45  ;;  %v6116_v29 = vrot.slane %v2059_v18, %v5651_v16  ;;  %v2065_v49 = vcombine.high %v5837_v0, %v5806_v22  ;;  %v2080_v63 = vcombine.high %v2059_v18, %v5806_v22 }
 0x235   : > { %v1771_v21 = vcombine.high %v6096_v27, %v7168_v6  ;;  %v1822_v24 = vcombine.high %v6106_v39, %v1804_v23  ;;  %v1821_v35 = vcombine.low %v6106_v39, %v1804_v23  ;;  %v1813_v41 = vrot.slane %v1805_v34, %v5821_v45 }
 0x236   : > { %2219 = vrot.lane.b32.xlu1 %v6101_v43, %s5516_s21  ;;  %v2095_v9 = vcombine.low %v6110_v28, %v6116_v29  ;;  %v6129_v31 = vrot.slane %v2065_v49, %v5651_v16  ;;  %v6132_v32 = vrot.slane %v2080_v63, %v5651_v16  ;;  %v4085_v13 = vpack.i.b16 %v5960_v30, %v5905_v44 }
 0x237   : > { %v6145_v1 = vrot.slane %v1755_v40, %v5821_v45  ;;  %v1770_v25 = vrot.slane %v1756_v53, %v5821_v45  ;;  %v4381_v54 = vshll.u32 %v5943_v59, 16  ;;  %v4391_v60 = vshll.u32 %v6004_v11, 16 }
 0x238   : > { %1851 = vrot.lane.b32.xlu0 %v1754_v48, %s5515_s20  ;;  %v2111_v36 = vcombine.low %v6129_v31, %v6132_v32  ;;  %v4401_v58 = vshll.u32 %v6031_v57, 16  ;;  %v1820_v40 = vrot.slane %v1806_v8, %v5821_v45  ;;  %v1772_v3 = vcombine.high %v1754_v48, %v7168_v6 }
 0x239   : > { %v4093_v34 = vpack.i.b16 %v6049_v55, %v6019_v14  ;;  %v4099_v61 = vcombine.high %v4085_v13, %v5806_v22  ;;  %v1773_v53 = vcombine.high %v6145_v1, %v7168_v6  ;;  %v6165_v59 = vrot.slane %v4085_v13, %v5651_v16 }
 0x23a   : > { %1845 = vrot.lane.b32.xlu1 %v1771_v21, %s5517_s22  ;;  %v4088_v11 = vshrl.u32 %v5960_v30, 16  ;;  %v4095_v57 = vshrl.u32 %v6019_v14, 16  ;;  %v4096_v23 = vshrl.u32 %v6049_v55, 16  ;;  %v4376_v63 = vshll.u32 %v5960_v30, 16 }
 0x23b   : > { %v6171_v8 = vrot.slane %v4093_v34, %v5651_v16  ;;  %v6174_v48 = vrot.slane %v4099_v61, %v5651_v16  ;;  %v4114_v39 = vcombine.high %v4093_v34, %v5806_v22  ;;  %v4386_v21 = vshll.u32 %v6019_v14, 16 }
 0x23c   : > { %1842 = vrot.lane.b32.xlu0 %v1813_v41, %s5516_s21  ;;  %v4089_v49 = vpack.i.b16 %v4088_v11, %v4087_v10  ;;  %v4396_v13 = vshll.u32 %v6049_v55, 16  ;;  %v4097_v34 = vpack.i.b16 %v4096_v23, %v4095_v57  ;;  %v1836_v44 = vrot.slane %v1822_v24, %v5821_v45 }
 0x23d   : > { %v6187_v61 = vrot.slane %v4114_v39, %v5651_v16  ;;  %v4378_v10 = vrot.slane %v4376_v63, 1  ;;  %v4388_v30 = vrot.slane %v4386_v21, 1  ;;  %v4383_v2 = vrot.slane %v4381_v54, 1 }
 0x23e   : > { %1872 = vrot.lane.b32.xlu1 %v1770_v25, %s5515_s20  ;;  %v4398_v33 = vrot.slane %v4396_v13, 1  ;;  %v6196_v55 = vrot.slane %v4089_v49, %v5651_v16  ;;  %v4165_v39 = vcombine.high %v4089_v49, %v5806_v22  ;;  %v4180_v24 = vcombine.high %v4097_v34, %v5806_v22 }
 0x23f   : > { %v4379_v18 = vor.u32 %v4378_v10, %v4088_v11  ;;  %v1829_v63 = vrot.slane %v1821_v35, %v5821_v45  ;;  %v4389_v21 = vor.u32 %v4388_v30, %v4095_v57  ;;  %v4145_v54 = vcombine.low %v6174_v48, %v6187_v61 }
 0x240   : > { %1854 = vrot.lane.b32.xlu0 %v1820_v40, %s5518_s23  ;;  %v4399_v13 = vor.u32 %v4398_v33, %v4096_v23  ;;  %v6208_v14 = vrot.slane %v4165_v39, %v5651_v16  ;;  %v6211_v0 = vrot.slane %v4180_v24, %v5651_v16  ;;  %v4393_v49 = vrot.slane %v4391_v60, 1 }
 0x241   : > { %v1774_v35 = vcombine.high %v1770_v25, %v7168_v6  ;;  %v4384_v33 = vsel %vm1652_vm4, %v4379_v18, %v4383_v2  ;;  %v1837_v10 = vcombine.high %v1813_v41, %v7168_v6  ;;  %v4409_v25 = vshrl.u32 %v5937_v37, 16 }
 0x242   : > { %1866 = vrot.lane.b32.xlu1 %v1773_v53, %s5517_s22  ;;  %v6199_v53 = vrot.slane %v4097_v34, %v5651_v16  ;;  %v4403_v34 = vrot.slane %v4401_v58, 1  ;;  %v4211_v57 = vcombine.low %v6208_v14, %v6211_v0  ;;  %v4394_v30 = vsel %vm1652_vm4, %v4389_v21, %v4393_v49 }
 0x243   : > { %v1839_v58 = vcombine.high %v1829_v63, %v7168_v6  ;;  %v4410_v18 = vshrl.u32 %v4384_v33, 16  ;;  %v4417_v2 = vshrl.u32 %v4394_v30, 16  ;;  %v4407_v24 = vpack.i.b16 %v4384_v33, %v5937_v37 }
 0x244   : > { %1857 = vrot.lane.b32.xlu0 %v1772_v3, %s5519_s24  ;;  %v4195_v3 = vcombine.low %v6196_v55, %v6199_v53  ;;  %v4196_v11 = vcombine.high %v6196_v55, %v6199_v53  ;;  %v4404_v60 = vsel %vm1652_vm4, %v4399_v13, %v4403_v34  ;;  %v1838_v23 = vcombine.high %v1820_v40, %v7168_v6 }
 0x245   : > { %v4418_v39 = vshrl.u32 %v4404_v60, 16  ;;  %v6237_v41 = vrot.slane %v2095_v9, %v5821_v45  ;;  %v4415_v21 = vpack.i.b16 %v4404_v60, %v4394_v30  ;;  %v4411_v13 = vpack.i.b16 %v4410_v18, %v4409_v25 }
 0x246   : > { %1875 = vrot.lane.b32.xlu1 %v1836_v44, %s5518_s23  ;;  %v4421_v34 = vcombine.high %v4407_v24, %v5806_v22  ;;  %v6246_v37 = vrot.slane %v2111_v36, %v5821_v45  ;;  %v6249_v40 = vrot.slane %v4407_v24, %v5651_v16 }
 0x247   : > { %v4419_v49 = vpack.i.b16 %v4418_v39, %v4417_v2  ;;  %v6252_v9 = vrot.slane %v4415_v21, %v5651_v16  ;;  %v4712_v39 = vshrl.u32 %v5979_v46, 16  ;;  %v2193_v46 = vcombine.high %v6091_v4, %v7168_v6 }
 0x248   : > { %1863 = vrot.lane.b32.xlu0 %v1829_v63, %s5516_s21  ;;  %v1840_v63 = vcombine.high %v1836_v44, %v7168_v6  ;;  %v6257_v44 = vrot.slane %v4411_v13, %v5651_v16  ;;  %v6267_v60 = vrot.slane %v4421_v34, %v5651_v16  ;;  %v4720_v34 = vshrl.u32 %v6066_v5, 16 }
 0x249   : > { %v6260_v33 = vrot.slane %v4419_v49, %v5651_v16  ;;  %v4502_v36 = vcombine.high %v4419_v49, %v5806_v22  ;;  %v4451_v30 = vcombine.low %v6249_v40, %v6252_v9  ;;  %v7181_v4 = vcombine.high %v6110_v28, %v6116_v29 }
 0x24a   : > { %1878 = vrot.lane.b32.xlu1 %v1774_v35, %s5519_s24  ;;  %v4436_v35 = vcombine.high %v4415_v21, %v5806_v22  ;;  %v2129_v21 = vcombine.high %v6246_v37, %v7168_v6  ;;  %v4723_v28 = vcombine.high %v5987_v56, %v5806_v22 }
 0x24b   : > { %v4517_v25 = vcombine.low %v6257_v44, %v6260_v33  ;;  %v6281_v2 = vrot.slane %v4502_v36, %v5651_v16 }
 0x24c   : > { %1848 = vrot.lane.b32.xlu0 %v1837_v10, %s5520_s25  ;;  %v4487_v10 = vcombine.high %v4411_v13, %v5806_v22  ;;  %v4711_v13 = vshrl.u32 %v5923_v20, 16  ;;  %v4719_v20 = vshrl.u32 %v6047_v52, 16 }
 0x24e   : > { %1869 = vrot.lane.b32.xlu1 %v1839_v58, %s5520_s25  ;;  %v6270_v58 = vrot.slane %v4436_v35, %v5651_v16  ;;  %v6278_v18 = vrot.slane %v4487_v10, %v5651_v16  ;;  %v4713_v36 = vpack.i.b16 %v4712_v39, %v4711_v13  ;;  %v2110_v35 = vrot.slane %v7181_v4, %v5821_v45 }
 0x24f   : > { %v4721_v10 = vpack.i.b16 %v4720_v34, %v4719_v20  ;;  %v4717_v39 = vpack.i.b16 %v6066_v5, %v6047_v52  ;;  %v7182_v13 = vcombine.high %v6129_v31, %v6132_v32  ;;  %v7183_v32 = vcombine.high %v6017_v38, %v6073_v42 }
 0x250   : > { %1860 = vrot.lane.b32.xlu0 %v1838_v23, %s5521_s29  ;;  %v2127_v23 = vcombine.high %v6237_v41, %v7168_v6  ;;  %v4467_v24 = vcombine.low %v6267_v60, %v6270_v58 }
 0x251   : > { %v6331_v29 = vrot.slane %v4721_v10, %v5651_v16  ;;  %v4804_v52 = vcombine.high %v4721_v10, %v5806_v22  ;;  %v6335_v5 = vrot.slane %v4717_v39, %v5651_v16  ;;  %v4738_v31 = vcombine.high %v4717_v39, %v5806_v22 }
 0x252   : > { %1881 = vrot.lane.b32.xlu1 %v1840_v63, %s5521_s29  ;;  %v4533_v63 = vcombine.low %v6278_v18, %v6281_v2  ;;  %v2176_v34 = vrot.slane %v7183_v32, %v5821_v45  ;;  %v7187_v39 = vcombine.high %v6082_v51, %v6085_v47  ;;  %v7188_v32 = vcombine.high %v6165_v59, %v6171_v8 }
 0x253   : > { %v6352_v20 = vrot.slane %v4804_v52, %v5651_v16  ;;  %v6357_v38 = vrot.slane %v4738_v31, %v5651_v16 }
 0x254   : > { %2201 = vrot.lane.b32.xlu0 %v2127_v23, %s5517_s22  ;;  %v2195_v23 = vcombine.high %v6101_v43, %v7168_v6  ;;  %v2126_v43 = vrot.slane %v7182_v13, %v5821_v45  ;;  %v2192_v13 = vrot.slane %v7187_v39, %v5821_v45  ;;  %v2194_v47 = vcombine.high %v2176_v34, %v7168_v6 }
 0x255   : > { %7185 = vst [vmem:[#allocation5_spill] sm:$0xff] %v6352_v20  ;;  %7186 = vst [vmem:[#allocation6_spill] sm:$0xff] %v6357_v38  ;;  %v4144_v31 = vrot.slane %v7188_v32, %v5821_v45  ;;  %v4219_v32 = vrot.slane %v4211_v57, %v5821_v45 }
 0x256   : > { %2222 = vrot.lane.b32.xlu1 %v2129_v21, %s5517_s22  ;;  %v4789_v21 = vcombine.high %v4713_v36, %v5806_v22  ;;  %v2130_v51 = vcombine.high %v2126_v43, %v7168_v6  ;;  %v2196_v39 = vcombine.high %v2192_v13, %v7168_v6 }
 0x257   : > { %v4229_v53 = vcombine.high %v4219_v32, %v7168_v6 }
 0x258   : > { %2204 = vrot.lane.b32.xlu0 %v2193_v46, %s5520_s25  ;;  %v6321_v46 = vrot.slane %v4713_v36, %v5651_v16  ;;  %v6343_v36 = vrot.slane %v4789_v21, %v5651_v16  ;;  %v2128_v21 = vcombine.high %v2110_v35, %v7168_v6 }
 0x25a   : > { %2225 = vrot.lane.b32.xlu1 %v2195_v23, %s5520_s25  ;;  %v6325_v23 = vrot.slane %v5987_v56, %v5651_v16  ;;  %v6346_v56 = vrot.slane %v4723_v28, %v5651_v16 }
 0x25c   : > { %2207 = vrot.lane.b32.xlu0 %v2110_v35, %s5515_s20  ;;  %7184 = vst [vmem:[#allocation4_spill] sm:$0xff] %v6346_v56  ;;  %v7189_v35 = vcombine.high %v6174_v48, %v6187_v61  ;;  %v7191_v48 = vcombine.high %v6208_v14, %v6211_v0 }
 0x25e   : > { %2228 = vrot.lane.b32.xlu1 %v2126_v43, %s5515_s20  ;;  %v4160_v43 = vrot.slane %v7189_v35, %v5821_v45  ;;  %v4226_v61 = vrot.slane %v7191_v48, %v5821_v45 }
 0x260   : > { %2210 = vrot.lane.b32.xlu0 %v2176_v34, %s5518_s23  ;;  %v4203_v34 = vrot.slane %v4195_v3, %v5821_v45  ;;  %v4210_v3 = vrot.slane %v4196_v11, %v5821_v45  ;;  %v4164_v57 = vcombine.high %v4160_v43, %v7168_v6  ;;  %v4230_v11 = vcombine.high %v4226_v61, %v7168_v6 }
 0x262   : > { %2231 = vrot.lane.b32.xlu1 %v2192_v13, %s5518_s23  ;;  %v4227_v55 = vcombine.high %v4203_v34, %v7168_v6  ;;  %v4228_v0 = vcombine.high %v4210_v3, %v7168_v6 }
 0x264   : > { %2213 = vrot.lane.b32.xlu0 %v2128_v21, %s5519_s24  ;;  %v7190_v21 = vcombine.low %v6165_v59, %v6171_v8 }
 0x266   : > { %2234 = vrot.lane.b32.xlu1 %v2130_v51, %s5519_s24  ;;  %v6403_v13 = vrot.slane %v7190_v21, %v5821_v45  ;;  %v6414_v51 = vrot.slane %v4145_v54, %v5821_v45  ;;  %v4162_v54 = vcombine.high %v4144_v31, %v7168_v6 }
 0x268   : > { %2216 = vrot.lane.b32.xlu0 %v2194_v47, %s5521_s29  ;;  %v4161_v59 = vcombine.high %v6403_v13, %v7168_v6  ;;  %v4163_v8 = vcombine.high %v6414_v51, %v7168_v6  ;;  %v6455_v47 = vrot.slane %v4451_v30, %v5821_v45 }
 0x26a   : > { %2237 = vrot.lane.b32.xlu1 %v2196_v39, %s5521_s29  ;;  %7192 = vst [vmem:[#allocation7_spill] sm:$0xff] %v6455_v47  ;;  %v6463_v39 = vrot.slane %v4533_v63, %v5821_v45  ;;  %v4483_v30 = vcombine.high %v6455_v47, %v7168_v6 }
 0x26c   : > { %4241 = vrot.lane.b32.xlu0 %v4144_v31, %s5515_s20  ;;  %v6449_v31 = vrot.slane %v4517_v25, %v5821_v45  ;;  %v6469_v25 = vrot.slane %v4467_v24, %v5821_v45 }
 0x26e   : > { %4262 = vrot.lane.b32.xlu1 %v4160_v43, %s5515_s20  ;;  %7193 = vst [vmem:[#allocation8_spill] sm:$0xff] %v6469_v25  ;;  %v4485_v63 = vcombine.high %v6469_v25, %v7168_v6 }
 0x270   : > { %4232 = vrot.lane.b32.xlu0 %v4203_v34, %s5516_s21 }
 0x272   : > { %4253 = vrot.lane.b32.xlu1 %v4219_v32, %s5516_s21 }
 0x274   : > { %4235 = vrot.lane.b32.xlu0 %v4161_v59, %s5517_s22 }
 0x276   : > { %4256 = vrot.lane.b32.xlu1 %v4163_v8, %s5517_s22 }
 0x278   : > { %4244 = vrot.lane.b32.xlu0 %v4210_v3, %s5518_s23 }
 0x27a   : > { %4265 = vrot.lane.b32.xlu1 %v4226_v61, %s5518_s23 }
 0x27c   : > { %4247 = vrot.lane.b32.xlu0 %v4162_v54, %s5519_s24 }
 0x27d   : > { %v1582_v14 = vpop.permute.xlu0 %1581 }
 0x27e   : > { %4268 = vrot.lane.b32.xlu1 %v4164_v57, %s5519_s24 }
 0x280   : > { %4238 = vrot.lane.b32.xlu0 %v4227_v55, %s5520_s25  ;;  %v1603_v35 = vpop.permute.xlu1 %1602 }
 0x282   : > { %4259 = vrot.lane.b32.xlu1 %v4229_v53, %s5520_s25 }
 0x284   : > { %4250 = vrot.lane.b32.xlu0 %v4228_v0, %s5521_s29 }
 0x286   : > { %4271 = vrot.lane.b32.xlu1 %v4230_v11, %s5521_s29 }
 0x288   : > { %4554 = vrot.lane.b32.xlu0 %v6449_v31, %s5516_s21 }
 0x289   : > { %v1573_v43 = vpop.permute.xlu0 %1572 }
 0x28a   : > { %4575 = vrot.lane.b32.xlu1 %v6463_v39, %s5516_s21  ;;  %v1616_v10 = vsel %vm1613_vm5, %v5956_v7, %v1573_v43 }
 0x28c   : > { %4557 = vrot.lane.b32.xlu0 %v4483_v30, %s5517_s22 }
 0x28d   : > { %v1576_v34 = vpop.permute.xlu0 %1575 }
 0x28e   : > { %4578 = vrot.lane.b32.xlu1 %v4485_v63, %s5517_s22  ;;  %v1594_v21 = vpop.permute.xlu1 %1593  ;;  %v1619_v6 = vsel %vm1617_vm6, %v1616_v10, %v1576_v34 }
 0x28f   : > { %v1637_v49 = vsel %vm1613_vm5, %v5968_v62, %v1594_v21 }
 0x291   : > { %v1585_v32 = vpop.permute.xlu0 %1584 }
 0x292   : > { %v1597_v59 = vpop.permute.xlu1 %1596 }
 0x293   : > { %v1639_v15 = vsel %vm1617_vm6, %v1637_v49, %v1597_v59 }
 0x295   : > { %v1588_v24 = vpop.permute.xlu0 %1587 }
 0x296   : > { %v1606_v8 = vpop.permute.xlu1 %1605 }
 0x299   : > { %v1579_v48 = vpop.permute.xlu0 %1578 }
 0x29a   : > { %v1609_v3 = vpop.permute.xlu1 %1608  ;;  %v1622_v25 = vsel %vm1620_vm7, %v1619_v6, %v1579_v48 }
 0x29b   : > { %v1625_v43 = vsel %vm1623_vm8, %v1622_v25, %v1582_v14 }
 0x29c   : > { %v1628_v21 = vsel %vm1626_vm9, %v1625_v43, %v1585_v32 }
 0x29d   : > { %v1591_v54 = vpop.permute.xlu0 %1590  ;;  %v1631_v48 = vsel %vm1629_vm10, %v1628_v21, %v1588_v24 }
 0x29e   : > { %v1600_v61 = vpop.permute.xlu1 %1599 }
 0x29f   : > { %v1641_v38 = vsel %vm1620_vm7, %v1639_v15, %v1600_v61 }
 0x2a0   : > { %v1643_v62 = vsel %vm1623_vm8, %v1641_v38, %v1603_v35 }
 0x2a2   : > { %v1612_v57 = vpop.permute.xlu1 %1611 }
 0x2a6   : > { %v6479_v55 = vpop.permute.xlu0 %2198 }
 0x2a8   : > { %v6481_v53 = vpop.permute.xlu1 %2219 }
 0x2aa   : > { %v1852_v0 = vpop.permute.xlu0 %1851 }
 0x2ac   : > { %v1846_v11 = vpop.permute.xlu1 %1845 }
 0x2ae   : > { %v1843_v30 = vpop.permute.xlu0 %1842 }
 0x2af   : > { %v1885_v56 = vsel %vm1613_vm5, %v6096_v27, %v1843_v30  ;;  %v7194_v30 = vmov 0  }
 0x2b0   : > { %v1873_v42 = vpop.permute.xlu1 %1872  ;;  %v1887_v49 = vsel %vm1617_vm6, %v1885_v56, %v1846_v11 }
 0x2b2   : > { %v1855_v52 = vpop.permute.xlu0 %1854 }
 0x2b4   : > { %v1867_v63 = vpop.permute.xlu1 %1866 }
 0x2b6   : > { %v1858_v28 = vpop.permute.xlu0 %1857 }
 0x2b8   : > { %v1876_v4 = vpop.permute.xlu1 %1875 }
 0x2ba   : > { %v1864_v47 = vpop.permute.xlu0 %1863 }
 0x2bb   : > { %v1900_v7 = vsel %vm1613_vm5, %v6145_v1, %v1864_v47  ;;  %v1645_v1 = vsel %vm1626_vm9, %v1643_v62, %v1606_v8 }
 0x2bc   : > { %v1879_v20 = vpop.permute.xlu1 %1878  ;;  %v1902_v6 = vsel %vm1617_vm6, %v1900_v7, %v1867_v63  ;;  %v1647_v32 = vsel %vm1629_vm10, %v1645_v1, %v1609_v3 }
 0x2bd   : > { %v1649_v24 = vsel %vm1632_vm11, %v1647_v32, %v1612_v57 }
 0x2be   : > { %v1849_v10 = vpop.permute.xlu0 %1848 }
 0x2bf   : > { %v1889_v34 = vsel %vm1620_vm7, %v1887_v49, %v1849_v10  ;;  %v2241_v10 = vsel %vm1613_vm5, %v6237_v41, %v6479_v55 }
 0x2c0   : > { %v1891_v15 = vsel %vm1623_vm8, %v1889_v34, %v1852_v0  ;;  %v1870_v27 = vpop.permute.xlu1 %1869 }
 0x2c1   : > { %v1904_v14 = vsel %vm1620_vm7, %v1902_v6, %v1870_v27  ;;  %v1893_v38 = vsel %vm1626_vm9, %v1891_v15, %v1855_v52  ;;  %v2256_v15 = vsel %vm1613_vm5, %v6246_v37, %v6481_v53 }
 0x2c2   : > { %v1906_v47 = vsel %vm1623_vm8, %v1904_v14, %v1873_v42  ;;  %v1861_v56 = vpop.permute.xlu0 %1860  ;;  %v1895_v35 = vsel %vm1629_vm10, %v1893_v38, %v1858_v28  ;;  %v5469_v28 = vld [vmem:[%s7160_s3 + $0x18] sm:$0xff]  }
 0x2c3   : > { %v1897_v25 = vsel %vm1632_vm11, %v1895_v35, %v1861_v56  ;;  %v1908_v59 = vsel %vm1626_vm9, %v1906_v47, %v1876_v4  ;;  %v1634_v4 = vsel %vm1632_vm11, %v1631_v48, %v1591_v54  ;;  %v5470_v54 = vld [vmem:[%s7160_s3] sm:$0xff]  }
 0x2c4   : > { %v1910_v8 = vsel %vm1629_vm10, %v1908_v59, %v1879_v20  ;;  %v1882_v61 = vpop.permute.xlu1 %1881  ;;  %v1926_v0 = vsel %vm1925_vm12, %v1897_v25, 0  ;;  %v1981_v3 = vsel %vm1925_vm12, %v1634_v4, 0  ;;  %v5206_v59 = vld [vmem:[%s7159_s2 + $0x4] sm:$0xf] }
 0x2c5   : > { %v1912_v52 = vsel %vm1632_vm11, %v1910_v8, %v1882_v61  ;;  %v5471_v8 = vld [vmem:[%s7160_s3 + $0x30] sm:$0xff]  }
 0x2c6   : > { %v2202_v42 = vpop.permute.xlu0 %2201  ;;  %5196 = vmatprep.subr.msk.bf16.mxu1 %vm1925_vm12, %v1912_v52  ;;  %v7195_v52 = vmov 0.0  }
 0x2c7   : > { %1931 = vmatpush1.bf16.msra.mxu1 %v1926_v0  ;;  %v2243_v49 = vsel %vm1617_vm6, %v2241_v10, %v2202_v42  ;;  %v2334_v0 = vsel %vm995_vm2, %v5206_v59, 0 }
 0x2c8   : > { %5199 = vmatprep.subr.msk.bf16.mxu1 %vm1925_vm12, %v1649_v24  ;;  %v2223_v20 = vpop.permute.xlu1 %2222 }
 0x2c9   : > { %v2258_v27 = vsel %vm1617_vm6, %v2256_v15, %v2223_v20 }
 0x2ca   : > { %v2205_v11 = vpop.permute.xlu0 %2204  ;;  %5197 = vmatmul.mubr.msk.bf16.vlgmr.msra.gmra.mrb[8].mxu1 %vm1921_vm13, %v5469_v28 }
 0x2cb   : > { %1986 = vmatpush1.bf16.msra.mxu1 %v1981_v3  ;;  %2017 = vmatprep.mubr.bf16.mxu1 %v7194_v30  ;;  %v2245_v6 = vsel %vm1620_vm7, %v2243_v49, %v2205_v11 }
 0x2cc   : > { %v2226_v63 = vpop.permute.xlu1 %2225 }
 0x2cd   : > { %v2260_v41 = vsel %vm1620_vm7, %v2258_v27, %v2226_v63 }
 0x2ce   : > { %v2208_v7 = vpop.permute.xlu0 %2207 }
 0x2cf   : > { %v2247_v21 = vsel %vm1623_vm8, %v2245_v6, %v2208_v7 }
 0x2d0   : > { %v2229_v43 = vpop.permute.xlu1 %2228 }
 0x2d1   : > { %v2262_v14 = vsel %vm1623_vm8, %v2260_v41, %v2229_v43 }
 0x2d2   : > { %v2211_v62 = vpop.permute.xlu0 %2210 }
 0x2d3   : > { %v2249_v55 = vsel %vm1626_vm9, %v2247_v21, %v2211_v62 }
 0x2d4   : > { %v2232_v57 = vpop.permute.xlu1 %2231 }
 0x2d5   : > { %v2264_v37 = vsel %vm1626_vm9, %v2262_v14, %v2232_v57 }
 0x2d6   : > { %v2214_v34 = vpop.permute.xlu0 %2213  ;;  %5200 = vmatmul.mubr.msk.bf16.vlgmr.msra.gmra.mrb[8].mxu1 %vm1921_vm13, %v5470_v54 }
 0x2d7   : > { %2316 = vmatprep.mubr.bf16.mxu1 %v7194_v30  ;;  %v2251_v38 = vsel %vm1629_vm10, %v2249_v55, %v2214_v34 }
 0x2d8   : > { %v2235_v1 = vpop.permute.xlu1 %2234 }
 0x2d9   : > { %v2266_v56 = vsel %vm1629_vm10, %v2264_v37, %v2235_v1 }
 0x2da   : > { %v2217_v47 = vpop.permute.xlu0 %2216 }
 0x2db   : > { %v2253_v53 = vsel %vm1632_vm11, %v2251_v38, %v2217_v47 }
 0x2dc   : > { %v2238_v35 = vpop.permute.xlu1 %2237  ;;  %v2280_v48 = vsel %vm1925_vm12, %v2253_v53, 0 }
 0x2dd   : > { %v2268_v25 = vsel %vm1632_vm11, %v2266_v56, %v2238_v35 }
 0x2de   : > { %5204 = vmatprep.subr.msk.bf16.mxu1 %vm1925_vm12, %v2268_v25  ;;  %v4242_v32 = vpop.permute.xlu0 %4241 }
 0x2df   : > { %2285 = vmatpush1.bf16.msra.mxu1 %v2280_v48 }
 0x2e0   : > { %v4263_v61 = vpop.permute.xlu1 %4262  ;;  %5354 = vmatprep.subr.bf16.mxu1 %v7195_v52 }
 0x2e2   : > { %5205 = vmatmul.mubr.msk.bf16.vlgmr.msra.gmra.mrb[8].mxu1 %vm1921_vm13, %v5471_v8  ;;  %v4233_v42 = vpop.permute.xlu0 %4232 }
 0x2e3   : > { %5355 = vmatpush3.bf16.msra.mxu1 %v2334_v0  ;;  %5356 = vmatprep.mubr.msk.bf16.mxu1 %vm5511_vm0, %v7195_v52  ;;  %v4275_v4 = vsel %vm1613_vm5, %v6403_v13, %v4233_v42 }
 0x2e4   : > { %v4254_v28 = vpop.permute.xlu1 %4253 }
 0x2e5   : > { %v4290_v3 = vsel %vm1613_vm5, %v6414_v51, %v4254_v28 }
 0x2e6   : > { %v4236_v24 = vpop.permute.xlu0 %4235 }
 0x2e7   : > { %v4277_v20 = vsel %vm1617_vm6, %v4275_v4, %v4236_v24 }
 0x2e8   : > { %v4257_v11 = vpop.permute.xlu1 %4256 }
 0x2e9   : > { %v4292_v63 = vsel %vm1617_vm6, %v4290_v3, %v4257_v11 }
 0x2ea   : > { %5357 = vmatmul.mubr.msk.bf16.vlgmr.msra.gmra.mrb[12].mxu1 %vm306_vm1, %v5682_v19  ;;  %v4245_v7 = vpop.permute.xlu0 %4244 }
 0x2eb   : > { %5360 = vmatprep.mubr.msk.bf16.mxu1 %vm5511_vm0, %v7195_v52 }
 0x2ec   : > { %v4266_v43 = vpop.permute.xlu1 %4265 }
 0x2ee   : > { %v4248_v62 = vpop.permute.xlu0 %4247 }
 0x2f0   : > { %v4269_v54 = vpop.permute.xlu1 %4268 }
 0x2f2   : > { %5361 = vmatmul.mubr.msk.bf16.gmra.mrb[16].mxu1 %vm306_vm1, %v5698_v50  ;;  %v4239_v13 = vpop.permute.xlu0 %4238 }
 0x2f3   : > { %v4279_v57 = vsel %vm1620_vm7, %v4277_v20, %v4239_v13  ;;  %5364 = vmatprep.mubr.msk.bf16.mxu1 %vm5511_vm0, %v7195_v52 }
 0x2f4   : > { %v4281_v51 = vsel %vm1623_vm8, %v4279_v57, %v4242_v32  ;;  %v4260_v10 = vpop.permute.xlu1 %4259 }
 0x2f5   : > { %v4294_v19 = vsel %vm1620_vm7, %v4292_v63, %v4260_v10  ;;  %v4283_v49 = vsel %vm1626_vm9, %v4281_v51, %v4245_v7 }
 0x2f6   : > { %v4296_v34 = vsel %vm1623_vm8, %v4294_v19, %v4263_v61  ;;  %v4285_v15 = vsel %vm1629_vm10, %v4283_v49, %v4248_v62  ;;  %v4251_v6 = vpop.permute.xlu0 %4250 }
 0x2f7   : > { %v6581_v50 = vsel %vm1632_vm11, %v4285_v15, %v4251_v6  ;;  %v4298_v27 = vsel %vm1626_vm9, %v4296_v34, %v4266_v43 }
 0x2f8   : > { %v4300_v21 = vsel %vm1629_vm10, %v4298_v27, %v4269_v54  ;;  %v4272_v1 = vpop.permute.xlu1 %4271 }
 0x2f9   : > { %v6586_v41 = vsel %vm1632_vm11, %v4300_v21, %v4272_v1 }
 0x2fa   : > { %5365 = vmatmul.mubr.msk.bf16.gmra.mrb[20].mxu1 %vm306_vm1, %v5714_v12 }
 0x2fb   : > { %5368 = vmatprep.mubr.msk.bf16.mxu1 %vm5511_vm0, %v7195_v52 }
 0x302   : > { %5369 = vmatmul.mubr.msk.bf16.gmra.mrb[24].mxu1 %vm306_vm1, %v5721_v17 }
 0x303   : > { %5372 = vmatprep.mubr.msk.bf16.mxu1 %vm5511_vm0, %v7195_v52 }
 0x30a   : > { %5373 = vmatmul.mubr.msk.bf16.gmra.mrb[28].mxu1 %vm306_vm1, %v5727_v26 }
 0x30b   : > { %3021 = vmatprep.mubr.bf16.mxu1 %v7194_v30 }
 0x3bd   : > { %v2370_v55 = vpop.f32.mrb[12].mxu1 }
 0x3be   : > { %v2417_v14 = vcombine.high %v2370_v55, %v2370_v55  ;;  %v2424_v38 = vrot.slane %v2370_v55, %v5651_v16  ;;  %v5358_v47 = vpop.f32.mrb[13].mxu1 }
 0x3bf   : > { %v2373_v12 = vpop.f32.mrb[14].mxu1 }
 0x3c0   : > { %v2431_v37 = vrot.slane %v2417_v14, %v5651_v16  ;;  %v2432_v53 = vcombine.high %v2424_v38, %v2424_v38  ;;  %v2434_v56 = vcombine.high %v2373_v12, %v2373_v12  ;;  %v2441_v17 = vrot.slane %v2373_v12, %v5651_v16  ;;  %v5359_v35 = vpop.f32.mrb[15].mxu1 }
 0x3c2   : > { %v2433_v25 = vcombine.high %v2431_v37, %v2431_v37  ;;  %v2448_v59 = vrot.slane %v2434_v56, %v5651_v16  ;;  %v2449_v48 = vcombine.high %v2441_v17, %v2441_v17  ;;  %v2570_v26 = vcombine.low %v2424_v38, %v2432_v53 }
 0x3c4   : > { %v2571_v32 = vcombine.low %v2431_v37, %v2433_v25  ;;  %v2450_v8 = vcombine.high %v2448_v59, %v2448_v59  ;;  %v2587_v61 = vcombine.low %v2441_v17, %v2449_v48  ;;  %v2578_v24 = vrot.slane %v2570_v26, %v5651_v16 }
 0x3c5   : > { %v2378_v52 = vpop.f32.mrb[16].mxu1 }
 0x3c6   : > { %v2585_v0 = vrot.slane %v2571_v32, %v5651_v16  ;;  %v2588_v42 = vcombine.low %v2448_v59, %v2450_v8  ;;  %v2451_v28 = vcombine.high %v2378_v52, %v2378_v52  ;;  %v5362_v4 = vpop.f32.mrb[17].mxu1  ;;  %v2458_v20 = vrot.slane %v2378_v52, %v5651_v16 }
 0x3c7   : > { %v2381_v3 = vpop.f32.mrb[18].mxu1  ;;  %v2595_v11 = vrot.slane %v2587_v61, %v5651_v16 }
 0x3c8   : > { %v2602_v63 = vrot.slane %v2588_v42, %v5651_v16  ;;  %v2465_v7 = vrot.slane %v2451_v28, %v5651_v16  ;;  %v2468_v43 = vcombine.high %v2381_v3, %v2381_v3  ;;  %v5363_v62 = vpop.f32.mrb[19].mxu1  ;;  %v2466_v54 = vcombine.high %v2458_v20, %v2458_v20 }
 0x3c9   : > { %v2610_v13 = vrot.slane %v2458_v20, %v5651_v16  ;;  %v2475_v57 = vrot.slane %v2381_v3, %v5651_v16  ;;  %v2586_v51 = vcombine.low %v2578_v24, %v2585_v0 }
 0x3ca   : > { %v2603_v10 = vcombine.low %v2595_v11, %v2602_v63  ;;  %v2467_v19 = vcombine.high %v2465_v7, %v2465_v7  ;;  %v2482_v49 = vrot.slane %v2468_v43, %v5651_v16  ;;  %v2611_v34 = vcombine.low %v2466_v54, %v2465_v7 }
 0x3cb   : > { %v2747_v15 = vpack.c.bf16 %v2610_v13, %v2610_v13  ;;  %v2483_v6 = vcombine.high %v2475_v57, %v2475_v57 }
 0x3cc   : > { %v6612_v27 = vpack.c.bf16 %v2603_v10, %v2586_v51  ;;  %v2612_v21 = vcombine.low %v2467_v19, %v2475_v57  ;;  %v2619_v1 = vrot.slane %v2611_v34, %v5651_v16  ;;  %v2484_v17 = vcombine.high %v2482_v49, %v2482_v49 }
 0x3cd   : > { %v3367_v55 = vrot.slane %v2747_v15, 1  ;;  %v2628_v14 = vcombine.low %v2483_v6, %v2482_v49  ;;  %v2386_v38 = vpop.f32.mrb[20].mxu1  ;;  %v3042_v54 = vshll.u32 %v2747_v15, 16 }
 0x3ce   : > { %v3366_v47 = vrot.slane %v6612_v27, 1  ;;  %v2626_v12 = vrot.slane %v2612_v21, %v5651_v16  ;;  %v2485_v37 = vcombine.high %v2386_v38, %v2386_v38  ;;  %v2492_v53 = vrot.slane %v2386_v38, %v5651_v16  ;;  %v5366_v56 = vpop.f32.mrb[21].mxu1 }
 0x3cf   : > { %v2389_v35 = vpop.f32.mrb[22].mxu1  ;;  %v2636_v0 = vrot.slane %v2628_v14, %v5651_v16  ;;  %v3037_v20 = vshll.u32 %v6612_v27, 16 }
 0x3d0   : > { %v6619_v25 = vsel %vm2036_vm3, %v3366_v47, %v3367_v55  ;;  %v2627_v59 = vcombine.low %v2619_v1, %v2626_v12  ;;  %v2499_v48 = vrot.slane %v2485_v37, %v5651_v16  ;;  %v2500_v26 = vcombine.high %v2492_v53, %v2492_v53  ;;  %v5367_v32 = vpop.f32.mrb[23].mxu1 }
 0x3d1   : > { %v2629_v8 = vcombine.low %v2484_v17, %v2492_v53  ;;  %v2502_v61 = vcombine.high %v2389_v35, %v2389_v35  ;;  %v2509_v52 = vrot.slane %v2389_v35, %v5651_v16  ;;  %v3039_v6 = vrot.slane %v3037_v20, 1 }
 0x3d2   : > { %v2501_v42 = vcombine.high %v2499_v48, %v2499_v48  ;;  %v2651_v3 = vrot.slane %v2500_v26, %v5651_v16  ;;  %v2758_v26 = vshrl.u32 %v6612_v27, 16 }
 0x3d3   : > { %v2643_v28 = vrot.slane %v2629_v8, %v5651_v16  ;;  %v2516_v4 = vrot.slane %v2502_v61, %v5651_v16  ;;  %v2517_v24 = vcombine.high %v2509_v52, %v2509_v52  ;;  %v3382_v8 = vshrl.u32 %v6619_v25, 16 }
 0x3d4   : > { %v2652_v11 = vcombine.low %v2499_v48, %v2501_v42  ;;  %v2749_v21 = vpack.c.bf16 %v2651_v3, %v2651_v3 }
 0x3d5   : > { %v2644_v63 = vcombine.low %v2636_v0, %v2643_v28  ;;  %v2518_v7 = vcombine.high %v2516_v4, %v2516_v4  ;;  %v2653_v43 = vcombine.low %v2509_v52, %v2517_v24  ;;  %v2394_v62 = vpop.f32.mrb[24].mxu1 }
 0x3d6   : > { %v2660_v13 = vrot.slane %v2652_v11, %v5651_v16  ;;  %v2519_v57 = vcombine.high %v2394_v62, %v2394_v62  ;;  %v5370_v51 = vpop.f32.mrb[25].mxu1  ;;  %v2526_v49 = vrot.slane %v2394_v62, %v5651_v16  ;;  %v3052_v61 = vshll.u32 %v2749_v21, 16 }
 0x3d7   : > { %v2748_v10 = vpack.c.bf16 %v2644_v63, %v2627_v59  ;;  %v2667_v19 = vrot.slane %v2653_v43, %v5651_v16  ;;  %v2397_v34 = vpop.f32.mrb[26].mxu1  ;;  %v2669_v15 = vcombine.low %v2516_v4, %v2518_v7  ;;  %v3044_v59 = vrot.slane %v3042_v54, 1 }
 0x3d8   : > { %v2533_v1 = vrot.slane %v2519_v57, %v5651_v16  ;;  %v2536_v55 = vcombine.high %v2397_v34, %v2397_v34  ;;  %v2543_v14 = vrot.slane %v2397_v34, %v5651_v16  ;;  %v5371_v38 = vpop.f32.mrb[27].mxu1  ;;  %v2534_v12 = vcombine.high %v2526_v49, %v2526_v49 }
 0x3d9   : > { %v2668_v47 = vcombine.low %v2660_v13, %v2667_v19  ;;  %v6634_v37 = vpack.i.b16 %v2748_v10, %v6612_v27  ;;  %v2759_v32 = vshrl.u32 %v2748_v10, 16  ;;  %v2677_v42 = vrot.slane %v2669_v15, %v5651_v16 }
 0x3da   : > { %v2692_v53 = vrot.slane %v2533_v1, %v5651_v16  ;;  %v2535_v56 = vcombine.high %v2533_v1, %v2533_v1  ;;  %v2550_v17 = vrot.slane %v2536_v55, %v5651_v16  ;;  %v2551_v35 = vcombine.high %v2543_v14, %v2543_v14 }
 0x3db   : > { %v2670_v48 = vcombine.low %v2526_v49, %v2534_v12  ;;  %v6642_v24 = vpack.i.b16 %v2759_v32, %v2758_v26  ;;  %v3047_v20 = vshll.u32 %v2748_v10, 16  ;;  %v3040_v7 = vor.u32 %v3039_v6, %v2758_v26 }
 0x3dc   : > { %v2693_v52 = vcombine.low %v2535_v56, %v2543_v14  ;;  %v2694_v0 = vcombine.low %v2551_v35, %v2550_v17  ;;  %v2751_v3 = vpack.c.bf16 %v2692_v53, %v2692_v53  ;;  %v2552_v62 = vcombine.high %v2550_v17, %v2550_v17 }
 0x3dd   : > { %v2684_v28 = vrot.slane %v2670_v48, %v5651_v16  ;;  %v2402_v4 = vpop.f32.mrb[28].mxu1  ;;  %v3054_v51 = vrot.slane %v3052_v61, 1  ;;  %v3370_v19 = vrot.slane %v2749_v21, 1  ;;  %v3049_v1 = vrot.slane %v3047_v20, 1 }
 0x3de   : > { %v2701_v11 = vrot.slane %v2693_v52, %v5651_v16  ;;  %v2708_v63 = vrot.slane %v2694_v0, %v5651_v16  ;;  %v5374_v27 = vpop.f32.mrb[29].mxu1  ;;  %v2553_v54 = vcombine.high %v2402_v4, %v2402_v4  ;;  %v2560_v13 = vrot.slane %v2402_v4, %v5651_v16 }
 0x3df   : > { %v2685_v43 = vcombine.low %v2677_v42, %v2684_v28  ;;  %v2405_v57 = vpop.f32.mrb[30].mxu1  ;;  %v3062_v12 = vshll.u32 %v2751_v3, 16  ;;  %v3050_v53 = vor.u32 %v3049_v1, %v2759_v32  ;;  %v3369_v56 = vrot.slane %v2748_v10, 1 }
 0x3e0   : > { %v2709_v49 = vcombine.low %v2701_v11, %v2708_v63  ;;  %v5375_v34 = vpop.f32.mrb[31].mxu1  ;;  %v2567_v14 = vrot.slane %v2553_v54, %v5651_v16  ;;  %v2568_v38 = vcombine.high %v2560_v13, %v2560_v13  ;;  %v2710_v15 = vcombine.low %v2552_v62, %v2560_v13 }
 0x3e1   : > { %v2750_v55 = vpack.c.bf16 %v2685_v43, %v2668_v47  ;;  %v3045_v6 = vsel %vm1652_vm4, %v3040_v7, %v3044_v59  ;;  %v3373_v17 = vrot.slane %v2751_v3, 1  ;;  %v3371_v21 = vsel %vm2036_vm3, %v3369_v56, %v3370_v19 }
 0x3e2   : > { %v2569_v35 = vcombine.high %v2567_v14, %v2567_v14  ;;  %v2711_v48 = vcombine.low %v2568_v38, %v2567_v14  ;;  %v2718_v26 = vrot.slane %v2710_v15, %v5651_v16  ;;  %v3055_v47 = vsel %vm1652_vm4, %v3050_v53, %v3054_v51 }
 0x3e3   : > { %v3057_v61 = vshll.u32 %v2750_v55, 16  ;;  %v3372_v52 = vrot.slane %v2750_v55, 1  ;;  %v6655_v32 = vpack.i.b16 %v3371_v21, %v6619_v25  ;;  %v3383_v10 = vshrl.u32 %v3371_v21, 16 }
 0x3e4   : > { %v2725_v0 = vrot.slane %v2711_v48, %v5651_v16  ;;  %v2733_v42 = vrot.slane %v2569_v35, %v5651_v16  ;;  %v2766_v59 = vshrl.u32 %v2750_v55, 16  ;;  %v6660_v20 = vpack.i.b16 %v3055_v47, %v3045_v6 }
 0x3e5   : > { %v3059_v28 = vrot.slane %v3057_v61, 1  ;;  %v6658_v4 = vsel %vm2036_vm3, %v3372_v52, %v3373_v17  ;;  %v3064_v11 = vrot.slane %v3062_v12, 1  ;;  %v6662_v7 = vpack.i.b16 %v3383_v10, %v3382_v8 }
 0x3e6   : > { %v2726_v3 = vcombine.low %v2718_v26, %v2725_v0  ;;  %v2753_v63 = vpack.c.bf16 %v2733_v42, %v2733_v42  ;;  %v2770_v62 = vcombine.high %v6634_v37, %v5806_v22  ;;  %v2836_v25 = vcombine.high %v6642_v24, %v5806_v22 }
 0x3e7   : > { %v3060_v27 = vor.u32 %v3059_v28, %v2766_v59  ;;  %v2777_v57 = vrot.slane %v6634_v37, %v5651_v16  ;;  %v3080_v19 = vshrl.u32 %v3045_v6, 16  ;;  %v3081_v14 = vshrl.u32 %v3055_v47, 16 }
 0x3e8   : > { %v2752_v43 = vpack.c.bf16 %v2726_v3, %v2709_v49  ;;  %v3376_v34 = vrot.slane %v2753_v63, 1  ;;  %v2784_v38 = vrot.slane %v2770_v62, %v5651_v16  ;;  %v6678_v53 = vrot.slane %v6642_v24, %v5651_v16 }
 0x3e9   : > { %v6669_v54 = vsel %vm1652_vm4, %v3060_v27, %v3064_v11  ;;  %v6684_v56 = vpack.i.b16 %v3081_v14, %v3080_v19  ;;  %v3394_v48 = vcombine.high %v6655_v32, %v5806_v22  ;;  %v3072_v10 = vshll.u32 %v2753_v63, 16 }
 0x3ea   : > { %v2764_v13 = vpack.i.b16 %v2752_v43, %v2750_v55  ;;  %v2767_v51 = vshrl.u32 %v2752_v43, 16  ;;  %v3067_v1 = vshll.u32 %v2752_v43, 16  ;;  %v3375_v8 = vrot.slane %v2752_v43, 1 }
 0x3eb   : > { %v6681_v55 = vrot.slane %v2836_v25, %v5651_v16  ;;  %v6706_v27 = vrot.slane %v6655_v32, %v5651_v16 }
 0x3ec   : > { %v2792_v49 = vrot.slane %v2764_v13, %v5651_v16  ;;  %v2785_v15 = vcombine.high %v2764_v13, %v5806_v22  ;;  %v2768_v12 = vpack.i.b16 %v2767_v51, %v2766_v59  ;;  %v3377_v37 = vsel %vm2036_vm3, %v3375_v8, %v3376_v34 }
 0x3ed   : > { %v3069_v26 = vrot.slane %v3067_v1, 1  ;;  %v3388_v21 = vpack.i.b16 %v3377_v37, %v6658_v4  ;;  %v3391_v43 = vshrl.u32 %v3377_v37, 16  ;;  %v3390_v13 = vshrl.u32 %v6658_v4, 16 }
 0x3ee   : > { %v2801_v6 = vcombine.high %v2777_v57, %v2792_v49  ;;  %v2799_v17 = vrot.slane %v2785_v15, %v5651_v16  ;;  %v2858_v35 = vrot.slane %v2768_v12, %v5651_v16  ;;  %v2851_v61 = vcombine.high %v2768_v12, %v5806_v22 }
 0x3ef   : > { %v2800_v24 = vcombine.low %v2777_v57, %v2792_v49  ;;  %v6699_v3 = vrot.slane %v3388_v21, %v5651_v16  ;;  %v3070_v62 = vor.u32 %v3069_v26, %v2767_v51  ;;  %v3409_v34 = vcombine.high %v3388_v21, %v5806_v22 }
 0x3f0   : > { %v6693_v52 = vrot.slane %v2801_v6, %v5821_v45  ;;  %v2817_v47 = vcombine.high %v2784_v38, %v2799_v17  ;;  %v2866_v0 = vcombine.low %v6678_v53, %v2858_v35  ;;  %v2816_v42 = vcombine.low %v2784_v38, %v2799_v17 }
 0x3f1   : > { %v2865_v59 = vrot.slane %v2851_v61, %v5651_v16  ;;  %v2867_v28 = vcombine.high %v6678_v53, %v2858_v35  ;;  %v6716_v19 = vrot.slane %v2800_v24, %v5821_v45  ;;  %v3425_v32 = vcombine.high %v6706_v27, %v6699_v3 }
 0x3f2   : > { %2912 = vrot.lane.b32.xlu0 %v6693_v52, %s5515_s20  ;;  %v2831_v11 = vrot.slane %v2817_v47, %v5821_v45  ;;  %v6713_v57 = vrot.slane %v2866_v0, %v5821_v45  ;;  %v3074_v51 = vrot.slane %v3072_v10, 1  ;;  %v6722_v1 = vrot.slane %v2816_v42, %v5821_v45 }
 0x3f3   : > { %v2882_v63 = vcombine.low %v6681_v55, %v2865_v59  ;;  %v2883_v25 = vcombine.high %v6681_v55, %v2865_v59  ;;  %v6725_v8 = vrot.slane %v3394_v48, %v5651_v16  ;;  %v3460_v4 = vcombine.high %v6662_v7, %v5806_v22 }
 0x3f4   : > { %2933 = vrot.lane.b32.xlu1 %v2831_v11, %s5515_s20  ;;  %v6733_v49 = vrot.slane %v3409_v34, %v5651_v16  ;;  %v3392_v38 = vpack.i.b16 %v3391_v43, %v3390_v13  ;;  %v3424_v15 = vcombine.low %v6706_v27, %v6699_v3  ;;  %v6739_v12 = vrot.slane %v6662_v7, %v5651_v16 }
 0x3f5   : > { %v2890_v14 = vrot.slane %v2882_v63, %v5821_v45  ;;  %v3075_v53 = vsel %vm1652_vm4, %v3070_v62, %v3074_v51  ;;  %v2832_v55 = vcombine.high %v6716_v19, %v7194_v30  ;;  %v6752_v35 = vrot.slane %v3460_v4, %v5651_v16 }
 0x3f6   : > { %2903 = vrot.lane.b32.xlu0 %v6713_v57, %s5516_s21  ;;  %v3441_v37 = vcombine.high %v6725_v8, %v6733_v49  ;;  %v6748_v6 = vrot.slane %v3392_v38, %v5651_v16  ;;  %v3475_v17 = vcombine.high %v3392_v38, %v5806_v22  ;;  %v3440_v7 = vcombine.low %v6725_v8, %v6733_v49 }
 0x3f7   : > { %v3086_v48 = vpack.i.b16 %v3075_v53, %v6669_v54  ;;  %v3092_v26 = vcombine.high %v6660_v20, %v5806_v22  ;;  %v2834_v61 = vcombine.high %v6722_v1, %v7194_v30  ;;  %v3089_v47 = vshrl.u32 %v3075_v53, 16 }
 0x3f8   : > { %2924 = vrot.lane.b32.xlu1 %v2890_v14, %s5516_s21  ;;  %v3490_v24 = vcombine.low %v6739_v12, %v6748_v6  ;;  %v3489_v21 = vrot.slane %v3475_v17, %v5651_v16  ;;  %v3491_v0 = vcombine.high %v6739_v12, %v6748_v6  ;;  %v6769_v42 = vrot.slane %v6660_v20, %v5651_v16 }
 0x3f9   : > { %v6772_v10 = vrot.slane %v3086_v48, %v5651_v16  ;;  %v3107_v59 = vcombine.high %v3086_v48, %v5806_v22  ;;  %v2881_v43 = vrot.slane %v2867_v28, %v5821_v45  ;;  %v3088_v13 = vshrl.u32 %v6669_v54, 16 }
 0x3fa   : > { %2906 = vrot.lane.b32.xlu0 %v2832_v55, %s5517_s22  ;;  %v3506_v62 = vcombine.low %v6752_v35, %v3489_v21  ;;  %v3507_v63 = vcombine.high %v6752_v35, %v3489_v21  ;;  %v6783_v20 = vrot.slane %v3092_v26, %v5651_v16  ;;  %v2897_v8 = vrot.slane %v2883_v25, %v5821_v45 }
 0x3fb   : > { %v3123_v34 = vcombine.high %v6769_v42, %v6772_v10  ;;  %v6786_v51 = vrot.slane %v3107_v59, %v5651_v16  ;;  %v3090_v28 = vpack.i.b16 %v3089_v47, %v3088_v13  ;;  %v3158_v54 = vcombine.high %v6684_v56, %v5806_v22 }
 0x3fc   : > { %2927 = vrot.lane.b32.xlu1 %v2834_v61, %s5517_s22  ;;  %v2833_v49 = vcombine.high %v6693_v52, %v7194_v30  ;;  %v6799_v38 = vrot.slane %v6684_v56, %v5651_v16  ;;  %v2835_v53 = vcombine.high %v2831_v11, %v7194_v30  ;;  %v3122_v55 = vcombine.low %v6769_v42, %v6772_v10 }
 0x3fd   : > { %v3139_v4 = vcombine.high %v6783_v20, %v6786_v51  ;;  %v6802_v12 = vrot.slane %v3090_v28, %v5651_v16  ;;  %v3173_v25 = vcombine.high %v3090_v28, %v5806_v22  ;;  %v3138_v6 = vcombine.low %v6783_v20, %v6786_v51 }
 0x3fe   : > { %2915 = vrot.lane.b32.xlu0 %v2881_v43, %s5518_s23  ;;  %v3172_v56 = vrot.slane %v3158_v54, %v5651_v16  ;;  %v3439_v11 = vrot.slane %v3425_v32, %v5821_v45  ;;  %v3455_v26 = vrot.slane %v3441_v37, %v5821_v45  ;;  %v2898_v61 = vcombine.high %v6713_v57, %v7194_v30 }
 0x3ff   : > { %v3188_v52 = vcombine.low %v6799_v38, %v6802_v12  ;;  %v3187_v17 = vrot.slane %v3173_v25, %v5651_v16  ;;  %v3189_v22 = vcombine.high %v6799_v38, %v6802_v12  ;;  %v2900_v16 = vcombine.high %v2890_v14, %v7194_v30 }
 0x400   : > { %2936 = vrot.lane.b32.xlu1 %v2897_v8, %s5518_s23  ;;  %v2899_v21 = vcombine.high %v2881_v43, %v7194_v30  ;;  %v2901_v32 = vcombine.high %v2897_v8, %v7194_v30  ;;  %v3498_v37 = vrot.slane %v3490_v24, %v5821_v45  ;;  %v6836_v57 = vrot.slane %v3424_v15, %v5821_v45 }
 0x401   : > { %v3204_v35 = vcombine.low %v3172_v56, %v3187_v17  ;;  %v3205_v48 = vcombine.high %v3172_v56, %v3187_v17  ;;  %v3514_v14 = vrot.slane %v3506_v62, %v5821_v45  ;;  %v6841_v47 = vrot.slane %v3440_v7, %v5821_v45 }
 0x402   : > { %2918 = vrot.lane.b32.xlu0 %v2833_v49, %s5519_s24  ;;  %v3456_v42 = vcombine.high %v6836_v57, %v7194_v30  ;;  %v3505_v3 = vrot.slane %v3491_v0, %v5821_v45  ;;  %v3521_v27 = vrot.slane %v3507_v63, %v5821_v45  ;;  %v3457_v15 = vcombine.high %v3439_v11, %v7194_v30 }
 0x403   : > { %v3458_v24 = vcombine.high %v6841_v47, %v7194_v30  ;;  %v3459_v7 = vcombine.high %v3455_v26, %v7194_v30  ;;  %v3137_v10 = vrot.slane %v3123_v34, %v5821_v45  ;;  %v3153_v0 = vrot.slane %v3139_v4, %v5821_v45 }
 0x404   : > { %2939 = vrot.lane.b32.xlu1 %v2835_v53, %s5519_s24  ;;  %v3522_v59 = vcombine.high %v3498_v37, %v7194_v30  ;;  %v3524_v43 = vcombine.high %v3514_v14, %v7194_v30  ;;  %v3523_v62 = vcombine.high %v3505_v3, %v7194_v30  ;;  %v3525_v63 = vcombine.high %v3521_v27, %v7194_v30 }
 0x405   : > { %v3196_v13 = vrot.slane %v3188_v52, %v5821_v45  ;;  %v6872_v34 = vrot.slane %v3122_v55, %v5821_v45  ;;  %v3212_v20 = vrot.slane %v3204_v35, %v5821_v45  ;;  %v6877_v51 = vrot.slane %v3138_v6, %v5821_v45 }
 0x406   : > { %3536 = vrot.lane.b32.xlu0 %v3439_v11, %s5515_s20  ;;  %v3203_v4 = vrot.slane %v3189_v22, %v5821_v45  ;;  %v3219_v54 = vrot.slane %v3205_v48, %v5821_v45  ;;  %v3155_v49 = vcombine.high %v3137_v10, %v7194_v30  ;;  %v3157_v38 = vcombine.high %v3153_v0, %v7194_v30 }
 0x407   : > { %v3154_v8 = vcombine.high %v6872_v34, %v7194_v30  ;;  %v3156_v28 = vcombine.high %v6877_v51, %v7194_v30  ;;  %v3220_v12 = vcombine.high %v3196_v13, %v7194_v30  ;;  %v3222_v25 = vcombine.high %v3212_v20, %v7194_v30 }
 0x408   : > { %3557 = vrot.lane.b32.xlu1 %v3455_v26, %s5515_s20  ;;  %v3221_v53 = vcombine.high %v3203_v4, %v7194_v30  ;;  %v3223_v55 = vcombine.high %v3219_v54, %v7194_v30  ;;  %v4549_v6 = vcombine.high %v6449_v31, %v7194_v30  ;;  %v4551_v52 = vcombine.high %v6463_v39, %v7194_v30  ;;  %v6946_v26 = vpop.permute.xlu0 %4554 }
 0x409   : > { %v7196_v56 = vcombine.high %v6249_v40, %v6252_v9  ;;  %v7197_v31 = vcombine.high %v6267_v60, %v6270_v58  ;;  %v7198_v39 = vcombine.high %v6257_v44, %v6260_v33  ;;  %v7199_v40 = vcombine.high %v6278_v18, %v6281_v2 }
 0x40a   : > { %2909 = vrot.lane.b32.xlu0 %v2898_v61, %s5520_s25  ;;  %v7200_v58 = vcombine.low %v6321_v46, %v6331_v29  ;;  %v7201_v2 = vcombine.low %v6325_v23, %v6335_v5  ;;  %v7202_v61 = vld [vmem:[#allocation5_spill] sm:$0xff] }
 0x40b   : > { %v4466_v17 = vrot.slane %v7196_v56, %v5821_v45  ;;  %v4482_v22 = vrot.slane %v7197_v31, %v5821_v45  ;;  %v4532_v11 = vrot.slane %v7198_v39, %v5821_v45  ;;  %v4548_v9 = vrot.slane %v7199_v40, %v5821_v45 }
 0x40c   : > { %2930 = vrot.lane.b32.xlu1 %v2900_v16, %s5520_s25  ;;  %v4827_v18 = vrot.slane %v7200_v58, %v5821_v45  ;;  %v6944_v48 = vrot.slane %v7201_v2, %v5821_v45  ;;  %v7203_v16 = vcombine.low %v6343_v36, %v7202_v61 }
 0x40d   : > { %v4484_v35 = vcombine.high %v4466_v17, %v7194_v30  ;;  %v4486_v60 = vcombine.high %v4482_v22, %v7194_v30  ;;  %v4550_v44 = vcombine.high %v4532_v11, %v7194_v30  ;;  %v4552_v33 = vcombine.high %v4548_v9, %v7194_v30 }
 0x40e   : > { %2921 = vrot.lane.b32.xlu0 %v2899_v21, %s5521_s29  ;;  %v4843_v21 = vrot.slane %v7203_v16, %v5821_v45 }
 0x410   : > { %2942 = vrot.lane.b32.xlu1 %v2901_v32, %s5521_s29  ;;  %v7204_v32 = vld [vmem:[#allocation4_spill] sm:$0xff] }
 0x412   : > { %3527 = vrot.lane.b32.xlu0 %v3498_v37, %s5516_s21  ;;  %v7205_v37 = vld [vmem:[#allocation6_spill] sm:$0xff] }
 0x414   : > { %3548 = vrot.lane.b32.xlu1 %v3514_v14, %s5516_s21  ;;  %v7206_v14 = vcombine.low %v7204_v32, %v7205_v37 }
 0x416   : > { %3530 = vrot.lane.b32.xlu0 %v3456_v42, %s5517_s22  ;;  %v6957_v42 = vrot.slane %v7206_v14, %v5821_v45 }
 0x418   : > { %3551 = vrot.lane.b32.xlu1 %v3458_v24, %s5517_s22  ;;  %v6959_v24 = vpop.permute.xlu1 %4575 }
 0x41a   : > { %3539 = vrot.lane.b32.xlu0 %v3505_v3, %s5518_s23  ;;  %v4785_v3 = vcombine.high %v6944_v48, %v7194_v30 }
 0x41c   : > { %3560 = vrot.lane.b32.xlu1 %v3521_v27, %s5518_s23  ;;  %v4787_v27 = vcombine.high %v6957_v42, %v7194_v30 }
 0x41e   : > { %3542 = vrot.lane.b32.xlu0 %v3457_v15, %s5519_s24  ;;  %v6967_v15 = vpop.permute.xlu0 %4557 }
 0x420   : > { %3563 = vrot.lane.b32.xlu1 %v3459_v7, %s5519_s24  ;;  %v4851_v7 = vcombine.high %v4827_v18, %v7194_v30 }
 0x422   : > { %3234 = vrot.lane.b32.xlu0 %v3137_v10, %s5515_s20  ;;  %v6971_v10 = vpop.permute.xlu1 %4578 }
 0x424   : > { %3255 = vrot.lane.b32.xlu1 %v3153_v0, %s5515_s20  ;;  %v4853_v0 = vcombine.high %v4843_v21, %v7194_v30 }
 0x426   : > { %3533 = vrot.lane.b32.xlu0 %v3522_v59, %s5520_s25 }
 0x428   : > { %3554 = vrot.lane.b32.xlu1 %v3524_v43, %s5520_s25  ;;  %v7207_v43 = vcombine.high %v6325_v23, %v6335_v5  ;;  %v7210_v5 = vcombine.high %v6343_v36, %v7202_v61  ;;  %v4989_v36 = vld [vmem:[%s7161_s4] sm:$0xff] }
 0x42a   : > { %3545 = vrot.lane.b32.xlu0 %v3523_v62, %s5521_s29  ;;  %v4768_v62 = vrot.slane %v7207_v43, %v5821_v45 }
 0x42c   : > { %3566 = vrot.lane.b32.xlu1 %v3525_v63, %s5521_s29 }
 0x42e   : > { %3225 = vrot.lane.b32.xlu0 %v3196_v13, %s5516_s21  ;;  %v7208_v13 = vcombine.high %v7204_v32, %v7205_v37 }
 0x430   : > { %3246 = vrot.lane.b32.xlu1 %v3212_v20, %s5516_s21  ;;  %v4784_v20 = vrot.slane %v7208_v13, %v5821_v45 }
 0x432   : > { %3228 = vrot.lane.b32.xlu0 %v3154_v8, %s5517_s22 }
 0x434   : > { %3249 = vrot.lane.b32.xlu1 %v3156_v28, %s5517_s22  ;;  %v7209_v28 = vcombine.high %v6321_v46, %v6331_v29 }
 0x436   : > { %3237 = vrot.lane.b32.xlu0 %v3203_v4, %s5518_s23  ;;  %v4834_v4 = vrot.slane %v7209_v28, %v5821_v45 }
 0x438   : > { %3258 = vrot.lane.b32.xlu1 %v3219_v54, %s5518_s23  ;;  %v4850_v54 = vrot.slane %v7210_v5, %v5821_v45  ;;  %v4852_v29 = vcombine.high %v4834_v4, %v7194_v30 }
 0x43a   : > { %3240 = vrot.lane.b32.xlu0 %v3155_v49, %s5519_s24  ;;  %v4854_v45 = vcombine.high %v4850_v54, %v7194_v30 }
 0x43c   : > { %3261 = vrot.lane.b32.xlu1 %v3157_v38, %s5519_s24  ;;  %v4786_v38 = vcombine.high %v4768_v62, %v7194_v30 }
 0x43e   : > { %3231 = vrot.lane.b32.xlu0 %v3220_v12, %s5520_s25 }
 0x440   : > { %3252 = vrot.lane.b32.xlu1 %v3222_v25, %s5520_s25  ;;  %v4788_v25 = vcombine.high %v4784_v20, %v7194_v30 }
 0x442   : > { %3243 = vrot.lane.b32.xlu0 %v3221_v53, %s5521_s29 }
 0x444   : > { %3264 = vrot.lane.b32.xlu1 %v3223_v55, %s5521_s29 }
 0x446   : > { %4560 = vrot.lane.b32.xlu0 %v4549_v6, %s5520_s25  ;;  %v4990_v6 = vld [vmem:[%s7161_s4 + $0x8] sm:$0xff] }
 0x448   : > { %4581 = vrot.lane.b32.xlu1 %v4551_v52, %s5520_s25 }
 0x44a   : > { %4563 = vrot.lane.b32.xlu0 %v4466_v17, %s5515_s20  ;;  %v5012_v17 = vld [vmem:[#allocation2] sm:$0x1] }
 0x44c   : > { %4584 = vrot.lane.b32.xlu1 %v4482_v22, %s5515_s20 }
 0x44e   : > { %4566 = vrot.lane.b32.xlu0 %v4532_v11, %s5518_s23 }
 0x450   : > { %4587 = vrot.lane.b32.xlu1 %v4548_v9, %s5518_s23 }
 0x452   : > { %4569 = vrot.lane.b32.xlu0 %v4484_v35, %s5519_s24 }
 0x454   : > { %4590 = vrot.lane.b32.xlu1 %v4486_v60, %s5519_s24 }
 0x456   : > { %4572 = vrot.lane.b32.xlu0 %v4550_v44, %s5521_s29 }
 0x458   : > { %4593 = vrot.lane.b32.xlu1 %v4552_v33, %s5521_s29 }
 0x45a   : > { %4856 = vrot.lane.b32.xlu0 %v4827_v18, %s5516_s21 }
 0x45c   : > { %4877 = vrot.lane.b32.xlu1 %v4843_v21, %s5516_s21 }
 0x45e   : > { %4859 = vrot.lane.b32.xlu0 %v4785_v3, %s5517_s22  ;;  %v5472_v3 = vld [vmem:[%s7160_s3 + $0x8] sm:$0xff]  }
 0x460   : > { %4880 = vrot.lane.b32.xlu1 %v4787_v27, %s5517_s22 }
 0x462   : > { %4862 = vrot.lane.b32.xlu0 %v4851_v7, %s5520_s25 }
 0x464   : > { %v2913_v59 = vpop.permute.xlu0 %2912  ;;  %4883 = vrot.lane.b32.xlu1 %v4853_v0, %s5520_s25 }
 0x466   : > { %4865 = vrot.lane.b32.xlu0 %v4768_v62, %s5515_s20  ;;  %v2934_v63 = vpop.permute.xlu1 %2933 }
 0x468   : > { %v2904_v8 = vpop.permute.xlu0 %2903  ;;  %4886 = vrot.lane.b32.xlu1 %v4784_v20, %s5515_s20 }
 0x469   : > { %v2946_v22 = vsel %vm1613_vm5, %v6716_v19, %v2904_v8 }
 0x46a   : > { %4868 = vrot.lane.b32.xlu0 %v4834_v4, %s5518_s23  ;;  %v2925_v23 = vpop.permute.xlu1 %2924 }
 0x46b   : > { %v2961_v40 = vsel %vm1613_vm5, %v6722_v1, %v2925_v23 }
 0x46c   : > { %v2907_v49 = vpop.permute.xlu0 %2906  ;;  %4889 = vrot.lane.b32.xlu1 %v4850_v54, %s5518_s23 }
 0x46d   : > { %v2948_v39 = vsel %vm1617_vm6, %v2946_v22, %v2907_v49 }
 0x46e   : > { %4871 = vrot.lane.b32.xlu0 %v4786_v38, %s5519_s24  ;;  %v2928_v12 = vpop.permute.xlu1 %2927 }
 0x46f   : > { %v2963_v35 = vsel %vm1617_vm6, %v2961_v40, %v2928_v12 }
 0x470   : > { %v2916_v46 = vpop.permute.xlu0 %2915  ;;  %4892 = vrot.lane.b32.xlu1 %v4788_v25, %s5519_s24 }
 0x472   : > { %4874 = vrot.lane.b32.xlu0 %v4852_v29, %s5521_s29  ;;  %v2937_v53 = vpop.permute.xlu1 %2936 }
 0x474   : > { %v2919_v55 = vpop.permute.xlu0 %2918  ;;  %4895 = vrot.lane.b32.xlu1 %v4854_v45, %s5521_s29 }
 0x476   : > { %v2940_v52 = vpop.permute.xlu1 %2939  ;;  %4993 = vperm.xlu0 %5467, %v4989_v36  }
 0x478   : > { %v3537_v56 = vpop.permute.xlu0 %3536  ;;  %4998 = vperm.xlu1 %5468, %v4990_v6  }
 0x47a   : > { %v3558_v31 = vpop.permute.xlu1 %3557 }
 0x47c   : > { %v2910_v11 = vpop.permute.xlu0 %2909  ;;  %5015 = vperm.xlu1 %5468, %v5012_v17  }
 0x47d   : > { %v2950_v9 = vsel %vm1620_vm7, %v2948_v39, %v2910_v11 }
 0x47e   : > { %v2952_v60 = vsel %vm1623_vm8, %v2950_v9, %v2913_v59  ;;  %v2931_v44 = vpop.permute.xlu1 %2930 }
 0x47f   : > { %v2965_v33 = vsel %vm1620_vm7, %v2963_v35, %v2931_v44  ;;  %v2954_v58 = vsel %vm1626_vm9, %v2952_v60, %v2916_v46 }
 0x480   : > { %v2967_v19 = vsel %vm1623_vm8, %v2965_v33, %v2934_v63  ;;  %v2956_v18 = vsel %vm1629_vm10, %v2954_v58, %v2919_v55  ;;  %v2922_v2 = vpop.permute.xlu0 %2921 }
 0x481   : > { %v2958_v61 = vsel %vm1632_vm11, %v2956_v18, %v2922_v2  ;;  %v2969_v1 = vsel %vm1626_vm9, %v2967_v19, %v2937_v53 }
 0x482   : > { %v2971_v16 = vsel %vm1629_vm10, %v2969_v1, %v2940_v52  ;;  %v2943_v21 = vpop.permute.xlu1 %2942  ;;  %v2985_v37 = vsel %vm1925_vm12, %v2958_v61, 0 }
 0x483   : > { %v2973_v32 = vsel %vm1632_vm11, %v2971_v16, %v2943_v21 }
 0x484   : > { %v3528_v14 = vpop.permute.xlu0 %3527  ;;  %5215 = vmatprep.subr.msk.bf16.mxu1 %vm1925_vm12, %v2973_v32 }
 0x485   : > { %2990 = vmatpush1.bf16.msra.mxu1 %v2985_v37  ;;  %v3570_v46 = vsel %vm1613_vm5, %v6836_v57, %v3528_v14  ;;  %v5473_v14 = vld [vmem:[%s7160_s3 + $0x20] sm:$0xff]  }
 0x486   : > { %v3549_v27 = vpop.permute.xlu1 %3548 }
 0x487   : > { %v3585_v29 = vsel %vm1613_vm5, %v6841_v47, %v3549_v27 }
 0x488   : > { %v3531_v7 = vpop.permute.xlu0 %3530  ;;  %5216 = vmatmul.mubr.msk.bf16.vlgmr.msra.gmra.mrb[8].mxu1 %vm1921_vm13, %v5472_v3 }
 0x489   : > { %3343 = vmatprep.mubr.bf16.mxu1 %v7194_v30  ;;  %v3572_v53 = vsel %vm1617_vm6, %v3570_v46, %v3531_v7 }
 0x48a   : > { %v3552_v0 = vpop.permute.xlu1 %3551 }
 0x48b   : > { %v3587_v45 = vsel %vm1617_vm6, %v3585_v29, %v3552_v0 }
 0x48c   : > { %v3540_v59 = vpop.permute.xlu0 %3539 }
 0x48e   : > { %v3561_v43 = vpop.permute.xlu1 %3560 }
 0x490   : > { %v3543_v62 = vpop.permute.xlu0 %3542 }
 0x492   : > { %v3564_v63 = vpop.permute.xlu1 %3563 }
 0x494   : > { %v3235_v13 = vpop.permute.xlu0 %3234 }
 0x496   : > { %v3256_v20 = vpop.permute.xlu1 %3255 }
 0x498   : > { %v3534_v8 = vpop.permute.xlu0 %3533 }
 0x499   : > { %v3574_v55 = vsel %vm1620_vm7, %v3572_v53, %v3534_v8  ;;  %v7211_v8 = vld [vmem:[#allocation8_spill] sm:$0xff] }
 0x49a   : > { %v3555_v28 = vpop.permute.xlu1 %3554  ;;  %v3576_v22 = vsel %vm1623_vm8, %v3574_v55, %v3537_v56 }
 0x49b   : > { %v3589_v6 = vsel %vm1620_vm7, %v3587_v45, %v3555_v28  ;;  %v3578_v44 = vsel %vm1626_vm9, %v3576_v22, %v3540_v59  ;;  %v4612_v28 = vsel %vm1613_vm5, %v7211_v8, %v6959_v24 }
 0x49c   : > { %v3546_v4 = vpop.permute.xlu0 %3545  ;;  %v3591_v57 = vsel %vm1623_vm8, %v3589_v6, %v3558_v31  ;;  %v3580_v2 = vsel %vm1629_vm10, %v3578_v44, %v3543_v62 }
 0x49d   : > { %v3582_v3 = vsel %vm1632_vm11, %v3580_v2, %v3546_v4  ;;  %v4614_v4 = vsel %vm1617_vm6, %v4612_v28, %v6971_v10  ;;  %v7212_v10 = vld [vmem:[#allocation7_spill] sm:$0xff] }
 0x49e   : > { %v3567_v23 = vpop.permute.xlu1 %3566  ;;  %v3609_v0 = vsel %vm1925_vm12, %v3582_v3, 0 }
 0x4a0   : > { %v3226_v5 = vpop.permute.xlu0 %3225 }
 0x4a1   : > { %v3268_v17 = vsel %vm1613_vm5, %v6872_v34, %v3226_v5  ;;  %v3593_v34 = vsel %vm1626_vm9, %v3591_v57, %v3561_v43 }
 0x4a2   : > { %v3247_v54 = vpop.permute.xlu1 %3246  ;;  %v3595_v61 = vsel %vm1629_vm10, %v3593_v34, %v3564_v63 }
 0x4a3   : > { %v3283_v11 = vsel %vm1613_vm5, %v6877_v51, %v3247_v54  ;;  %v3597_v27 = vsel %vm1632_vm11, %v3595_v61, %v3567_v23 }
 0x4a4   : > { %v3229_v49 = vpop.permute.xlu0 %3228 }
 0x4a5   : > { %v3270_v39 = vsel %vm1617_vm6, %v3268_v17, %v3229_v49 }
 0x4a6   : > { %v3250_v38 = vpop.permute.xlu1 %3249 }
 0x4a7   : > { %v3285_v9 = vsel %vm1617_vm6, %v3283_v11, %v3250_v38 }
 0x4a8   : > { %v3238_v12 = vpop.permute.xlu0 %3237 }
 0x4aa   : > { %v3259_v25 = vpop.permute.xlu1 %3258 }
 0x4ac   : > { %v3241_v36 = vpop.permute.xlu0 %3240 }
 0x4ae   : > { %v3262_v52 = vpop.permute.xlu1 %3261 }
 0x4b0   : > { %v3232_v47 = vpop.permute.xlu0 %3231 }
 0x4b1   : > { %v3272_v40 = vsel %vm1620_vm7, %v3270_v39, %v3232_v47 }
 0x4b2   : > { %v3274_v35 = vsel %vm1623_vm8, %v3272_v40, %v3235_v13  ;;  %v3253_v60 = vpop.permute.xlu1 %3252 }
 0x4b3   : > { %v3287_v56 = vsel %vm1620_vm7, %v3285_v9, %v3253_v60  ;;  %v3276_v31 = vsel %vm1626_vm9, %v3274_v35, %v3238_v12  ;;  %v5476_v9 = vld [vmem:[%s7160_s3 + $0x28] sm:$0xff]  }
 0x4b4   : > { %v3289_v33 = vsel %vm1623_vm8, %v3287_v56, %v3256_v20  ;;  %v3278_v58 = vsel %vm1629_vm10, %v3276_v31, %v3241_v36  ;;  %v3244_v51 = vpop.permute.xlu0 %3243  ;;  %v5474_v20 = vld [vmem:[%s7160_s3 + $0x38] sm:$0xff]  }
 0x4b5   : > { %v3280_v19 = vsel %vm1632_vm11, %v3278_v58, %v3244_v51  ;;  %v3291_v18 = vsel %vm1626_vm9, %v3289_v33, %v3259_v25  ;;  %v4597_v25 = vsel %vm1613_vm5, %v7212_v10, %v6946_v26  ;;  %v5475_v26 = vld [vmem:[%s7160_s3 + $0x10] sm:$0xff]  }
 0x4b6   : > { %v3293_v1 = vsel %vm1629_vm10, %v3291_v18, %v3262_v52  ;;  %v3265_v16 = vpop.permute.xlu1 %3264  ;;  %v3307_v32 = vsel %vm1925_vm12, %v3280_v19, 0 }
 0x4b7   : > { %v3295_v21 = vsel %vm1632_vm11, %v3293_v1, %v3265_v16 }
 0x4b8   : > { %v4561_v37 = vpop.permute.xlu0 %4560  ;;  %5220 = vmatprep.subr.msk.bf16.mxu1 %vm1925_vm12, %v3295_v21 }
 0x4b9   : > { %3312 = vmatpush1.bf16.msra.mxu1 %v3307_v32 }
 0x4ba   : > { %5225 = vmatprep.subr.msk.bf16.mxu1 %vm1925_vm12, %v3597_v27  ;;  %v4582_v7 = vpop.permute.xlu1 %4581 }
 0x4bb   : > { %v4616_v5 = vsel %vm1620_vm7, %v4614_v4, %v4582_v7 }
 0x4bc   : > { %v4564_v59 = vpop.permute.xlu0 %4563  ;;  %5221 = vmatmul.mubr.msk.bf16.vlgmr.msra.gmra.mrb[8].mxu1 %vm1921_vm13, %v5473_v14 }
 0x4bd   : > { %3614 = vmatpush1.bf16.msra.mxu1 %v3609_v0  ;;  %3645 = vmatprep.mubr.bf16.mxu1 %v7194_v30 }
 0x4be   : > { %5236 = vmatprep.subr.msk.bf16.mxu1 %vm1925_vm12, %v6586_v41  ;;  %v4585_v43 = vpop.permute.xlu1 %4584  ;;  %v4314_v41 = vsel %vm1925_vm12, %v6581_v50, 0  ;;  %v4599_v50 = vsel %vm1617_vm6, %v4597_v25, %v6967_v15 }
 0x4bf   : > { %v4618_v54 = vsel %vm1623_vm8, %v4616_v5, %v4585_v43  ;;  %v4601_v53 = vsel %vm1620_vm7, %v4599_v50, %v4561_v37  ;;  %v5477_v37 = vld [vmem:[%s7160_s3 + $0x40] sm:$0xff]  }
 0x4c0   : > { %v4567_v62 = vpop.permute.xlu0 %4566  ;;  %v4603_v45 = vsel %vm1623_vm8, %v4601_v53, %v4564_v59 }
 0x4c1   : > { %v4605_v55 = vsel %vm1626_vm9, %v4603_v45, %v4567_v62 }
 0x4c2   : > { %v4588_v63 = vpop.permute.xlu1 %4587 }
 0x4c3   : > { %v4620_v38 = vsel %vm1626_vm9, %v4618_v54, %v4588_v63  ;;  %v7213_v54 = vld [vmem:[#allocation3_spill] sm:$0xff] }
 0x4c4   : > { %v4570_v13 = vpop.permute.xlu0 %4569 }
 0x4c5   : > { %v4607_v6 = vsel %vm1629_vm10, %v4605_v55, %v4570_v13 }
 0x4c6   : > { %v4591_v23 = vpop.permute.xlu1 %4590 }
 0x4c7   : > { %v4622_v24 = vsel %vm1629_vm10, %v4620_v38, %v4591_v23 }
 0x4c8   : > { %v4573_v49 = vpop.permute.xlu0 %4572  ;;  %5226 = vmatmul.mubr.msk.bf16.vlgmr.msra.gmra.mrb[8].mxu1 %vm1921_vm13, %v5474_v20 }
 0x4c9   : > { %4319 = vmatpush1.bf16.msra.mxu1 %v4314_v41  ;;  %4350 = vmatprep.mubr.bf16.mxu1 %v7194_v30  ;;  %v4609_v17 = vsel %vm1632_vm11, %v4607_v6, %v4573_v49  ;;  %v5009_v41 = vld [vmem:[%s7162_s5] sm:$0x1]  ;;  %v5020_v49 = vsub.s32 0, %v7213_v54 }
 0x4ca   : > { %v4594_v12 = vpop.permute.xlu1 %4593  ;;  %v4636_v22 = vsel %vm1925_vm12, %v4609_v17, 0 }
 0x4cb   : > { %v4624_v46 = vsel %vm1632_vm11, %v4622_v24, %v4594_v12 }
 0x4cc   : > { %v4857_v29 = vpop.permute.xlu0 %4856  ;;  %5241 = vmatprep.subr.msk.bf16.mxu1 %vm1925_vm12, %v4624_v46 }
 0x4cd   : > { %v4899_v60 = vsel %vm1613_vm5, %v6944_v48, %v4857_v29 }
 0x4ce   : > { %v4878_v36 = vpop.permute.xlu1 %4877 }
 0x4cf   : > { %v4914_v56 = vsel %vm1613_vm5, %v6957_v42, %v4878_v36 }
 0x4d0   : > { %v4860_v52 = vpop.permute.xlu0 %4859 }
 0x4d1   : > { %v4901_v44 = vsel %vm1617_vm6, %v4899_v60, %v4860_v52 }
 0x4d2   : > { %v4881_v15 = vpop.permute.xlu1 %4880 }
 0x4d3   : > { %v4916_v33 = vsel %vm1617_vm6, %v4914_v56, %v4881_v15 }
 0x4d4   : > { %v4863_v57 = vpop.permute.xlu0 %4862  ;;  %5237 = vmatmul.mubr.msk.bf16.vlgmr.msra.gmra.mrb[8].mxu1 %vm1921_vm13, %v5475_v26  ;;  %v5522_v26 = vmov 1966171168  }
 0x4d5   : > { %4641 = vmatpush1.bf16.msra.mxu1 %v4636_v22  ;;  %4672 = vmatprep.mubr.bf16.mxu1 %v7194_v30  ;;  %v4903_v31 = vsel %vm1620_vm7, %v4901_v44, %v4863_v57  ;;  %v5082_v17 = vunpack.c.l.s4 %v5522_v26 }
 0x4d6   : > { %v4884_v39 = vpop.permute.xlu1 %4883 }
 0x4d7   : > { %v4918_v19 = vsel %vm1620_vm7, %v4916_v33, %v4884_v39  ;;  %v5083_v15 = vunpack.c.0.s8 %v5082_v17 }
 0x4d8   : > { %v4866_v47 = vpop.permute.xlu0 %4865 }
 0x4d9   : > { %v4905_v58 = vsel %vm1623_vm8, %v4903_v31, %v4866_v47  ;;  %v5086_v57 = vsub.s32 %v5083_v15, %v7213_v54 }
 0x4da   : > { %v4887_v11 = vpop.permute.xlu1 %4886 }
 0x4db   : > { %v4920_v18 = vsel %vm1623_vm8, %v4918_v19, %v4887_v11 }
 0x4dc   : > { %v4869_v40 = vpop.permute.xlu0 %4868 }
 0x4dd   : > { %v4907_v48 = vsel %vm1626_vm9, %v4905_v58, %v4869_v40  ;;  %v7214_v40 = vlaneseq }
 0x4de   : > { %v4890_v35 = vpop.permute.xlu1 %4889 }
 0x4df   : > { %v4922_v42 = vsel %vm1626_vm9, %v4920_v18, %v4890_v35  ;;  %vm5098_vm14 = vcmp.lt.s32.totalorder %v7214_v40, 256 }
 0x4e0   : > { %v4872_v34 = vpop.permute.xlu0 %4871  ;;  %5242 = vmatmul.mubr.msk.bf16.vlgmr.msra.gmra.mrb[8].mxu1 %vm1921_vm13, %v5476_v9 }
 0x4e1   : > { %4974 = vmatprep.mubr.bf16.mxu1 %v7194_v30  ;;  %v4909_v2 = vsel %vm1629_vm10, %v4907_v48, %v4872_v34 }
 0x4e2   : > { %v4893_v51 = vpop.permute.xlu1 %4892 }
 0x4e3   : > { %v4924_v30 = vsel %vm1629_vm10, %v4922_v42, %v4893_v51 }
 0x4e4   : > { %v4875_v61 = vpop.permute.xlu0 %4874 }
 0x4e5   : > { %v4911_v1 = vsel %vm1632_vm11, %v4909_v2, %v4875_v61 }
 0x4e6   : > { %v4896_v16 = vpop.permute.xlu1 %4895  ;;  %v4938_v32 = vsel %vm1925_vm12, %v4911_v1, 0 }
 0x4e7   : > { %v4926_v21 = vsel %vm1632_vm11, %v4924_v30, %v4896_v16 }
 0x4e8   : > { %5246 = vmatprep.subr.msk.bf16.mxu1 %vm1925_vm12, %v4926_v21 }
 0x4e9   : > { %4943 = vmatpush1.bf16.msra.mxu1 %v4938_v32 }
 0x4ec   : > { %5247 = vmatmul.mubr.msk.bf16.vlgmr.msra.gmra.mrb[8].mxu1 %vm1921_vm13, %v5477_v37 }
 0x4f5   : > { %v4994_v14 = vpop.permute.xlu0 %4993 }
 0x4f7   : > { %v4999_v0 = vpop.permute.xlu1 %4998 }
 0x4fb   : > { %v5016_v38 = vpop.permute.xlu1 %5015 }
 0x4fc   : > { %v5021_v24 = vrot.slane %v5016_v38, %v5020_v49 }
 0x5bf   : > { %v4976_v3 = vpop.f32.mrb[8].mxu1 }
 0x5c0   : > { %v5001_v27 = vadd.f32 %v4994_v14, %v4976_v3  ;;  %v4978_v7 = vpop.f32.mrb[9].mxu1 }
 0x5c1   : > { %v5002_v59 = vadd.f32 %v4994_v14, %v4978_v7  ;;  %v4980_v43 = vpop.f32.mrb[10].mxu1 }
 0x5c2   : > { %v5003_v62 = vadd.f32 %v4999_v0, %v4980_v43  ;;  %v4982_v63 = vpop.f32.mrb[11].mxu1  ;;  %v5005_v20 = vmax.f32 %v5001_v27, 0.0 }
 0x5c3   : > { %v5004_v13 = vadd.f32 %v4999_v0, %v4982_v63  ;;  %v5006_v28 = vmax.f32 %v5002_v59, 0.0 }
 0x5c4   : > { %v5007_v8 = vmax.f32 %v5003_v62, 0.0 }
 0x5c5   : > { %v5008_v4 = vmax.f32 %v5004_v13, 0.0 }
 0x5c6   : > { %v5010_v23 = vpack.c.bf16 %v5007_v8, %v5005_v20 }
 0x5c7   : > { %v5011_v5 = vpack.c.bf16 %v5008_v4, %v5006_v28 }
 0x5c9   : > { %5025 = vmatprep.subr.bf16.mxu0 %v5011_v5 }
 0x5ca   : > { %5026 = vmatpush1.bf16.msra.mxu0 %v5010_v23 }
 0x5cd   : > { %5248 = vmatmul.mubr.msk.bf16.vlgmr.msra.gmra.mrb[60].mxu0 %vm1613_vm5, %v5009_v41 }
 0x6a0   : > { %v5059_v12 = vpop.f32.mrb[60].mxu0 }
 0x6a1   : > { %v5060_v10 = vadd.f32 %v5059_v12, %v5021_v24  ;;  %v5061_v25 = vpop.f32.mrb[61].mxu0 }
 0x6a2   : > { %v5062_v46 = vadd.f32 %v5061_v25, %v5021_v24  ;;  %v5063_v50 = vpop.f32.mrb[62].mxu0 }
 0x6a3   : > { %v5249_v29 = vmul.f32 -1.442695, %v5060_v10  ;;  %v5064_v53 = vpop.f32.mrb[63].mxu0 }
 0x6a4   : > { %v5250_v45 = vmul.f32 -1.442695, %v5062_v46 }
 0x6a5   : > { %5478 = vpow2.f32 %v5249_v29 }
 0x6a6   : > { %5480 = vpow2.f32 %v5250_v45 }
 0x6af   : > { %v5479_v36 = vpop.eup %5478 }
 0x6b0   : > { %v5481_v55 = vpop.eup %5480  ;;  %v5072_v6 = vadd.f32 1.0, %v5479_v36 }
 0x6b1   : > { %v5073_v52 = vadd.f32 1.0, %v5481_v55 }
 0x6b2   : > { %5482 = vrcp.f32 %v5072_v6 }
 0x6b3   : > { %5484 = vrcp.f32 %v5073_v52 }
 0x6bc   : > { %v5483_v22 = vpop.eup %5482 }
 0x6bd   : > { %v5485_v39 = vpop.eup %5484 }
 0x6be   : > { %v5080_v47 = vcombine.low %v5483_v22, %v5485_v39 }
 0x6c0   : > { %v5087_v11 = vrot.slane %v5080_v47, %v5086_v57 }
 0x6c2   : > { %v5094_v9 = vrot.slane %v5087_v11, %v5086_v57 }
 0x6c4   : > { %5100 = vst.msk [vmem:[%s294_s16] sm:$0x3] %vm5098_vm14, %v5094_v9 }
 0x6c5 PF: > { %s19_s28 = sadd.s32 1, %s5508_s28   ;;  %s7215_s26 = smov %s5504_s27 }
 0x6c6   : > { %p16_p5 = scmp.ge.s32.totalorder %s19_s28, 4   ;;  %s7216_s27 = smov %s7218_s6 }
 0x6c8   :  { %18 = sbr.rel (!%p16_p5) target bundleno = 3 (0x3), region = 89 }

</bundles_post_ra>
